<compile_context>
chip_gen: v7x
topology: tpu7x:2x2x1
jax: 0.10.0
libtpu: 0.0.40
codegen_flags: <defaults>
</compile_context>

<pallas_src>
import math
import functools

import jax
import jax.numpy as jnp
import numpy as np
from jax import lax
from jax.experimental import pallas as pl
from jax.experimental.pallas import tpu as pltpu


# ---------------------------------------------------------------------------
# Pallas kernel (whole block, one batch element per grid step)
# ---------------------------------------------------------------------------
def _leaky(v, slope=0.1):
    # nn.LeakyReLU(0.1)
    return jnp.maximum(v, slope * v)


def _fused_kernel(x_ref, w_big_ref, qkc_ref, att0_ref, w_ff_ref, bias_ref,
                  alpha_ref, o_ref, qk_scr, xo_scr, agg_scr,
                  *, num_subset, inter_channels, channels, time_len, num_node):
    """Entire STAttentionBlock forward for one batch element, all in VMEM.

    Main layout: channels on sublanes, (t, v) flattened on lanes (T*V wide).
    A small scratch-based relayout exposes the (IC*T, V) / (C*T, V) views
    needed by the attention contractions.
    """
    S, IC, C, T, V = num_subset, inter_channels, channels, time_len, num_node
    inv_scale = 1.0 / float(IC * T)

    x = x_ref[0]                                                    # (C, T*V)

    # ---- ONE fused matmul for every conv that consumes x --------------------
    #   rows [0, 2*S*IC)          : in_nets  (q channels, then k channels)
    #   rows [2*S*IC, +S*C)       : out_nets projections per subset (commuted)
    #   rows [.., +C)             : downs1 (BN folded)
    #   rows [.., +C)             : downs2 (BN folded)
    big = jnp.dot(w_big_ref[...], x, preferred_element_type=jnp.float32)  # (*, T*V)

    r_qk = 2 * S * IC
    r_xo = r_qk + S * C
    r_d1 = r_xo + C
    qk_all = big[0:r_qk]                                            # (2*S*IC, T*V)
    xo_all = big[r_qk:r_xo]                                         # (S*C,   T*V)
    d1 = big[r_xo:r_d1]                                             # (C,     T*V)
    d2 = big[r_d1:r_d1 + C]                                         # (C,     T*V)

    qkc = qkc_ref[...]                                              # (2*S*IC, V)

    # ---- bridge conv layout -> attention layout (lanes -> sublanes) --------
    # PE/bias constant for q/k is added here (it is t-independent).
    for t in range(T):
        col = t * V
        qk_t = qk_all[:, col:col + V] + qkc                         # (2*S*IC, V)
        xo_t = xo_all[:, col:col + V]                               # (S*C,    V)
        for s in range(S):
            q_row = s * IC * T + t * IC
            k_row = (S + s) * IC * T + t * IC
            x_row = s * C * T + t * C
            qk_scr[q_row:q_row + IC, :] = qk_t[s * IC:(s + 1) * IC]
            qk_scr[k_row:k_row + IC, :] = qk_t[(S + s) * IC:(S + s + 1) * IC]
            xo_scr[x_row:x_row + C, :] = xo_t[s * C:(s + 1) * C]

    # ---- attention per subset: 3 K=IC*T logits dots + 3 aggregation dots ----
    agg_att = None
    for s in range(S):                                              # unrolled (S=3)
        q_s = qk_scr[s * IC * T:(s + 1) * IC * T, :]                # (IC*T, V)
        k_s = qk_scr[(S + s) * IC * T:(S + s + 1) * IC * T, :]      # (IC*T, V)
        logits = lax.dot_general(q_s, k_s, (((0,), (0,)), ((), ())),
                                 preferred_element_type=jnp.float32)   # (V, V)
        # 'atts' buffer is zeros and Dropout(p=0) is identity -> omitted.
        attn = jnp.tanh(logits * inv_scale) * alpha_ref[s] + att0_ref[s]
        xo_s = xo_scr[s * C * T:(s + 1) * C * T, :]                 # (C*T, V)
        contrib = jnp.dot(xo_s, attn, preferred_element_type=jnp.float32)
        agg_att = contrib if agg_att is None else agg_att + contrib  # (C*T, V)

    # ---- bridge attention layout -> conv layout -----------------------------
    for t in range(T):
        agg_scr[:, t * V:(t + 1) * V] = agg_att[t * C:(t + 1) * C, :]

    b_z = bias_ref[:, 0:1]                                          # out_nets + downs1
    b_ff = bias_ref[:, 1:2]
    b_d2 = bias_ref[:, 2:3]

    z = _leaky(agg_scr[...] + d1 + b_z)                             # (C, T*V)
    ff = _leaky(jnp.dot(w_ff_ref[...], z, preferred_element_type=jnp.float32)
                + b_ff)                                             # ff_nets
    o_ref[0] = _leaky(d2 + b_d2 + ff)                               # +downs2, LeakyReLU


# ---------------------------------------------------------------------------
# Parameter setup (glue)
# ---------------------------------------------------------------------------
def spatial_positional_encoding(channel, joint_num, time_len):
    """PositionalEncoding(channel, joint_num, time_len, 'spatial') buffer -> (C, T, V)."""
    pos = jnp.tile(jnp.arange(joint_num, dtype=jnp.float32), time_len)          # (T*V,)
    div = jnp.exp(jnp.arange(0, channel, 2, dtype=jnp.float32)
                  * (-(math.log(10000.0) / channel)))                            # (C/2,)
    ang = pos[:, None] * div[None, :]                                            # (T*V, C/2)
    pe = jnp.zeros((time_len * joint_num, channel), jnp.float32)
    pe = pe.at[:, 0::2].set(jnp.sin(ang))
    pe = pe.at[:, 1::2].set(jnp.cos(ang))
    return pe.reshape(time_len, joint_num, channel).transpose(2, 0, 1)           # (C, T, V)


def fold_conv_bn(w, b, bn, eps=1e-5):
    """Fold 1x1 conv (w:(oc,ic), b:(oc,)) + inference BatchNorm into w', b'."""
    gamma, beta, mean, var = bn
    scale = gamma / jnp.sqrt(var + eps)
    return w * scale[:, None], (b - mean) * scale + beta


def init_params(key, C, IC, S, V, T):
    ks = jax.random.split(key, 12)

    def conv(k, oc, ic):
        kw, kb = jax.random.split(k)
        return (0.1 * jax.random.normal(kw, (oc, ic), jnp.float32),
                0.1 * jax.random.normal(kb, (oc,), jnp.float32))

    def bn(k, c):
        k1, k2, k3, k4 = jax.random.split(k, 4)
        return (1.0 + 0.1 * jax.random.normal(k1, (c,), jnp.float32),   # gamma
                0.1 * jax.random.normal(k2, (c,), jnp.float32),          # beta
                0.1 * jax.random.normal(k3, (c,), jnp.float32),          # running_mean
                jax.random.uniform(k4, (c,), jnp.float32, 0.5, 1.5))     # running_var

    p = {}
    p["w_in"], p["b_in"] = conv(ks[0], 2 * S * IC, C)                    # in_nets
    p["alphas"] = jax.random.uniform(ks[1], (1, S, 1, 1), jnp.float32, 0.5, 1.5)
    p["attention0s"] = (jnp.ones((1, S, V, V), jnp.float32) / V
                        + 0.05 * jax.random.normal(ks[2], (1, S, V, V), jnp.float32))
    p["w_out"], p["b_out"] = conv(ks[3], C, S * C);  p["bn_out"] = bn(ks[4], C)   # out_nets
    p["w_d1"], p["b_d1"] = conv(ks[5], C, C);        p["bn_d1"] = bn(ks[6], C)    # downs1
    p["w_d2"], p["b_d2"] = conv(ks[7], C, C);        p["bn_d2"] = bn(ks[8], C)    # downs2
    p["w_ff"], p["b_ff"] = conv(ks[9], C, C);        p["bn_ff"] = bn(ks[10], C)   # ff_nets
    p["pe"] = spatial_positional_encoding(C, V, T)
    # TODO(synk): self.tcn and the temporal-attention parameters exist in __init__
    # but are never used by the given forward(), so they are not materialized here.
    return p


# ---------------------------------------------------------------------------
# Wrapper (host-side trace-time folding + single pallas_call)
# ---------------------------------------------------------------------------
def st_attention_block(x, p, *, num_subset, inter_channels):
    N, C, T, V = x.shape
    S, IC = num_subset, inter_channels
    TV = T * V
    hp = lax.Precision.HIGHEST

    x_conv = x.reshape(N, C, TV)                       # free (contiguous) reshape

    # ---- fold conv + inference BatchNorm into single matmul + bias ----------
    w_out_f, b_out_f = fold_conv_bn(p["w_out"], p["b_out"], p["bn_out"])
    w_d1_f,  b_d1_f  = fold_conv_bn(p["w_d1"],  p["b_d1"],  p["bn_d1"])
    w_ff_f,  b_ff_f  = fold_conv_bn(p["w_ff"],  p["b_ff"],  p["bn_ff"])
    w_d2_f,  b_d2_f  = fold_conv_bn(p["w_d2"],  p["b_d2"],  p["bn_d2"])

    # ---- out_nets commuted through the attention product --------------------
    #   W_out @ (x (x) attn, stacked over s)  ==  sum_s (W_out[:, sC:(s+1)C] @ x) (x) attn_s
    w_out_proj = jnp.concatenate([w_out_f[:, s * C:(s + 1) * C] for s in range(S)],
                                 axis=0)                               # (S*C, C)

    # ---- ONE stacked weight matrix for every conv that consumes x ----------
    w_big = jnp.concatenate([p["w_in"], w_out_proj, w_d1_f, w_d2_f], axis=0)

    # ---- PE + in_nets bias folded into an additive constant -----------------
    # Spatial PE is time-independent, so a (2*S*IC, V) constant suffices:
    #   in_nets(x + pe) = W_in @ x + (W_in @ pe + b_in)
    pe_cv = p["pe"][:, 0, :]                                           # (C, V)
    qk_const = jnp.dot(p["w_in"], pe_cv, precision=hp) + p["b_in"][:, None]

    bias_pack = jnp.stack([b_out_f + b_d1_f, b_ff_f, b_d2_f], axis=1)  # (C, 3)

    alphas = p["alphas"].reshape(S).astype(jnp.float32)                # SMEM scalars
    att0 = p["attention0s"].reshape(S, V, V).astype(jnp.float32)

    kernel = functools.partial(_fused_kernel, num_subset=S, inter_channels=IC,
                               channels=C, time_len=T, num_node=V)

    out = pl.pallas_call(
        kernel,
        out_shape=jax.ShapeDtypeStruct((N, C, TV), jnp.float32),
        grid=(N,),
        in_specs=[
            pl.BlockSpec((1, C, TV), lambda n: (n, 0, 0)),             # x (per batch)
            pl.BlockSpec((2 * S * IC + S * C + 2 * C, C), lambda n: (0, 0)),  # stacked W
            pl.BlockSpec((2 * S * IC, V), lambda n: (0, 0)),           # PE/bias const
            pl.BlockSpec((S, V, V), lambda n: (0, 0, 0)),              # attention0s
            pl.BlockSpec((C, C), lambda n: (0, 0)),                    # w_ff (folded)
            pl.BlockSpec((C, 3), lambda n: (0, 0)),                    # packed biases
            pl.BlockSpec(memory_space=pltpu.MemorySpace.SMEM),         # alphas (S,)
        ],
        out_specs=pl.BlockSpec((1, C, TV), lambda n: (n, 0, 0)),
        scratch_shapes=[
            pltpu.VMEM((2 * S * IC * T, V), jnp.float32),              # q/k attention layout
            pltpu.VMEM((S * C * T, V), jnp.float32),                   # out-projected x
            pltpu.VMEM((C, TV), jnp.float32),                          # aggregated y (conv layout)
        ],
        compiler_params=pltpu.CompilerParams(
            dimension_semantics=("parallel",)),                        # batch across cores
    )(x_conv, w_big, qk_const, att0, w_ff_f, bias_pack, alphas)

    return out.reshape(N, C, T, V)


# ---------------------------------------------------------------------------
# Pure-JAX reference (mirrors the PyTorch forward, BN applied explicitly)
# ---------------------------------------------------------------------------
def reference_forward(x, p, *, S, IC, eps=1e-5):
    N, C, T, V = x.shape
    hp = lax.Precision.HIGHEST

    def conv1x1(v, w, b):
        return (jnp.einsum("oc,nctv->notv", w, v, precision=hp)
                + b[None, :, None, None])

    def bn(v, stats):
        g, be, mu, var = stats
        return ((v - mu[None, :, None, None])
                / jnp.sqrt(var[None, :, None, None] + eps)
                * g[None, :, None, None] + be[None, :, None, None])

    y = x + p["pe"][None]
    qk = conv1x1(y, p["w_in"], p["b_in"]).reshape(N, 2, S, IC, T, V)
    q, k = qk[:, 0], qk[:, 1]
    attention = (jnp.tanh(jnp.einsum("nsctu,nsctv->nsuv", q, k, precision=hp)
                          / (IC * T)) * p["alphas"].reshape(1, S, 1, 1))
    attention = attention + p["attention0s"]
    y2 = jnp.einsum("nctu,nsuv->nsctv", x, attention, precision=hp).reshape(N, S * C, T, V)

    yout = bn(conv1x1(y2, p["w_out"], p["b_out"]), p["bn_out"])
    d1 = bn(conv1x1(x, p["w_d1"], p["b_d1"]), p["bn_d1"])
    z = _leaky(d1 + yout)
    ff = _leaky(bn(conv1x1(z, p["w_ff"], p["b_ff"]), p["bn_ff"]))
    d2 = bn(conv1x1(x, p["w_d2"], p["b_d2"]), p["bn_d2"])
    return _leaky(d2 + ff)


# ---------------------------------------------------------------------------
if __name__ == "__main__":
    # small, forward-consistent shapes: N=2 batch, C=16 channels, T=16 frames,
    # V=25 joints (default num_node), num_subset=3, inter_channels=8
    N, C, T, V = 2, 16, 16, 25
    IC, S = 8, 3

    key = jax.random.PRNGKey(0)
    kx, kp = jax.random.split(key)
    x = jax.random.normal(kx, (N, C, T, V), jnp.float32)
    params = init_params(kp, C, IC, S, V, T)

    fwd = jax.jit(functools.partial(st_attention_block,
                                    num_subset=S, inter_channels=IC))
    out = jax.block_until_ready(fwd(x, params))

    ref = reference_forward(x, params, S=S, IC=IC)
    np.testing.assert_allclose(np.asarray(out), np.asarray(ref), rtol=2e-3, atol=2e-3)

    print("KERNEL_OK")
</pallas_src>

<mosaic_0001>
module attributes {stable_mosaic.version = 11 : i64} {
  func.func @_fused_kernel(%arg0: i32, %arg1: memref<1x16x400xf32, #tpu.memory_space<vmem>>, %arg2: memref<128x16xf32, #tpu.memory_space<vmem>>, %arg3: memref<48x25xf32, #tpu.memory_space<vmem>>, %arg4: memref<3x25x25xf32, #tpu.memory_space<vmem>>, %arg5: memref<16x16xf32, #tpu.memory_space<vmem>>, %arg6: memref<16x3xf32, #tpu.memory_space<vmem>>, %arg7: memref<3xf32, #tpu.memory_space<smem>>, %arg8: memref<1x16x400xf32, #tpu.memory_space<vmem>>, %arg9: memref<768x25xf32, #tpu.memory_space<vmem>>, %arg10: memref<768x25xf32, #tpu.memory_space<vmem>>, %arg11: memref<16x400xf32, #tpu.memory_space<vmem>>) attributes {dimension_semantics = [#tpu.dimension_semantics<parallel>], iteration_bounds = array<i64: 2>, scalar_prefetch = 0 : i64, scratch_operands = 3 : i64, tpu.core_type = #tpu.core_type<tc>, window_params = [{transform_indices = @transform_0, window_bounds = array<i64: 1, 16, 400>}, {pipeline_mode = #tpu.pipeline_mode<synchronous>, transform_indices = @transform_1, window_bounds = array<i64: 128, 16>}, {pipeline_mode = #tpu.pipeline_mode<synchronous>, transform_indices = @transform_2, window_bounds = array<i64: 48, 25>}, {pipeline_mode = #tpu.pipeline_mode<synchronous>, transform_indices = @transform_3, window_bounds = array<i64: 3, 25, 25>}, {pipeline_mode = #tpu.pipeline_mode<synchronous>, transform_indices = @transform_4, window_bounds = array<i64: 16, 16>}, {pipeline_mode = #tpu.pipeline_mode<synchronous>, transform_indices = @transform_5, window_bounds = array<i64: 16, 3>}, {transform_indices = @transform_6, window_bounds = array<i64: 3>}, {transform_indices = @transform_7, window_bounds = array<i64: 1, 16, 400>}]} {
    %c0 = arith.constant 0 : index
    %c0_0 = arith.constant 0 : index
    %c0_1 = arith.constant 0 : index
    %0 = vector.load %arg1[%c0, %c0_0, %c0_1] : memref<1x16x400xf32, #tpu.memory_space<vmem>>, vector<1x16x400xf32>
    %1 = vector.shape_cast %0 : vector<1x16x400xf32> to vector<16x400xf32>
    %c0_2 = arith.constant 0 : index
    %c0_3 = arith.constant 0 : index
    %2 = vector.load %arg2[%c0_2, %c0_3] : memref<128x16xf32, #tpu.memory_space<vmem>>, vector<128x16xf32>
    %cst = arith.constant dense<0.000000e+00> : vector<128x400xf32>
    %3 = tpu.matmul %2, %1, %cst {dimension_numbers = #tpu.dot_dimension_numbers<[1], [0], [0], [1], [0, 0, 1, 1], [], []>} : vector<128x16xf32>, vector<16x400xf32>, vector<128x400xf32> -> vector<128x400xf32>
    %4 = vector.extract_strided_slice %3 {offsets = [0, 0], sizes = [48, 400], strides = [1, 1]} : vector<128x400xf32> to vector<48x400xf32>
    %5 = vector.extract_strided_slice %3 {offsets = [48, 0], sizes = [48, 400], strides = [1, 1]} : vector<128x400xf32> to vector<48x400xf32>
    %6 = vector.extract_strided_slice %3 {offsets = [96, 0], sizes = [16, 400], strides = [1, 1]} : vector<128x400xf32> to vector<16x400xf32>
    %7 = vector.extract_strided_slice %3 {offsets = [112, 0], sizes = [16, 400], strides = [1, 1]} : vector<128x400xf32> to vector<16x400xf32>
    %c0_4 = arith.constant 0 : index
    %c0_5 = arith.constant 0 : index
    %8 = vector.load %arg3[%c0_4, %c0_5] : memref<48x25xf32, #tpu.memory_space<vmem>>, vector<48x25xf32>
    %9 = vector.extract_strided_slice %4 {offsets = [0, 0], sizes = [48, 25], strides = [1, 1]} : vector<48x400xf32> to vector<48x25xf32>
    %10 = arith.addf %9, %8 : vector<48x25xf32>
    %11 = vector.extract_strided_slice %5 {offsets = [0, 0], sizes = [48, 25], strides = [1, 1]} : vector<48x400xf32> to vector<48x25xf32>
    %12 = vector.extract_strided_slice %10 {offsets = [0, 0], sizes = [8, 25], strides = [1, 1]} : vector<48x25xf32> to vector<8x25xf32>
    %c0_6 = arith.constant 0 : index
    %c0_7 = arith.constant 0 : index
    %13 = vector.load %arg9[%c0_6, %c0_7] : memref<768x25xf32, #tpu.memory_space<vmem>>, vector<8x25xf32>
    tpu.vector_store %arg9[%c0_6, %c0_7], %12 {strides = array<i32>} : memref<768x25xf32, #tpu.memory_space<vmem>>, vector<8x25xf32>,
    %14 = vector.extract_strided_slice %10 {offsets = [24, 0], sizes = [8, 25], strides = [1, 1]} : vector<48x25xf32> to vector<8x25xf32>
    %c384 = arith.constant 384 : index
    %c0_8 = arith.constant 0 : index
    %15 = vector.load %arg9[%c384, %c0_8] : memref<768x25xf32, #tpu.memory_space<vmem>>, vector<8x25xf32>
    tpu.vector_store %arg9[%c384, %c0_8], %14 {strides = array<i32>} : memref<768x25xf32, #tpu.memory_space<vmem>>, vector<8x25xf32>,
    %16 = vector.extract_strided_slice %11 {offsets = [0, 0], sizes = [16, 25], strides = [1, 1]} : vector<48x25xf32> to vector<16x25xf32>
    %c0_9 = arith.constant 0 : index
    %c0_10 = arith.constant 0 : index
    %17 = vector.load %arg10[%c0_9, %c0_10] : memref<768x25xf32, #tpu.memory_space<vmem>>, vector<16x25xf32>
    tpu.vector_store %arg10[%c0_9, %c0_10], %16 {strides = array<i32>} : memref<768x25xf32, #tpu.memory_space<vmem>>, vector<16x25xf32>,
    %18 = vector.extract_strided_slice %10 {offsets = [8, 0], sizes = [8, 25], strides = [1, 1]} : vector<48x25xf32> to vector<8x25xf32>
    %c128 = arith.constant 128 : index
    %c0_11 = arith.constant 0 : index
    %19 = vector.load %arg9[%c128, %c0_11] : memref<768x25xf32, #tpu.memory_space<vmem>>, vector<8x25xf32>
    tpu.vector_store %arg9[%c128, %c0_11], %18 {strides = array<i32>} : memref<768x25xf32, #tpu.memory_space<vmem>>, vector<8x25xf32>,
    %20 = vector.extract_strided_slice %10 {offsets = [32, 0], sizes = [8, 25], strides = [1, 1]} : vector<48x25xf32> to vector<8x25xf32>
    %c512 = arith.constant 512 : index
    %c0_12 = arith.constant 0 : index
    %21 = vector.load %arg9[%c512, %c0_12] : memref<768x25xf32, #tpu.memory_space<vmem>>, vector<8x25xf32>
    tpu.vector_store %arg9[%c512, %c0_12], %20 {strides = array<i32>} : memref<768x25xf32, #tpu.memory_space<vmem>>, vector<8x25xf32>,
    %22 = vector.extract_strided_slice %11 {offsets = [16, 0], sizes = [16, 25], strides = [1, 1]} : vector<48x25xf32> to vector<16x25xf32>
    %c256 = arith.constant 256 : index
    %c0_13 = arith.constant 0 : index
    %23 = vector.load %arg10[%c256, %c0_13] : memref<768x25xf32, #tpu.memory_space<vmem>>, vector<16x25xf32>
    tpu.vector_store %arg10[%c256, %c0_13], %22 {strides = array<i32>} : memref<768x25xf32, #tpu.memory_space<vmem>>, vector<16x25xf32>,
    %24 = vector.extract_strided_slice %10 {offsets = [16, 0], sizes = [8, 25], strides = [1, 1]} : vector<48x25xf32> to vector<8x25xf32>
    %c256_14 = arith.constant 256 : index
    %c0_15 = arith.constant 0 : index
    %25 = vector.load %arg9[%c256_14, %c0_15] : memref<768x25xf32, #tpu.memory_space<vmem>>, vector<8x25xf32>
    tpu.vector_store %arg9[%c256_14, %c0_15], %24 {strides = array<i32>} : memref<768x25xf32, #tpu.memory_space<vmem>>, vector<8x25xf32>,
    %26 = vector.extract_strided_slice %10 {offsets = [40, 0], sizes = [8, 25], strides = [1, 1]} : vector<48x25xf32> to vector<8x25xf32>
    %c640 = arith.constant 640 : index
    %c0_16 = arith.constant 0 : index
    %27 = vector.load %arg9[%c640, %c0_16] : memref<768x25xf32, #tpu.memory_space<vmem>>, vector<8x25xf32>
    tpu.vector_store %arg9[%c640, %c0_16], %26 {strides = array<i32>} : memref<768x25xf32, #tpu.memory_space<vmem>>, vector<8x25xf32>,
    %28 = vector.extract_strided_slice %11 {offsets = [32, 0], sizes = [16, 25], strides = [1, 1]} : vector<48x25xf32> to vector<16x25xf32>
    %c512_17 = arith.constant 512 : index
    %c0_18 = arith.constant 0 : index
    %29 = vector.load %arg10[%c512_17, %c0_18] : memref<768x25xf32, #tpu.memory_space<vmem>>, vector<16x25xf32>
    tpu.vector_store %arg10[%c512_17, %c0_18], %28 {strides = array<i32>} : memref<768x25xf32, #tpu.memory_space<vmem>>, vector<16x25xf32>,
    %30 = vector.extract_strided_slice %4 {offsets = [0, 25], sizes = [48, 25], strides = [1, 1]} : vector<48x400xf32> to vector<48x25xf32>
    %31 = arith.addf %30, %8 : vector<48x25xf32>
    %32 = vector.extract_strided_slice %5 {offsets = [0, 25], sizes = [48, 25], strides = [1, 1]} : vector<48x400xf32> to vector<48x25xf32>
    %33 = vector.extract_strided_slice %31 {offsets = [0, 0], sizes = [8, 25], strides = [1, 1]} : vector<48x25xf32> to vector<8x25xf32>
    %c8 = arith.constant 8 : index
    %c0_19 = arith.constant 0 : index
    %34 = vector.load %arg9[%c8, %c0_19] : memref<768x25xf32, #tpu.memory_space<vmem>>, vector<8x25xf32>
    tpu.vector_store %arg9[%c8, %c0_19], %33 {strides = array<i32>} : memref<768x25xf32, #tpu.memory_space<vmem>>, vector<8x25xf32>,
    %35 = vector.extract_strided_slice %31 {offsets = [24, 0], sizes = [8, 25], strides = [1, 1]} : vector<48x25xf32> to vector<8x25xf32>
    %c392 = arith.constant 392 : index
    %c0_20 = arith.constant 0 : index
    %36 = vector.load %arg9[%c392, %c0_20] : memref<768x25xf32, #tpu.memory_space<vmem>>, vector<8x25xf32>
    tpu.vector_store %arg9[%c392, %c0_20], %35 {strides = array<i32>} : memref<768x25xf32, #tpu.memory_space<vmem>>, vector<8x25xf32>,
    %37 = vector.extract_strided_slice %32 {offsets = [0, 0], sizes = [16, 25], strides = [1, 1]} : vector<48x25xf32> to vector<16x25xf32>
    %c16 = arith.constant 16 : index
    %c0_21 = arith.constant 0 : index
    %38 = vector.load %arg10[%c16, %c0_21] : memref<768x25xf32, #tpu.memory_space<vmem>>, vector<16x25xf32>
    tpu.vector_store %arg10[%c16, %c0_21], %37 {strides = array<i32>} : memref<768x25xf32, #tpu.memory_space<vmem>>, vector<16x25xf32>,
    %39 = vector.extract_strided_slice %31 {offsets = [8, 0], sizes = [8, 25], strides = [1, 1]} : vector<48x25xf32> to vector<8x25xf32>
    %c136 = arith.constant 136 : index
    %c0_22 = arith.constant 0 : index
    %40 = vector.load %arg9[%c136, %c0_22] : memref<768x25xf32, #tpu.memory_space<vmem>>, vector<8x25xf32>
    tpu.vector_store %arg9[%c136, %c0_22], %39 {strides = array<i32>} : memref<768x25xf32, #tpu.memory_space<vmem>>, vector<8x25xf32>,
    %41 = vector.extract_strided_slice %31 {offsets = [32, 0], sizes = [8, 25], strides = [1, 1]} : vector<48x25xf32> to vector<8x25xf32>
    %c520 = arith.constant 520 : index
    %c0_23 = arith.constant 0 : index
    %42 = vector.load %arg9[%c520, %c0_23] : memref<768x25xf32, #tpu.memory_space<vmem>>, vector<8x25xf32>
    tpu.vector_store %arg9[%c520, %c0_23], %41 {strides = array<i32>} : memref<768x25xf32, #tpu.memory_space<vmem>>, vector<8x25xf32>,
    %43 = vector.extract_strided_slice %32 {offsets = [16, 0], sizes = [16, 25], strides = [1, 1]} : vector<48x25xf32> to vector<16x25xf32>
    %c272 = arith.constant 272 : index
    %c0_24 = arith.constant 0 : index
    %44 = vector.load %arg10[%c272, %c0_24] : memref<768x25xf32, #tpu.memory_space<vmem>>, vector<16x25xf32>
    tpu.vector_store %arg10[%c272, %c0_24], %43 {strides = array<i32>} : memref<768x25xf32, #tpu.memory_space<vmem>>, vector<16x25xf32>,
    %45 = vector.extract_strided_slice %31 {offsets = [16, 0], sizes = [8, 25], strides = [1, 1]} : vector<48x25xf32> to vector<8x25xf32>
    %c264 = arith.constant 264 : index
    %c0_25 = arith.constant 0 : index
    %46 = vector.load %arg9[%c264, %c0_25] : memref<768x25xf32, #tpu.memory_space<vmem>>, vector<8x25xf32>
    tpu.vector_store %arg9[%c264, %c0_25], %45 {strides = array<i32>} : memref<768x25xf32, #tpu.memory_space<vmem>>, vector<8x25xf32>,
    %47 = vector.extract_strided_slice %31 {offsets = [40, 0], sizes = [8, 25], strides = [1, 1]} : vector<48x25xf32> to vector<8x25xf32>
    %c648 = arith.constant 648 : index
    %c0_26 = arith.constant 0 : index
    %48 = vector.load %arg9[%c648, %c0_26] : memref<768x25xf32, #tpu.memory_space<vmem>>, vector<8x25xf32>
    tpu.vector_store %arg9[%c648, %c0_26], %47 {strides = array<i32>} : memref<768x25xf32, #tpu.memory_space<vmem>>, vector<8x25xf32>,
    %49 = vector.extract_strided_slice %32 {offsets = [32, 0], sizes = [16, 25], strides = [1, 1]} : vector<48x25xf32> to vector<16x25xf32>
    %c528 = arith.constant 528 : index
    %c0_27 = arith.constant 0 : index
    %50 = vector.load %arg10[%c528, %c0_27] : memref<768x25xf32, #tpu.memory_space<vmem>>, vector<16x25xf32>
    tpu.vector_store %arg10[%c528, %c0_27], %49 {strides = array<i32>} : memref<768x25xf32, #tpu.memory_space<vmem>>, vector<16x25xf32>,
    %51 = vector.extract_strided_slice %4 {offsets = [0, 50], sizes = [48, 25], strides = [1, 1]} : vector<48x400xf32> to vector<48x25xf32>
    %52 = arith.addf %51, %8 : vector<48x25xf32>
    %53 = vector.extract_strided_slice %5 {offsets = [0, 50], sizes = [48, 25], strides = [1, 1]} : vector<48x400xf32> to vector<48x25xf32>
    %54 = vector.extract_strided_slice %52 {offsets = [0, 0], sizes = [8, 25], strides = [1, 1]} : vector<48x25xf32> to vector<8x25xf32>
    %c16_28 = arith.constant 16 : index
    %c0_29 = arith.constant 0 : index
    %55 = vector.load %arg9[%c16_28, %c0_29] : memref<768x25xf32, #tpu.memory_space<vmem>>, vector<8x25xf32>
    tpu.vector_store %arg9[%c16_28, %c0_29], %54 {strides = array<i32>} : memref<768x25xf32, #tpu.memory_space<vmem>>, vector<8x25xf32>,
    %56 = vector.extract_strided_slice %52 {offsets = [24, 0], sizes = [8, 25], strides = [1, 1]} : vector<48x25xf32> to vector<8x25xf32>
    %c400 = arith.constant 400 : index
    %c0_30 = arith.constant 0 : index
    %57 = vector.load %arg9[%c400, %c0_30] : memref<768x25xf32, #tpu.memory_space<vmem>>, vector<8x25xf32>
    tpu.vector_store %arg9[%c400, %c0_30], %56 {strides = array<i32>} : memref<768x25xf32, #tpu.memory_space<vmem>>, vector<8x25xf32>,
    %58 = vector.extract_strided_slice %53 {offsets = [0, 0], sizes = [16, 25], strides = [1, 1]} : vector<48x25xf32> to vector<16x25xf32>
    %c32 = arith.constant 32 : index
    %c0_31 = arith.constant 0 : index
    %59 = vector.load %arg10[%c32, %c0_31] : memref<768x25xf32, #tpu.memory_space<vmem>>, vector<16x25xf32>
    tpu.vector_store %arg10[%c32, %c0_31], %58 {strides = array<i32>} : memref<768x25xf32, #tpu.memory_space<vmem>>, vector<16x25xf32>,
    %60 = vector.extract_strided_slice %52 {offsets = [8, 0], sizes = [8, 25], strides = [1, 1]} : vector<48x25xf32> to vector<8x25xf32>
    %c144 = arith.constant 144 : index
    %c0_32 = arith.constant 0 : index
    %61 = vector.load %arg9[%c144, %c0_32] : memref<768x25xf32, #tpu.memory_space<vmem>>, vector<8x25xf32>
    tpu.vector_store %arg9[%c144, %c0_32], %60 {strides = array<i32>} : memref<768x25xf32, #tpu.memory_space<vmem>>, vector<8x25xf32>,
    %62 = vector.extract_strided_slice %52 {offsets = [32, 0], sizes = [8, 25], strides = [1, 1]} : vector<48x25xf32> to vector<8x25xf32>
    %c528_33 = arith.constant 528 : index
    %c0_34 = arith.constant 0 : index
    %63 = vector.load %arg9[%c528_33, %c0_34] : memref<768x25xf32, #tpu.memory_space<vmem>>, vector<8x25xf32>
    tpu.vector_store %arg9[%c528_33, %c0_34], %62 {strides = array<i32>} : memref<768x25xf32, #tpu.memory_space<vmem>>, vector<8x25xf32>,
    %64 = vector.extract_strided_slice %53 {offsets = [16, 0], sizes = [16, 25], strides = [1, 1]} : vector<48x25xf32> to vector<16x25xf32>
    %c288 = arith.constant 288 : index
    %c0_35 = arith.constant 0 : index
    %65 = vector.load %arg10[%c288, %c0_35] : memref<768x25xf32, #tpu.memory_space<vmem>>, vector<16x25xf32>
    tpu.vector_store %arg10[%c288, %c0_35], %64 {strides = array<i32>} : memref<768x25xf32, #tpu.memory_space<vmem>>, vector<16x25xf32>,
    %66 = vector.extract_strided_slice %52 {offsets = [16, 0], sizes = [8, 25], strides = [1, 1]} : vector<48x25xf32> to vector<8x25xf32>
    %c272_36 = arith.constant 272 : index
    %c0_37 = arith.constant 0 : index
    %67 = vector.load %arg9[%c272_36, %c0_37] : memref<768x25xf32, #tpu.memory_space<vmem>>, vector<8x25xf32>
    tpu.vector_store %arg9[%c272_36, %c0_37], %66 {strides = array<i32>} : memref<768x25xf32, #tpu.memory_space<vmem>>, vector<8x25xf32>,
    %68 = vector.extract_strided_slice %52 {offsets = [40, 0], sizes = [8, 25], strides = [1, 1]} : vector<48x25xf32> to vector<8x25xf32>
    %c656 = arith.constant 656 : index
    %c0_38 = arith.constant 0 : index
    %69 = vector.load %arg9[%c656, %c0_38] : memref<768x25xf32, #tpu.memory_space<vmem>>, vector<8x25xf32>
    tpu.vector_store %arg9[%c656, %c0_38], %68 {strides = array<i32>} : memref<768x25xf32, #tpu.memory_space<vmem>>, vector<8x25xf32>,
    %70 = vector.extract_strided_slice %53 {offsets = [32, 0], sizes = [16, 25], strides = [1, 1]} : vector<48x25xf32> to vector<16x25xf32>
    %c544 = arith.constant 544 : index
    %c0_39 = arith.constant 0 : index
    %71 = vector.load %arg10[%c544, %c0_39] : memref<768x25xf32, #tpu.memory_space<vmem>>, vector<16x25xf32>
    tpu.vector_store %arg10[%c544, %c0_39], %70 {strides = array<i32>} : memref<768x25xf32, #tpu.memory_space<vmem>>, vector<16x25xf32>,
    %72 = vector.extract_strided_slice %4 {offsets = [0, 75], sizes = [48, 25], strides = [1, 1]} : vector<48x400xf32> to vector<48x25xf32>
    %73 = arith.addf %72, %8 : vector<48x25xf32>
    %74 = vector.extract_strided_slice %5 {offsets = [0, 75], sizes = [48, 25], strides = [1, 1]} : vector<48x400xf32> to vector<48x25xf32>
    %75 = vector.extract_strided_slice %73 {offsets = [0, 0], sizes = [8, 25], strides = [1, 1]} : vector<48x25xf32> to vector<8x25xf32>
    %c24 = arith.constant 24 : index
    %c0_40 = arith.constant 0 : index
    %76 = vector.load %arg9[%c24, %c0_40] : memref<768x25xf32, #tpu.memory_space<vmem>>, vector<8x25xf32>
    tpu.vector_store %arg9[%c24, %c0_40], %75 {strides = array<i32>} : memref<768x25xf32, #tpu.memory_space<vmem>>, vector<8x25xf32>,
    %77 = vector.extract_strided_slice %73 {offsets = [24, 0], sizes = [8, 25], strides = [1, 1]} : vector<48x25xf32> to vector<8x25xf32>
    %c408 = arith.constant 408 : index
    %c0_41 = arith.constant 0 : index
    %78 = vector.load %arg9[%c408, %c0_41] : memref<768x25xf32, #tpu.memory_space<vmem>>, vector<8x25xf32>
    tpu.vector_store %arg9[%c408, %c0_41], %77 {strides = array<i32>} : memref<768x25xf32, #tpu.memory_space<vmem>>, vector<8x25xf32>,
    %79 = vector.extract_strided_slice %74 {offsets = [0, 0], sizes = [16, 25], strides = [1, 1]} : vector<48x25xf32> to vector<16x25xf32>
    %c48 = arith.constant 48 : index
    %c0_42 = arith.constant 0 : index
    %80 = vector.load %arg10[%c48, %c0_42] : memref<768x25xf32, #tpu.memory_space<vmem>>, vector<16x25xf32>
    tpu.vector_store %arg10[%c48, %c0_42], %79 {strides = array<i32>} : memref<768x25xf32, #tpu.memory_space<vmem>>, vector<16x25xf32>,
    %81 = vector.extract_strided_slice %73 {offsets = [8, 0], sizes = [8, 25], strides = [1, 1]} : vector<48x25xf32> to vector<8x25xf32>
    %c152 = arith.constant 152 : index
    %c0_43 = arith.constant 0 : index
    %82 = vector.load %arg9[%c152, %c0_43] : memref<768x25xf32, #tpu.memory_space<vmem>>, vector<8x25xf32>
    tpu.vector_store %arg9[%c152, %c0_43], %81 {strides = array<i32>} : memref<768x25xf32, #tpu.memory_space<vmem>>, vector<8x25xf32>,
    %83 = vector.extract_strided_slice %73 {offsets = [32, 0], sizes = [8, 25], strides = [1, 1]} : vector<48x25xf32> to vector<8x25xf32>
    %c536 = arith.constant 536 : index
    %c0_44 = arith.constant 0 : index
    %84 = vector.load %arg9[%c536, %c0_44] : memref<768x25xf32, #tpu.memory_space<vmem>>, vector<8x25xf32>
    tpu.vector_store %arg9[%c536, %c0_44], %83 {strides = array<i32>} : memref<768x25xf32, #tpu.memory_space<vmem>>, vector<8x25xf32>,
    %85 = vector.extract_strided_slice %74 {offsets = [16, 0], sizes = [16, 25], strides = [1, 1]} : vector<48x25xf32> to vector<16x25xf32>
    %c304 = arith.constant 304 : index
    %c0_45 = arith.constant 0 : index
    %86 = vector.load %arg10[%c304, %c0_45] : memref<768x25xf32, #tpu.memory_space<vmem>>, vector<16x25xf32>
    tpu.vector_store %arg10[%c304, %c0_45], %85 {strides = array<i32>} : memref<768x25xf32, #tpu.memory_space<vmem>>, vector<16x25xf32>,
    %87 = vector.extract_strided_slice %73 {offsets = [16, 0], sizes = [8, 25], strides = [1, 1]} : vector<48x25xf32> to vector<8x25xf32>
    %c280 = arith.constant 280 : index
    %c0_46 = arith.constant 0 : index
    %88 = vector.load %arg9[%c280, %c0_46] : memref<768x25xf32, #tpu.memory_space<vmem>>, vector<8x25xf32>
    tpu.vector_store %arg9[%c280, %c0_46], %87 {strides = array<i32>} : memref<768x25xf32, #tpu.memory_space<vmem>>, vector<8x25xf32>,
    %89 = vector.extract_strided_slice %73 {offsets = [40, 0], sizes = [8, 25], strides = [1, 1]} : vector<48x25xf32> to vector<8x25xf32>
    %c664 = arith.constant 664 : index
    %c0_47 = arith.constant 0 : index
    %90 = vector.load %arg9[%c664, %c0_47] : memref<768x25xf32, #tpu.memory_space<vmem>>, vector<8x25xf32>
    tpu.vector_store %arg9[%c664, %c0_47], %89 {strides = array<i32>} : memref<768x25xf32, #tpu.memory_space<vmem>>, vector<8x25xf32>,
    %91 = vector.extract_strided_slice %74 {offsets = [32, 0], sizes = [16, 25], strides = [1, 1]} : vector<48x25xf32> to vector<16x25xf32>
    %c560 = arith.constant 560 : index
    %c0_48 = arith.constant 0 : index
    %92 = vector.load %arg10[%c560, %c0_48] : memref<768x25xf32, #tpu.memory_space<vmem>>, vector<16x25xf32>
    tpu.vector_store %arg10[%c560, %c0_48], %91 {strides = array<i32>} : memref<768x25xf32, #tpu.memory_space<vmem>>, vector<16x25xf32>,
    %93 = vector.extract_strided_slice %4 {offsets = [0, 100], sizes = [48, 25], strides = [1, 1]} : vector<48x400xf32> to vector<48x25xf32>
    %94 = arith.addf %93, %8 : vector<48x25xf32>
    %95 = vector.extract_strided_slice %5 {offsets = [0, 100], sizes = [48, 25], strides = [1, 1]} : vector<48x400xf32> to vector<48x25xf32>
    %96 = vector.extract_strided_slice %94 {offsets = [0, 0], sizes = [8, 25], strides = [1, 1]} : vector<48x25xf32> to vector<8x25xf32>
    %c32_49 = arith.constant 32 : index
    %c0_50 = arith.constant 0 : index
    %97 = vector.load %arg9[%c32_49, %c0_50] : memref<768x25xf32, #tpu.memory_space<vmem>>, vector<8x25xf32>
    tpu.vector_store %arg9[%c32_49, %c0_50], %96 {strides = array<i32>} : memref<768x25xf32, #tpu.memory_space<vmem>>, vector<8x25xf32>,
    %98 = vector.extract_strided_slice %94 {offsets = [24, 0], sizes = [8, 25], strides = [1, 1]} : vector<48x25xf32> to vector<8x25xf32>
    %c416 = arith.constant 416 : index
    %c0_51 = arith.constant 0 : index
    %99 = vector.load %arg9[%c416, %c0_51] : memref<768x25xf32, #tpu.memory_space<vmem>>, vector<8x25xf32>
    tpu.vector_store %arg9[%c416, %c0_51], %98 {strides = array<i32>} : memref<768x25xf32, #tpu.memory_space<vmem>>, vector<8x25xf32>,
    %100 = vector.extract_strided_slice %95 {offsets = [0, 0], sizes = [16, 25], strides = [1, 1]} : vector<48x25xf32> to vector<16x25xf32>
    %c64 = arith.constant 64 : index
    %c0_52 = arith.constant 0 : index
    %101 = vector.load %arg10[%c64, %c0_52] : memref<768x25xf32, #tpu.memory_space<vmem>>, vector<16x25xf32>
    tpu.vector_store %arg10[%c64, %c0_52], %100 {strides = array<i32>} : memref<768x25xf32, #tpu.memory_space<vmem>>, vector<16x25xf32>,
    %102 = vector.extract_strided_slice %94 {offsets = [8, 0], sizes = [8, 25], strides = [1, 1]} : vector<48x25xf32> to vector<8x25xf32>
    %c160 = arith.constant 160 : index
    %c0_53 = arith.constant 0 : index
    %103 = vector.load %arg9[%c160, %c0_53] : memref<768x25xf32, #tpu.memory_space<vmem>>, vector<8x25xf32>
    tpu.vector_store %arg9[%c160, %c0_53], %102 {strides = array<i32>} : memref<768x25xf32, #tpu.memory_space<vmem>>, vector<8x25xf32>,
    %104 = vector.extract_strided_slice %94 {offsets = [32, 0], sizes = [8, 25], strides = [1, 1]} : vector<48x25xf32> to vector<8x25xf32>
    %c544_54 = arith.constant 544 : index
    %c0_55 = arith.constant 0 : index
    %105 = vector.load %arg9[%c544_54, %c0_55] : memref<768x25xf32, #tpu.memory_space<vmem>>, vector<8x25xf32>
    tpu.vector_store %arg9[%c544_54, %c0_55], %104 {strides = array<i32>} : memref<768x25xf32, #tpu.memory_space<vmem>>, vector<8x25xf32>,
    %106 = vector.extract_strided_slice %95 {offsets = [16, 0], sizes = [16, 25], strides = [1, 1]} : vector<48x25xf32> to vector<16x25xf32>
    %c320 = arith.constant 320 : index
    %c0_56 = arith.constant 0 : index
    %107 = vector.load %arg10[%c320, %c0_56] : memref<768x25xf32, #tpu.memory_space<vmem>>, vector<16x25xf32>
    tpu.vector_store %arg10[%c320, %c0_56], %106 {strides = array<i32>} : memref<768x25xf32, #tpu.memory_space<vmem>>, vector<16x25xf32>,
    %108 = vector.extract_strided_slice %94 {offsets = [16, 0], sizes = [8, 25], strides = [1, 1]} : vector<48x25xf32> to vector<8x25xf32>
    %c288_57 = arith.constant 288 : index
    %c0_58 = arith.constant 0 : index
    %109 = vector.load %arg9[%c288_57, %c0_58] : memref<768x25xf32, #tpu.memory_space<vmem>>, vector<8x25xf32>
    tpu.vector_store %arg9[%c288_57, %c0_58], %108 {strides = array<i32>} : memref<768x25xf32, #tpu.memory_space<vmem>>, vector<8x25xf32>,
    %110 = vector.extract_strided_slice %94 {offsets = [40, 0], sizes = [8, 25], strides = [1, 1]} : vector<48x25xf32> to vector<8x25xf32>
    %c672 = arith.constant 672 : index
    %c0_59 = arith.constant 0 : index
    %111 = vector.load %arg9[%c672, %c0_59] : memref<768x25xf32, #tpu.memory_space<vmem>>, vector<8x25xf32>
    tpu.vector_store %arg9[%c672, %c0_59], %110 {strides = array<i32>} : memref<768x25xf32, #tpu.memory_space<vmem>>, vector<8x25xf32>,
    %112 = vector.extract_strided_slice %95 {offsets = [32, 0], sizes = [16, 25], strides = [1, 1]} : vector<48x25xf32> to vector<16x25xf32>
    %c576 = arith.constant 576 : index
    %c0_60 = arith.constant 0 : index
    %113 = vector.load %arg10[%c576, %c0_60] : memref<768x25xf32, #tpu.memory_space<vmem>>, vector<16x25xf32>
    tpu.vector_store %arg10[%c576, %c0_60], %112 {strides = array<i32>} : memref<768x25xf32, #tpu.memory_space<vmem>>, vector<16x25xf32>,
    %114 = vector.extract_strided_slice %4 {offsets = [0, 125], sizes = [48, 25], strides = [1, 1]} : vector<48x400xf32> to vector<48x25xf32>
    %115 = arith.addf %114, %8 : vector<48x25xf32>
    %116 = vector.extract_strided_slice %5 {offsets = [0, 125], sizes = [48, 25], strides = [1, 1]} : vector<48x400xf32> to vector<48x25xf32>
    %117 = vector.extract_strided_slice %115 {offsets = [0, 0], sizes = [8, 25], strides = [1, 1]} : vector<48x25xf32> to vector<8x25xf32>
    %c40 = arith.constant 40 : index
    %c0_61 = arith.constant 0 : index
    %118 = vector.load %arg9[%c40, %c0_61] : memref<768x25xf32, #tpu.memory_space<vmem>>, vector<8x25xf32>
    tpu.vector_store %arg9[%c40, %c0_61], %117 {strides = array<i32>} : memref<768x25xf32, #tpu.memory_space<vmem>>, vector<8x25xf32>,
    %119 = vector.extract_strided_slice %115 {offsets = [24, 0], sizes = [8, 25], strides = [1, 1]} : vector<48x25xf32> to vector<8x25xf32>
    %c424 = arith.constant 424 : index
    %c0_62 = arith.constant 0 : index
    %120 = vector.load %arg9[%c424, %c0_62] : memref<768x25xf32, #tpu.memory_space<vmem>>, vector<8x25xf32>
    tpu.vector_store %arg9[%c424, %c0_62], %119 {strides = array<i32>} : memref<768x25xf32, #tpu.memory_space<vmem>>, vector<8x25xf32>,
    %121 = vector.extract_strided_slice %116 {offsets = [0, 0], sizes = [16, 25], strides = [1, 1]} : vector<48x25xf32> to vector<16x25xf32>
    %c80 = arith.constant 80 : index
    %c0_63 = arith.constant 0 : index
    %122 = vector.load %arg10[%c80, %c0_63] : memref<768x25xf32, #tpu.memory_space<vmem>>, vector<16x25xf32>
    tpu.vector_store %arg10[%c80, %c0_63], %121 {strides = array<i32>} : memref<768x25xf32, #tpu.memory_space<vmem>>, vector<16x25xf32>,
    %123 = vector.extract_strided_slice %115 {offsets = [8, 0], sizes = [8, 25], strides = [1, 1]} : vector<48x25xf32> to vector<8x25xf32>
    %c168 = arith.constant 168 : index
    %c0_64 = arith.constant 0 : index
    %124 = vector.load %arg9[%c168, %c0_64] : memref<768x25xf32, #tpu.memory_space<vmem>>, vector<8x25xf32>
    tpu.vector_store %arg9[%c168, %c0_64], %123 {strides = array<i32>} : memref<768x25xf32, #tpu.memory_space<vmem>>, vector<8x25xf32>,
    %125 = vector.extract_strided_slice %115 {offsets = [32, 0], sizes = [8, 25], strides = [1, 1]} : vector<48x25xf32> to vector<8x25xf32>
    %c552 = arith.constant 552 : index
    %c0_65 = arith.constant 0 : index
    %126 = vector.load %arg9[%c552, %c0_65] : memref<768x25xf32, #tpu.memory_space<vmem>>, vector<8x25xf32>
    tpu.vector_store %arg9[%c552, %c0_65], %125 {strides = array<i32>} : memref<768x25xf32, #tpu.memory_space<vmem>>, vector<8x25xf32>,
    %127 = vector.extract_strided_slice %116 {offsets = [16, 0], sizes = [16, 25], strides = [1, 1]} : vector<48x25xf32> to vector<16x25xf32>
    %c336 = arith.constant 336 : index
    %c0_66 = arith.constant 0 : index
    %128 = vector.load %arg10[%c336, %c0_66] : memref<768x25xf32, #tpu.memory_space<vmem>>, vector<16x25xf32>
    tpu.vector_store %arg10[%c336, %c0_66], %127 {strides = array<i32>} : memref<768x25xf32, #tpu.memory_space<vmem>>, vector<16x25xf32>,
    %129 = vector.extract_strided_slice %115 {offsets = [16, 0], sizes = [8, 25], strides = [1, 1]} : vector<48x25xf32> to vector<8x25xf32>
    %c296 = arith.constant 296 : index
    %c0_67 = arith.constant 0 : index
    %130 = vector.load %arg9[%c296, %c0_67] : memref<768x25xf32, #tpu.memory_space<vmem>>, vector<8x25xf32>
    tpu.vector_store %arg9[%c296, %c0_67], %129 {strides = array<i32>} : memref<768x25xf32, #tpu.memory_space<vmem>>, vector<8x25xf32>,
    %131 = vector.extract_strided_slice %115 {offsets = [40, 0], sizes = [8, 25], strides = [1, 1]} : vector<48x25xf32> to vector<8x25xf32>
    %c680 = arith.constant 680 : index
    %c0_68 = arith.constant 0 : index
    %132 = vector.load %arg9[%c680, %c0_68] : memref<768x25xf32, #tpu.memory_space<vmem>>, vector<8x25xf32>
    tpu.vector_store %arg9[%c680, %c0_68], %131 {strides = array<i32>} : memref<768x25xf32, #tpu.memory_space<vmem>>, vector<8x25xf32>,
    %133 = vector.extract_strided_slice %116 {offsets = [32, 0], sizes = [16, 25], strides = [1, 1]} : vector<48x25xf32> to vector<16x25xf32>
    %c592 = arith.constant 592 : index
    %c0_69 = arith.constant 0 : index
    %134 = vector.load %arg10[%c592, %c0_69] : memref<768x25xf32, #tpu.memory_space<vmem>>, vector<16x25xf32>
    tpu.vector_store %arg10[%c592, %c0_69], %133 {strides = array<i32>} : memref<768x25xf32, #tpu.memory_space<vmem>>, vector<16x25xf32>,
    %135 = vector.extract_strided_slice %4 {offsets = [0, 150], sizes = [48, 25], strides = [1, 1]} : vector<48x400xf32> to vector<48x25xf32>
    %136 = arith.addf %135, %8 : vector<48x25xf32>
    %137 = vector.extract_strided_slice %5 {offsets = [0, 150], sizes = [48, 25], strides = [1, 1]} : vector<48x400xf32> to vector<48x25xf32>
    %138 = vector.extract_strided_slice %136 {offsets = [0, 0], sizes = [8, 25], strides = [1, 1]} : vector<48x25xf32> to vector<8x25xf32>
    %c48_70 = arith.constant 48 : index
    %c0_71 = arith.constant 0 : index
    %139 = vector.load %arg9[%c48_70, %c0_71] : memref<768x25xf32, #tpu.memory_space<vmem>>, vector<8x25xf32>
    tpu.vector_store %arg9[%c48_70, %c0_71], %138 {strides = array<i32>} : memref<768x25xf32, #tpu.memory_space<vmem>>, vector<8x25xf32>,
    %140 = vector.extract_strided_slice %136 {offsets = [24, 0], sizes = [8, 25], strides = [1, 1]} : vector<48x25xf32> to vector<8x25xf32>
    %c432 = arith.constant 432 : index
    %c0_72 = arith.constant 0 : index
    %141 = vector.load %arg9[%c432, %c0_72] : memref<768x25xf32, #tpu.memory_space<vmem>>, vector<8x25xf32>
    tpu.vector_store %arg9[%c432, %c0_72], %140 {strides = array<i32>} : memref<768x25xf32, #tpu.memory_space<vmem>>, vector<8x25xf32>,
    %142 = vector.extract_strided_slice %137 {offsets = [0, 0], sizes = [16, 25], strides = [1, 1]} : vector<48x25xf32> to vector<16x25xf32>
    %c96 = arith.constant 96 : index
    %c0_73 = arith.constant 0 : index
    %143 = vector.load %arg10[%c96, %c0_73] : memref<768x25xf32, #tpu.memory_space<vmem>>, vector<16x25xf32>
    tpu.vector_store %arg10[%c96, %c0_73], %142 {strides = array<i32>} : memref<768x25xf32, #tpu.memory_space<vmem>>, vector<16x25xf32>,
    %144 = vector.extract_strided_slice %136 {offsets = [8, 0], sizes = [8, 25], strides = [1, 1]} : vector<48x25xf32> to vector<8x25xf32>
    %c176 = arith.constant 176 : index
    %c0_74 = arith.constant 0 : index
    %145 = vector.load %arg9[%c176, %c0_74] : memref<768x25xf32, #tpu.memory_space<vmem>>, vector<8x25xf32>
    tpu.vector_store %arg9[%c176, %c0_74], %144 {strides = array<i32>} : memref<768x25xf32, #tpu.memory_space<vmem>>, vector<8x25xf32>,
    %146 = vector.extract_strided_slice %136 {offsets = [32, 0], sizes = [8, 25], strides = [1, 1]} : vector<48x25xf32> to vector<8x25xf32>
    %c560_75 = arith.constant 560 : index
    %c0_76 = arith.constant 0 : index
    %147 = vector.load %arg9[%c560_75, %c0_76] : memref<768x25xf32, #tpu.memory_space<vmem>>, vector<8x25xf32>
    tpu.vector_store %arg9[%c560_75, %c0_76], %146 {strides = array<i32>} : memref<768x25xf32, #tpu.memory_space<vmem>>, vector<8x25xf32>,
    %148 = vector.extract_strided_slice %137 {offsets = [16, 0], sizes = [16, 25], strides = [1, 1]} : vector<48x25xf32> to vector<16x25xf32>
    %c352 = arith.constant 352 : index
    %c0_77 = arith.constant 0 : index
    %149 = vector.load %arg10[%c352, %c0_77] : memref<768x25xf32, #tpu.memory_space<vmem>>, vector<16x25xf32>
    tpu.vector_store %arg10[%c352, %c0_77], %148 {strides = array<i32>} : memref<768x25xf32, #tpu.memory_space<vmem>>, vector<16x25xf32>,
    %150 = vector.extract_strided_slice %136 {offsets = [16, 0], sizes = [8, 25], strides = [1, 1]} : vector<48x25xf32> to vector<8x25xf32>
    %c304_78 = arith.constant 304 : index
    %c0_79 = arith.constant 0 : index
    %151 = vector.load %arg9[%c304_78, %c0_79] : memref<768x25xf32, #tpu.memory_space<vmem>>, vector<8x25xf32>
    tpu.vector_store %arg9[%c304_78, %c0_79], %150 {strides = array<i32>} : memref<768x25xf32, #tpu.memory_space<vmem>>, vector<8x25xf32>,
    %152 = vector.extract_strided_slice %136 {offsets = [40, 0], sizes = [8, 25], strides = [1, 1]} : vector<48x25xf32> to vector<8x25xf32>
    %c688 = arith.constant 688 : index
    %c0_80 = arith.constant 0 : index
    %153 = vector.load %arg9[%c688, %c0_80] : memref<768x25xf32, #tpu.memory_space<vmem>>, vector<8x25xf32>
    tpu.vector_store %arg9[%c688, %c0_80], %152 {strides = array<i32>} : memref<768x25xf32, #tpu.memory_space<vmem>>, vector<8x25xf32>,
    %154 = vector.extract_strided_slice %137 {offsets = [32, 0], sizes = [16, 25], strides = [1, 1]} : vector<48x25xf32> to vector<16x25xf32>
    %c608 = arith.constant 608 : index
    %c0_81 = arith.constant 0 : index
    %155 = vector.load %arg10[%c608, %c0_81] : memref<768x25xf32, #tpu.memory_space<vmem>>, vector<16x25xf32>
    tpu.vector_store %arg10[%c608, %c0_81], %154 {strides = array<i32>} : memref<768x25xf32, #tpu.memory_space<vmem>>, vector<16x25xf32>,
    %156 = vector.extract_strided_slice %4 {offsets = [0, 175], sizes = [48, 25], strides = [1, 1]} : vector<48x400xf32> to vector<48x25xf32>
    %157 = arith.addf %156, %8 : vector<48x25xf32>
    %158 = vector.extract_strided_slice %5 {offsets = [0, 175], sizes = [48, 25], strides = [1, 1]} : vector<48x400xf32> to vector<48x25xf32>
    %159 = vector.extract_strided_slice %157 {offsets = [0, 0], sizes = [8, 25], strides = [1, 1]} : vector<48x25xf32> to vector<8x25xf32>
    %c56 = arith.constant 56 : index
    %c0_82 = arith.constant 0 : index
    %160 = vector.load %arg9[%c56, %c0_82] : memref<768x25xf32, #tpu.memory_space<vmem>>, vector<8x25xf32>
    tpu.vector_store %arg9[%c56, %c0_82], %159 {strides = array<i32>} : memref<768x25xf32, #tpu.memory_space<vmem>>, vector<8x25xf32>,
    %161 = vector.extract_strided_slice %157 {offsets = [24, 0], sizes = [8, 25], strides = [1, 1]} : vector<48x25xf32> to vector<8x25xf32>
    %c440 = arith.constant 440 : index
    %c0_83 = arith.constant 0 : index
    %162 = vector.load %arg9[%c440, %c0_83] : memref<768x25xf32, #tpu.memory_space<vmem>>, vector<8x25xf32>
    tpu.vector_store %arg9[%c440, %c0_83], %161 {strides = array<i32>} : memref<768x25xf32, #tpu.memory_space<vmem>>, vector<8x25xf32>,
    %163 = vector.extract_strided_slice %158 {offsets = [0, 0], sizes = [16, 25], strides = [1, 1]} : vector<48x25xf32> to vector<16x25xf32>
    %c112 = arith.constant 112 : index
    %c0_84 = arith.constant 0 : index
    %164 = vector.load %arg10[%c112, %c0_84] : memref<768x25xf32, #tpu.memory_space<vmem>>, vector<16x25xf32>
    tpu.vector_store %arg10[%c112, %c0_84], %163 {strides = array<i32>} : memref<768x25xf32, #tpu.memory_space<vmem>>, vector<16x25xf32>,
    %165 = vector.extract_strided_slice %157 {offsets = [8, 0], sizes = [8, 25], strides = [1, 1]} : vector<48x25xf32> to vector<8x25xf32>
    %c184 = arith.constant 184 : index
    %c0_85 = arith.constant 0 : index
    %166 = vector.load %arg9[%c184, %c0_85] : memref<768x25xf32, #tpu.memory_space<vmem>>, vector<8x25xf32>
    tpu.vector_store %arg9[%c184, %c0_85], %165 {strides = array<i32>} : memref<768x25xf32, #tpu.memory_space<vmem>>, vector<8x25xf32>,
    %167 = vector.extract_strided_slice %157 {offsets = [32, 0], sizes = [8, 25], strides = [1, 1]} : vector<48x25xf32> to vector<8x25xf32>
    %c568 = arith.constant 568 : index
    %c0_86 = arith.constant 0 : index
    %168 = vector.load %arg9[%c568, %c0_86] : memref<768x25xf32, #tpu.memory_space<vmem>>, vector<8x25xf32>
    tpu.vector_store %arg9[%c568, %c0_86], %167 {strides = array<i32>} : memref<768x25xf32, #tpu.memory_space<vmem>>, vector<8x25xf32>,
    %169 = vector.extract_strided_slice %158 {offsets = [16, 0], sizes = [16, 25], strides = [1, 1]} : vector<48x25xf32> to vector<16x25xf32>
    %c368 = arith.constant 368 : index
    %c0_87 = arith.constant 0 : index
    %170 = vector.load %arg10[%c368, %c0_87] : memref<768x25xf32, #tpu.memory_space<vmem>>, vector<16x25xf32>
    tpu.vector_store %arg10[%c368, %c0_87], %169 {strides = array<i32>} : memref<768x25xf32, #tpu.memory_space<vmem>>, vector<16x25xf32>,
    %171 = vector.extract_strided_slice %157 {offsets = [16, 0], sizes = [8, 25], strides = [1, 1]} : vector<48x25xf32> to vector<8x25xf32>
    %c312 = arith.constant 312 : index
    %c0_88 = arith.constant 0 : index
    %172 = vector.load %arg9[%c312, %c0_88] : memref<768x25xf32, #tpu.memory_space<vmem>>, vector<8x25xf32>
    tpu.vector_store %arg9[%c312, %c0_88], %171 {strides = array<i32>} : memref<768x25xf32, #tpu.memory_space<vmem>>, vector<8x25xf32>,
    %173 = vector.extract_strided_slice %157 {offsets = [40, 0], sizes = [8, 25], strides = [1, 1]} : vector<48x25xf32> to vector<8x25xf32>
    %c696 = arith.constant 696 : index
    %c0_89 = arith.constant 0 : index
    %174 = vector.load %arg9[%c696, %c0_89] : memref<768x25xf32, #tpu.memory_space<vmem>>, vector<8x25xf32>
    tpu.vector_store %arg9[%c696, %c0_89], %173 {strides = array<i32>} : memref<768x25xf32, #tpu.memory_space<vmem>>, vector<8x25xf32>,
    %175 = vector.extract_strided_slice %158 {offsets = [32, 0], sizes = [16, 25], strides = [1, 1]} : vector<48x25xf32> to vector<16x25xf32>
    %c624 = arith.constant 624 : index
    %c0_90 = arith.constant 0 : index
    %176 = vector.load %arg10[%c624, %c0_90] : memref<768x25xf32, #tpu.memory_space<vmem>>, vector<16x25xf32>
    tpu.vector_store %arg10[%c624, %c0_90], %175 {strides = array<i32>} : memref<768x25xf32, #tpu.memory_space<vmem>>, vector<16x25xf32>,
    %177 = vector.extract_strided_slice %4 {offsets = [0, 200], sizes = [48, 25], strides = [1, 1]} : vector<48x400xf32> to vector<48x25xf32>
    %178 = arith.addf %177, %8 : vector<48x25xf32>
    %179 = vector.extract_strided_slice %5 {offsets = [0, 200], sizes = [48, 25], strides = [1, 1]} : vector<48x400xf32> to vector<48x25xf32>
    %180 = vector.extract_strided_slice %178 {offsets = [0, 0], sizes = [8, 25], strides = [1, 1]} : vector<48x25xf32> to vector<8x25xf32>
    %c64_91 = arith.constant 64 : index
    %c0_92 = arith.constant 0 : index
    %181 = vector.load %arg9[%c64_91, %c0_92] : memref<768x25xf32, #tpu.memory_space<vmem>>, vector<8x25xf32>
    tpu.vector_store %arg9[%c64_91, %c0_92], %180 {strides = array<i32>} : memref<768x25xf32, #tpu.memory_space<vmem>>, vector<8x25xf32>,
    %182 = vector.extract_strided_slice %178 {offsets = [24, 0], sizes = [8, 25], strides = [1, 1]} : vector<48x25xf32> to vector<8x25xf32>
    %c448 = arith.constant 448 : index
    %c0_93 = arith.constant 0 : index
    %183 = vector.load %arg9[%c448, %c0_93] : memref<768x25xf32, #tpu.memory_space<vmem>>, vector<8x25xf32>
    tpu.vector_store %arg9[%c448, %c0_93], %182 {strides = array<i32>} : memref<768x25xf32, #tpu.memory_space<vmem>>, vector<8x25xf32>,
    %184 = vector.extract_strided_slice %179 {offsets = [0, 0], sizes = [16, 25], strides = [1, 1]} : vector<48x25xf32> to vector<16x25xf32>
    %c128_94 = arith.constant 128 : index
    %c0_95 = arith.constant 0 : index
    %185 = vector.load %arg10[%c128_94, %c0_95] : memref<768x25xf32, #tpu.memory_space<vmem>>, vector<16x25xf32>
    tpu.vector_store %arg10[%c128_94, %c0_95], %184 {strides = array<i32>} : memref<768x25xf32, #tpu.memory_space<vmem>>, vector<16x25xf32>,
    %186 = vector.extract_strided_slice %178 {offsets = [8, 0], sizes = [8, 25], strides = [1, 1]} : vector<48x25xf32> to vector<8x25xf32>
    %c192 = arith.constant 192 : index
    %c0_96 = arith.constant 0 : index
    %187 = vector.load %arg9[%c192, %c0_96] : memref<768x25xf32, #tpu.memory_space<vmem>>, vector<8x25xf32>
    tpu.vector_store %arg9[%c192, %c0_96], %186 {strides = array<i32>} : memref<768x25xf32, #tpu.memory_space<vmem>>, vector<8x25xf32>,
    %188 = vector.extract_strided_slice %178 {offsets = [32, 0], sizes = [8, 25], strides = [1, 1]} : vector<48x25xf32> to vector<8x25xf32>
    %c576_97 = arith.constant 576 : index
    %c0_98 = arith.constant 0 : index
    %189 = vector.load %arg9[%c576_97, %c0_98] : memref<768x25xf32, #tpu.memory_space<vmem>>, vector<8x25xf32>
    tpu.vector_store %arg9[%c576_97, %c0_98], %188 {strides = array<i32>} : memref<768x25xf32, #tpu.memory_space<vmem>>, vector<8x25xf32>,
    %190 = vector.extract_strided_slice %179 {offsets = [16, 0], sizes = [16, 25], strides = [1, 1]} : vector<48x25xf32> to vector<16x25xf32>
    %c384_99 = arith.constant 384 : index
    %c0_100 = arith.constant 0 : index
    %191 = vector.load %arg10[%c384_99, %c0_100] : memref<768x25xf32, #tpu.memory_space<vmem>>, vector<16x25xf32>
    tpu.vector_store %arg10[%c384_99, %c0_100], %190 {strides = array<i32>} : memref<768x25xf32, #tpu.memory_space<vmem>>, vector<16x25xf32>,
    %192 = vector.extract_strided_slice %178 {offsets = [16, 0], sizes = [8, 25], strides = [1, 1]} : vector<48x25xf32> to vector<8x25xf32>
    %c320_101 = arith.constant 320 : index
    %c0_102 = arith.constant 0 : index
    %193 = vector.load %arg9[%c320_101, %c0_102] : memref<768x25xf32, #tpu.memory_space<vmem>>, vector<8x25xf32>
    tpu.vector_store %arg9[%c320_101, %c0_102], %192 {strides = array<i32>} : memref<768x25xf32, #tpu.memory_space<vmem>>, vector<8x25xf32>,
    %194 = vector.extract_strided_slice %178 {offsets = [40, 0], sizes = [8, 25], strides = [1, 1]} : vector<48x25xf32> to vector<8x25xf32>
    %c704 = arith.constant 704 : index
    %c0_103 = arith.constant 0 : index
    %195 = vector.load %arg9[%c704, %c0_103] : memref<768x25xf32, #tpu.memory_space<vmem>>, vector<8x25xf32>
    tpu.vector_store %arg9[%c704, %c0_103], %194 {strides = array<i32>} : memref<768x25xf32, #tpu.memory_space<vmem>>, vector<8x25xf32>,
    %196 = vector.extract_strided_slice %179 {offsets = [32, 0], sizes = [16, 25], strides = [1, 1]} : vector<48x25xf32> to vector<16x25xf32>
    %c640_104 = arith.constant 640 : index
    %c0_105 = arith.constant 0 : index
    %197 = vector.load %arg10[%c640_104, %c0_105] : memref<768x25xf32, #tpu.memory_space<vmem>>, vector<16x25xf32>
    tpu.vector_store %arg10[%c640_104, %c0_105], %196 {strides = array<i32>} : memref<768x25xf32, #tpu.memory_space<vmem>>, vector<16x25xf32>,
    %198 = vector.extract_strided_slice %4 {offsets = [0, 225], sizes = [48, 25], strides = [1, 1]} : vector<48x400xf32> to vector<48x25xf32>
    %199 = arith.addf %198, %8 : vector<48x25xf32>
    %200 = vector.extract_strided_slice %5 {offsets = [0, 225], sizes = [48, 25], strides = [1, 1]} : vector<48x400xf32> to vector<48x25xf32>
    %201 = vector.extract_strided_slice %199 {offsets = [0, 0], sizes = [8, 25], strides = [1, 1]} : vector<48x25xf32> to vector<8x25xf32>
    %c72 = arith.constant 72 : index
    %c0_106 = arith.constant 0 : index
    %202 = vector.load %arg9[%c72, %c0_106] : memref<768x25xf32, #tpu.memory_space<vmem>>, vector<8x25xf32>
    tpu.vector_store %arg9[%c72, %c0_106], %201 {strides = array<i32>} : memref<768x25xf32, #tpu.memory_space<vmem>>, vector<8x25xf32>,
    %203 = vector.extract_strided_slice %199 {offsets = [24, 0], sizes = [8, 25], strides = [1, 1]} : vector<48x25xf32> to vector<8x25xf32>
    %c456 = arith.constant 456 : index
    %c0_107 = arith.constant 0 : index
    %204 = vector.load %arg9[%c456, %c0_107] : memref<768x25xf32, #tpu.memory_space<vmem>>, vector<8x25xf32>
    tpu.vector_store %arg9[%c456, %c0_107], %203 {strides = array<i32>} : memref<768x25xf32, #tpu.memory_space<vmem>>, vector<8x25xf32>,
    %205 = vector.extract_strided_slice %200 {offsets = [0, 0], sizes = [16, 25], strides = [1, 1]} : vector<48x25xf32> to vector<16x25xf32>
    %c144_108 = arith.constant 144 : index
    %c0_109 = arith.constant 0 : index
    %206 = vector.load %arg10[%c144_108, %c0_109] : memref<768x25xf32, #tpu.memory_space<vmem>>, vector<16x25xf32>
    tpu.vector_store %arg10[%c144_108, %c0_109], %205 {strides = array<i32>} : memref<768x25xf32, #tpu.memory_space<vmem>>, vector<16x25xf32>,
    %207 = vector.extract_strided_slice %199 {offsets = [8, 0], sizes = [8, 25], strides = [1, 1]} : vector<48x25xf32> to vector<8x25xf32>
    %c200 = arith.constant 200 : index
    %c0_110 = arith.constant 0 : index
    %208 = vector.load %arg9[%c200, %c0_110] : memref<768x25xf32, #tpu.memory_space<vmem>>, vector<8x25xf32>
    tpu.vector_store %arg9[%c200, %c0_110], %207 {strides = array<i32>} : memref<768x25xf32, #tpu.memory_space<vmem>>, vector<8x25xf32>,
    %209 = vector.extract_strided_slice %199 {offsets = [32, 0], sizes = [8, 25], strides = [1, 1]} : vector<48x25xf32> to vector<8x25xf32>
    %c584 = arith.constant 584 : index
    %c0_111 = arith.constant 0 : index
    %210 = vector.load %arg9[%c584, %c0_111] : memref<768x25xf32, #tpu.memory_space<vmem>>, vector<8x25xf32>
    tpu.vector_store %arg9[%c584, %c0_111], %209 {strides = array<i32>} : memref<768x25xf32, #tpu.memory_space<vmem>>, vector<8x25xf32>,
    %211 = vector.extract_strided_slice %200 {offsets = [16, 0], sizes = [16, 25], strides = [1, 1]} : vector<48x25xf32> to vector<16x25xf32>
    %c400_112 = arith.constant 400 : index
    %c0_113 = arith.constant 0 : index
    %212 = vector.load %arg10[%c400_112, %c0_113] : memref<768x25xf32, #tpu.memory_space<vmem>>, vector<16x25xf32>
    tpu.vector_store %arg10[%c400_112, %c0_113], %211 {strides = array<i32>} : memref<768x25xf32, #tpu.memory_space<vmem>>, vector<16x25xf32>,
    %213 = vector.extract_strided_slice %199 {offsets = [16, 0], sizes = [8, 25], strides = [1, 1]} : vector<48x25xf32> to vector<8x25xf32>
    %c328 = arith.constant 328 : index
    %c0_114 = arith.constant 0 : index
    %214 = vector.load %arg9[%c328, %c0_114] : memref<768x25xf32, #tpu.memory_space<vmem>>, vector<8x25xf32>
    tpu.vector_store %arg9[%c328, %c0_114], %213 {strides = array<i32>} : memref<768x25xf32, #tpu.memory_space<vmem>>, vector<8x25xf32>,
    %215 = vector.extract_strided_slice %199 {offsets = [40, 0], sizes = [8, 25], strides = [1, 1]} : vector<48x25xf32> to vector<8x25xf32>
    %c712 = arith.constant 712 : index
    %c0_115 = arith.constant 0 : index
    %216 = vector.load %arg9[%c712, %c0_115] : memref<768x25xf32, #tpu.memory_space<vmem>>, vector<8x25xf32>
    tpu.vector_store %arg9[%c712, %c0_115], %215 {strides = array<i32>} : memref<768x25xf32, #tpu.memory_space<vmem>>, vector<8x25xf32>,
    %217 = vector.extract_strided_slice %200 {offsets = [32, 0], sizes = [16, 25], strides = [1, 1]} : vector<48x25xf32> to vector<16x25xf32>
    %c656_116 = arith.constant 656 : index
    %c0_117 = arith.constant 0 : index
    %218 = vector.load %arg10[%c656_116, %c0_117] : memref<768x25xf32, #tpu.memory_space<vmem>>, vector<16x25xf32>
    tpu.vector_store %arg10[%c656_116, %c0_117], %217 {strides = array<i32>} : memref<768x25xf32, #tpu.memory_space<vmem>>, vector<16x25xf32>,
    %219 = vector.extract_strided_slice %4 {offsets = [0, 250], sizes = [48, 25], strides = [1, 1]} : vector<48x400xf32> to vector<48x25xf32>
    %220 = arith.addf %219, %8 : vector<48x25xf32>
    %221 = vector.extract_strided_slice %5 {offsets = [0, 250], sizes = [48, 25], strides = [1, 1]} : vector<48x400xf32> to vector<48x25xf32>
    %222 = vector.extract_strided_slice %220 {offsets = [0, 0], sizes = [8, 25], strides = [1, 1]} : vector<48x25xf32> to vector<8x25xf32>
    %c80_118 = arith.constant 80 : index
    %c0_119 = arith.constant 0 : index
    %223 = vector.load %arg9[%c80_118, %c0_119] : memref<768x25xf32, #tpu.memory_space<vmem>>, vector<8x25xf32>
    tpu.vector_store %arg9[%c80_118, %c0_119], %222 {strides = array<i32>} : memref<768x25xf32, #tpu.memory_space<vmem>>, vector<8x25xf32>,
    %224 = vector.extract_strided_slice %220 {offsets = [24, 0], sizes = [8, 25], strides = [1, 1]} : vector<48x25xf32> to vector<8x25xf32>
    %c464 = arith.constant 464 : index
    %c0_120 = arith.constant 0 : index
    %225 = vector.load %arg9[%c464, %c0_120] : memref<768x25xf32, #tpu.memory_space<vmem>>, vector<8x25xf32>
    tpu.vector_store %arg9[%c464, %c0_120], %224 {strides = array<i32>} : memref<768x25xf32, #tpu.memory_space<vmem>>, vector<8x25xf32>,
    %226 = vector.extract_strided_slice %221 {offsets = [0, 0], sizes = [16, 25], strides = [1, 1]} : vector<48x25xf32> to vector<16x25xf32>
    %c160_121 = arith.constant 160 : index
    %c0_122 = arith.constant 0 : index
    %227 = vector.load %arg10[%c160_121, %c0_122] : memref<768x25xf32, #tpu.memory_space<vmem>>, vector<16x25xf32>
    tpu.vector_store %arg10[%c160_121, %c0_122], %226 {strides = array<i32>} : memref<768x25xf32, #tpu.memory_space<vmem>>, vector<16x25xf32>,
    %228 = vector.extract_strided_slice %220 {offsets = [8, 0], sizes = [8, 25], strides = [1, 1]} : vector<48x25xf32> to vector<8x25xf32>
    %c208 = arith.constant 208 : index
    %c0_123 = arith.constant 0 : index
    %229 = vector.load %arg9[%c208, %c0_123] : memref<768x25xf32, #tpu.memory_space<vmem>>, vector<8x25xf32>
    tpu.vector_store %arg9[%c208, %c0_123], %228 {strides = array<i32>} : memref<768x25xf32, #tpu.memory_space<vmem>>, vector<8x25xf32>,
    %230 = vector.extract_strided_slice %220 {offsets = [32, 0], sizes = [8, 25], strides = [1, 1]} : vector<48x25xf32> to vector<8x25xf32>
    %c592_124 = arith.constant 592 : index
    %c0_125 = arith.constant 0 : index
    %231 = vector.load %arg9[%c592_124, %c0_125] : memref<768x25xf32, #tpu.memory_space<vmem>>, vector<8x25xf32>
    tpu.vector_store %arg9[%c592_124, %c0_125], %230 {strides = array<i32>} : memref<768x25xf32, #tpu.memory_space<vmem>>, vector<8x25xf32>,
    %232 = vector.extract_strided_slice %221 {offsets = [16, 0], sizes = [16, 25], strides = [1, 1]} : vector<48x25xf32> to vector<16x25xf32>
    %c416_126 = arith.constant 416 : index
    %c0_127 = arith.constant 0 : index
    %233 = vector.load %arg10[%c416_126, %c0_127] : memref<768x25xf32, #tpu.memory_space<vmem>>, vector<16x25xf32>
    tpu.vector_store %arg10[%c416_126, %c0_127], %232 {strides = array<i32>} : memref<768x25xf32, #tpu.memory_space<vmem>>, vector<16x25xf32>,
    %234 = vector.extract_strided_slice %220 {offsets = [16, 0], sizes = [8, 25], strides = [1, 1]} : vector<48x25xf32> to vector<8x25xf32>
    %c336_128 = arith.constant 336 : index
    %c0_129 = arith.constant 0 : index
    %235 = vector.load %arg9[%c336_128, %c0_129] : memref<768x25xf32, #tpu.memory_space<vmem>>, vector<8x25xf32>
    tpu.vector_store %arg9[%c336_128, %c0_129], %234 {strides = array<i32>} : memref<768x25xf32, #tpu.memory_space<vmem>>, vector<8x25xf32>,
    %236 = vector.extract_strided_slice %220 {offsets = [40, 0], sizes = [8, 25], strides = [1, 1]} : vector<48x25xf32> to vector<8x25xf32>
    %c720 = arith.constant 720 : index
    %c0_130 = arith.constant 0 : index
    %237 = vector.load %arg9[%c720, %c0_130] : memref<768x25xf32, #tpu.memory_space<vmem>>, vector<8x25xf32>
    tpu.vector_store %arg9[%c720, %c0_130], %236 {strides = array<i32>} : memref<768x25xf32, #tpu.memory_space<vmem>>, vector<8x25xf32>,
    %238 = vector.extract_strided_slice %221 {offsets = [32, 0], sizes = [16, 25], strides = [1, 1]} : vector<48x25xf32> to vector<16x25xf32>
    %c672_131 = arith.constant 672 : index
    %c0_132 = arith.constant 0 : index
    %239 = vector.load %arg10[%c672_131, %c0_132] : memref<768x25xf32, #tpu.memory_space<vmem>>, vector<16x25xf32>
    tpu.vector_store %arg10[%c672_131, %c0_132], %238 {strides = array<i32>} : memref<768x25xf32, #tpu.memory_space<vmem>>, vector<16x25xf32>,
    %240 = vector.extract_strided_slice %4 {offsets = [0, 275], sizes = [48, 25], strides = [1, 1]} : vector<48x400xf32> to vector<48x25xf32>
    %241 = arith.addf %240, %8 : vector<48x25xf32>
    %242 = vector.extract_strided_slice %5 {offsets = [0, 275], sizes = [48, 25], strides = [1, 1]} : vector<48x400xf32> to vector<48x25xf32>
    %243 = vector.extract_strided_slice %241 {offsets = [0, 0], sizes = [8, 25], strides = [1, 1]} : vector<48x25xf32> to vector<8x25xf32>
    %c88 = arith.constant 88 : index
    %c0_133 = arith.constant 0 : index
    %244 = vector.load %arg9[%c88, %c0_133] : memref<768x25xf32, #tpu.memory_space<vmem>>, vector<8x25xf32>
    tpu.vector_store %arg9[%c88, %c0_133], %243 {strides = array<i32>} : memref<768x25xf32, #tpu.memory_space<vmem>>, vector<8x25xf32>,
    %245 = vector.extract_strided_slice %241 {offsets = [24, 0], sizes = [8, 25], strides = [1, 1]} : vector<48x25xf32> to vector<8x25xf32>
    %c472 = arith.constant 472 : index
    %c0_134 = arith.constant 0 : index
    %246 = vector.load %arg9[%c472, %c0_134] : memref<768x25xf32, #tpu.memory_space<vmem>>, vector<8x25xf32>
    tpu.vector_store %arg9[%c472, %c0_134], %245 {strides = array<i32>} : memref<768x25xf32, #tpu.memory_space<vmem>>, vector<8x25xf32>,
    %247 = vector.extract_strided_slice %242 {offsets = [0, 0], sizes = [16, 25], strides = [1, 1]} : vector<48x25xf32> to vector<16x25xf32>
    %c176_135 = arith.constant 176 : index
    %c0_136 = arith.constant 0 : index
    %248 = vector.load %arg10[%c176_135, %c0_136] : memref<768x25xf32, #tpu.memory_space<vmem>>, vector<16x25xf32>
    tpu.vector_store %arg10[%c176_135, %c0_136], %247 {strides = array<i32>} : memref<768x25xf32, #tpu.memory_space<vmem>>, vector<16x25xf32>,
    %249 = vector.extract_strided_slice %241 {offsets = [8, 0], sizes = [8, 25], strides = [1, 1]} : vector<48x25xf32> to vector<8x25xf32>
    %c216 = arith.constant 216 : index
    %c0_137 = arith.constant 0 : index
    %250 = vector.load %arg9[%c216, %c0_137] : memref<768x25xf32, #tpu.memory_space<vmem>>, vector<8x25xf32>
    tpu.vector_store %arg9[%c216, %c0_137], %249 {strides = array<i32>} : memref<768x25xf32, #tpu.memory_space<vmem>>, vector<8x25xf32>,
    %251 = vector.extract_strided_slice %241 {offsets = [32, 0], sizes = [8, 25], strides = [1, 1]} : vector<48x25xf32> to vector<8x25xf32>
    %c600 = arith.constant 600 : index
    %c0_138 = arith.constant 0 : index
    %252 = vector.load %arg9[%c600, %c0_138] : memref<768x25xf32, #tpu.memory_space<vmem>>, vector<8x25xf32>
    tpu.vector_store %arg9[%c600, %c0_138], %251 {strides = array<i32>} : memref<768x25xf32, #tpu.memory_space<vmem>>, vector<8x25xf32>,
    %253 = vector.extract_strided_slice %242 {offsets = [16, 0], sizes = [16, 25], strides = [1, 1]} : vector<48x25xf32> to vector<16x25xf32>
    %c432_139 = arith.constant 432 : index
    %c0_140 = arith.constant 0 : index
    %254 = vector.load %arg10[%c432_139, %c0_140] : memref<768x25xf32, #tpu.memory_space<vmem>>, vector<16x25xf32>
    tpu.vector_store %arg10[%c432_139, %c0_140], %253 {strides = array<i32>} : memref<768x25xf32, #tpu.memory_space<vmem>>, vector<16x25xf32>,
    %255 = vector.extract_strided_slice %241 {offsets = [16, 0], sizes = [8, 25], strides = [1, 1]} : vector<48x25xf32> to vector<8x25xf32>
    %c344 = arith.constant 344 : index
    %c0_141 = arith.constant 0 : index
    %256 = vector.load %arg9[%c344, %c0_141] : memref<768x25xf32, #tpu.memory_space<vmem>>, vector<8x25xf32>
    tpu.vector_store %arg9[%c344, %c0_141], %255 {strides = array<i32>} : memref<768x25xf32, #tpu.memory_space<vmem>>, vector<8x25xf32>,
    %257 = vector.extract_strided_slice %241 {offsets = [40, 0], sizes = [8, 25], strides = [1, 1]} : vector<48x25xf32> to vector<8x25xf32>
    %c728 = arith.constant 728 : index
    %c0_142 = arith.constant 0 : index
    %258 = vector.load %arg9[%c728, %c0_142] : memref<768x25xf32, #tpu.memory_space<vmem>>, vector<8x25xf32>
    tpu.vector_store %arg9[%c728, %c0_142], %257 {strides = array<i32>} : memref<768x25xf32, #tpu.memory_space<vmem>>, vector<8x25xf32>,
    %259 = vector.extract_strided_slice %242 {offsets = [32, 0], sizes = [16, 25], strides = [1, 1]} : vector<48x25xf32> to vector<16x25xf32>
    %c688_143 = arith.constant 688 : index
    %c0_144 = arith.constant 0 : index
    %260 = vector.load %arg10[%c688_143, %c0_144] : memref<768x25xf32, #tpu.memory_space<vmem>>, vector<16x25xf32>
    tpu.vector_store %arg10[%c688_143, %c0_144], %259 {strides = array<i32>} : memref<768x25xf32, #tpu.memory_space<vmem>>, vector<16x25xf32>,
    %261 = vector.extract_strided_slice %4 {offsets = [0, 300], sizes = [48, 25], strides = [1, 1]} : vector<48x400xf32> to vector<48x25xf32>
    %262 = arith.addf %261, %8 : vector<48x25xf32>
    %263 = vector.extract_strided_slice %5 {offsets = [0, 300], sizes = [48, 25], strides = [1, 1]} : vector<48x400xf32> to vector<48x25xf32>
    %264 = vector.extract_strided_slice %262 {offsets = [0, 0], sizes = [8, 25], strides = [1, 1]} : vector<48x25xf32> to vector<8x25xf32>
    %c96_145 = arith.constant 96 : index
    %c0_146 = arith.constant 0 : index
    %265 = vector.load %arg9[%c96_145, %c0_146] : memref<768x25xf32, #tpu.memory_space<vmem>>, vector<8x25xf32>
    tpu.vector_store %arg9[%c96_145, %c0_146], %264 {strides = array<i32>} : memref<768x25xf32, #tpu.memory_space<vmem>>, vector<8x25xf32>,
    %266 = vector.extract_strided_slice %262 {offsets = [24, 0], sizes = [8, 25], strides = [1, 1]} : vector<48x25xf32> to vector<8x25xf32>
    %c480 = arith.constant 480 : index
    %c0_147 = arith.constant 0 : index
    %267 = vector.load %arg9[%c480, %c0_147] : memref<768x25xf32, #tpu.memory_space<vmem>>, vector<8x25xf32>
    tpu.vector_store %arg9[%c480, %c0_147], %266 {strides = array<i32>} : memref<768x25xf32, #tpu.memory_space<vmem>>, vector<8x25xf32>,
    %268 = vector.extract_strided_slice %263 {offsets = [0, 0], sizes = [16, 25], strides = [1, 1]} : vector<48x25xf32> to vector<16x25xf32>
    %c192_148 = arith.constant 192 : index
    %c0_149 = arith.constant 0 : index
    %269 = vector.load %arg10[%c192_148, %c0_149] : memref<768x25xf32, #tpu.memory_space<vmem>>, vector<16x25xf32>
    tpu.vector_store %arg10[%c192_148, %c0_149], %268 {strides = array<i32>} : memref<768x25xf32, #tpu.memory_space<vmem>>, vector<16x25xf32>,
    %270 = vector.extract_strided_slice %262 {offsets = [8, 0], sizes = [8, 25], strides = [1, 1]} : vector<48x25xf32> to vector<8x25xf32>
    %c224 = arith.constant 224 : index
    %c0_150 = arith.constant 0 : index
    %271 = vector.load %arg9[%c224, %c0_150] : memref<768x25xf32, #tpu.memory_space<vmem>>, vector<8x25xf32>
    tpu.vector_store %arg9[%c224, %c0_150], %270 {strides = array<i32>} : memref<768x25xf32, #tpu.memory_space<vmem>>, vector<8x25xf32>,
    %272 = vector.extract_strided_slice %262 {offsets = [32, 0], sizes = [8, 25], strides = [1, 1]} : vector<48x25xf32> to vector<8x25xf32>
    %c608_151 = arith.constant 608 : index
    %c0_152 = arith.constant 0 : index
    %273 = vector.load %arg9[%c608_151, %c0_152] : memref<768x25xf32, #tpu.memory_space<vmem>>, vector<8x25xf32>
    tpu.vector_store %arg9[%c608_151, %c0_152], %272 {strides = array<i32>} : memref<768x25xf32, #tpu.memory_space<vmem>>, vector<8x25xf32>,
    %274 = vector.extract_strided_slice %263 {offsets = [16, 0], sizes = [16, 25], strides = [1, 1]} : vector<48x25xf32> to vector<16x25xf32>
    %c448_153 = arith.constant 448 : index
    %c0_154 = arith.constant 0 : index
    %275 = vector.load %arg10[%c448_153, %c0_154] : memref<768x25xf32, #tpu.memory_space<vmem>>, vector<16x25xf32>
    tpu.vector_store %arg10[%c448_153, %c0_154], %274 {strides = array<i32>} : memref<768x25xf32, #tpu.memory_space<vmem>>, vector<16x25xf32>,
    %276 = vector.extract_strided_slice %262 {offsets = [16, 0], sizes = [8, 25], strides = [1, 1]} : vector<48x25xf32> to vector<8x25xf32>
    %c352_155 = arith.constant 352 : index
    %c0_156 = arith.constant 0 : index
    %277 = vector.load %arg9[%c352_155, %c0_156] : memref<768x25xf32, #tpu.memory_space<vmem>>, vector<8x25xf32>
    tpu.vector_store %arg9[%c352_155, %c0_156], %276 {strides = array<i32>} : memref<768x25xf32, #tpu.memory_space<vmem>>, vector<8x25xf32>,
    %278 = vector.extract_strided_slice %262 {offsets = [40, 0], sizes = [8, 25], strides = [1, 1]} : vector<48x25xf32> to vector<8x25xf32>
    %c736 = arith.constant 736 : index
    %c0_157 = arith.constant 0 : index
    %279 = vector.load %arg9[%c736, %c0_157] : memref<768x25xf32, #tpu.memory_space<vmem>>, vector<8x25xf32>
    tpu.vector_store %arg9[%c736, %c0_157], %278 {strides = array<i32>} : memref<768x25xf32, #tpu.memory_space<vmem>>, vector<8x25xf32>,
    %280 = vector.extract_strided_slice %263 {offsets = [32, 0], sizes = [16, 25], strides = [1, 1]} : vector<48x25xf32> to vector<16x25xf32>
    %c704_158 = arith.constant 704 : index
    %c0_159 = arith.constant 0 : index
    %281 = vector.load %arg10[%c704_158, %c0_159] : memref<768x25xf32, #tpu.memory_space<vmem>>, vector<16x25xf32>
    tpu.vector_store %arg10[%c704_158, %c0_159], %280 {strides = array<i32>} : memref<768x25xf32, #tpu.memory_space<vmem>>, vector<16x25xf32>,
    %282 = vector.extract_strided_slice %4 {offsets = [0, 325], sizes = [48, 25], strides = [1, 1]} : vector<48x400xf32> to vector<48x25xf32>
    %283 = arith.addf %282, %8 : vector<48x25xf32>
    %284 = vector.extract_strided_slice %5 {offsets = [0, 325], sizes = [48, 25], strides = [1, 1]} : vector<48x400xf32> to vector<48x25xf32>
    %285 = vector.extract_strided_slice %283 {offsets = [0, 0], sizes = [8, 25], strides = [1, 1]} : vector<48x25xf32> to vector<8x25xf32>
    %c104 = arith.constant 104 : index
    %c0_160 = arith.constant 0 : index
    %286 = vector.load %arg9[%c104, %c0_160] : memref<768x25xf32, #tpu.memory_space<vmem>>, vector<8x25xf32>
    tpu.vector_store %arg9[%c104, %c0_160], %285 {strides = array<i32>} : memref<768x25xf32, #tpu.memory_space<vmem>>, vector<8x25xf32>,
    %287 = vector.extract_strided_slice %283 {offsets = [24, 0], sizes = [8, 25], strides = [1, 1]} : vector<48x25xf32> to vector<8x25xf32>
    %c488 = arith.constant 488 : index
    %c0_161 = arith.constant 0 : index
    %288 = vector.load %arg9[%c488, %c0_161] : memref<768x25xf32, #tpu.memory_space<vmem>>, vector<8x25xf32>
    tpu.vector_store %arg9[%c488, %c0_161], %287 {strides = array<i32>} : memref<768x25xf32, #tpu.memory_space<vmem>>, vector<8x25xf32>,
    %289 = vector.extract_strided_slice %284 {offsets = [0, 0], sizes = [16, 25], strides = [1, 1]} : vector<48x25xf32> to vector<16x25xf32>
    %c208_162 = arith.constant 208 : index
    %c0_163 = arith.constant 0 : index
    %290 = vector.load %arg10[%c208_162, %c0_163] : memref<768x25xf32, #tpu.memory_space<vmem>>, vector<16x25xf32>
    tpu.vector_store %arg10[%c208_162, %c0_163], %289 {strides = array<i32>} : memref<768x25xf32, #tpu.memory_space<vmem>>, vector<16x25xf32>,
    %291 = vector.extract_strided_slice %283 {offsets = [8, 0], sizes = [8, 25], strides = [1, 1]} : vector<48x25xf32> to vector<8x25xf32>
    %c232 = arith.constant 232 : index
    %c0_164 = arith.constant 0 : index
    %292 = vector.load %arg9[%c232, %c0_164] : memref<768x25xf32, #tpu.memory_space<vmem>>, vector<8x25xf32>
    tpu.vector_store %arg9[%c232, %c0_164], %291 {strides = array<i32>} : memref<768x25xf32, #tpu.memory_space<vmem>>, vector<8x25xf32>,
    %293 = vector.extract_strided_slice %283 {offsets = [32, 0], sizes = [8, 25], strides = [1, 1]} : vector<48x25xf32> to vector<8x25xf32>
    %c616 = arith.constant 616 : index
    %c0_165 = arith.constant 0 : index
    %294 = vector.load %arg9[%c616, %c0_165] : memref<768x25xf32, #tpu.memory_space<vmem>>, vector<8x25xf32>
    tpu.vector_store %arg9[%c616, %c0_165], %293 {strides = array<i32>} : memref<768x25xf32, #tpu.memory_space<vmem>>, vector<8x25xf32>,
    %295 = vector.extract_strided_slice %284 {offsets = [16, 0], sizes = [16, 25], strides = [1, 1]} : vector<48x25xf32> to vector<16x25xf32>
    %c464_166 = arith.constant 464 : index
    %c0_167 = arith.constant 0 : index
    %296 = vector.load %arg10[%c464_166, %c0_167] : memref<768x25xf32, #tpu.memory_space<vmem>>, vector<16x25xf32>
    tpu.vector_store %arg10[%c464_166, %c0_167], %295 {strides = array<i32>} : memref<768x25xf32, #tpu.memory_space<vmem>>, vector<16x25xf32>,
    %297 = vector.extract_strided_slice %283 {offsets = [16, 0], sizes = [8, 25], strides = [1, 1]} : vector<48x25xf32> to vector<8x25xf32>
    %c360 = arith.constant 360 : index
    %c0_168 = arith.constant 0 : index
    %298 = vector.load %arg9[%c360, %c0_168] : memref<768x25xf32, #tpu.memory_space<vmem>>, vector<8x25xf32>
    tpu.vector_store %arg9[%c360, %c0_168], %297 {strides = array<i32>} : memref<768x25xf32, #tpu.memory_space<vmem>>, vector<8x25xf32>,
    %299 = vector.extract_strided_slice %283 {offsets = [40, 0], sizes = [8, 25], strides = [1, 1]} : vector<48x25xf32> to vector<8x25xf32>
    %c744 = arith.constant 744 : index
    %c0_169 = arith.constant 0 : index
    %300 = vector.load %arg9[%c744, %c0_169] : memref<768x25xf32, #tpu.memory_space<vmem>>, vector<8x25xf32>
    tpu.vector_store %arg9[%c744, %c0_169], %299 {strides = array<i32>} : memref<768x25xf32, #tpu.memory_space<vmem>>, vector<8x25xf32>,
    %301 = vector.extract_strided_slice %284 {offsets = [32, 0], sizes = [16, 25], strides = [1, 1]} : vector<48x25xf32> to vector<16x25xf32>
    %c720_170 = arith.constant 720 : index
    %c0_171 = arith.constant 0 : index
    %302 = vector.load %arg10[%c720_170, %c0_171] : memref<768x25xf32, #tpu.memory_space<vmem>>, vector<16x25xf32>
    tpu.vector_store %arg10[%c720_170, %c0_171], %301 {strides = array<i32>} : memref<768x25xf32, #tpu.memory_space<vmem>>, vector<16x25xf32>,
    %303 = vector.extract_strided_slice %4 {offsets = [0, 350], sizes = [48, 25], strides = [1, 1]} : vector<48x400xf32> to vector<48x25xf32>
    %304 = arith.addf %303, %8 : vector<48x25xf32>
    %305 = vector.extract_strided_slice %5 {offsets = [0, 350], sizes = [48, 25], strides = [1, 1]} : vector<48x400xf32> to vector<48x25xf32>
    %306 = vector.extract_strided_slice %304 {offsets = [0, 0], sizes = [8, 25], strides = [1, 1]} : vector<48x25xf32> to vector<8x25xf32>
    %c112_172 = arith.constant 112 : index
    %c0_173 = arith.constant 0 : index
    %307 = vector.load %arg9[%c112_172, %c0_173] : memref<768x25xf32, #tpu.memory_space<vmem>>, vector<8x25xf32>
    tpu.vector_store %arg9[%c112_172, %c0_173], %306 {strides = array<i32>} : memref<768x25xf32, #tpu.memory_space<vmem>>, vector<8x25xf32>,
    %308 = vector.extract_strided_slice %304 {offsets = [24, 0], sizes = [8, 25], strides = [1, 1]} : vector<48x25xf32> to vector<8x25xf32>
    %c496 = arith.constant 496 : index
    %c0_174 = arith.constant 0 : index
    %309 = vector.load %arg9[%c496, %c0_174] : memref<768x25xf32, #tpu.memory_space<vmem>>, vector<8x25xf32>
    tpu.vector_store %arg9[%c496, %c0_174], %308 {strides = array<i32>} : memref<768x25xf32, #tpu.memory_space<vmem>>, vector<8x25xf32>,
    %310 = vector.extract_strided_slice %305 {offsets = [0, 0], sizes = [16, 25], strides = [1, 1]} : vector<48x25xf32> to vector<16x25xf32>
    %c224_175 = arith.constant 224 : index
    %c0_176 = arith.constant 0 : index
    %311 = vector.load %arg10[%c224_175, %c0_176] : memref<768x25xf32, #tpu.memory_space<vmem>>, vector<16x25xf32>
    tpu.vector_store %arg10[%c224_175, %c0_176], %310 {strides = array<i32>} : memref<768x25xf32, #tpu.memory_space<vmem>>, vector<16x25xf32>,
    %312 = vector.extract_strided_slice %304 {offsets = [8, 0], sizes = [8, 25], strides = [1, 1]} : vector<48x25xf32> to vector<8x25xf32>
    %c240 = arith.constant 240 : index
    %c0_177 = arith.constant 0 : index
    %313 = vector.load %arg9[%c240, %c0_177] : memref<768x25xf32, #tpu.memory_space<vmem>>, vector<8x25xf32>
    tpu.vector_store %arg9[%c240, %c0_177], %312 {strides = array<i32>} : memref<768x25xf32, #tpu.memory_space<vmem>>, vector<8x25xf32>,
    %314 = vector.extract_strided_slice %304 {offsets = [32, 0], sizes = [8, 25], strides = [1, 1]} : vector<48x25xf32> to vector<8x25xf32>
    %c624_178 = arith.constant 624 : index
    %c0_179 = arith.constant 0 : index
    %315 = vector.load %arg9[%c624_178, %c0_179] : memref<768x25xf32, #tpu.memory_space<vmem>>, vector<8x25xf32>
    tpu.vector_store %arg9[%c624_178, %c0_179], %314 {strides = array<i32>} : memref<768x25xf32, #tpu.memory_space<vmem>>, vector<8x25xf32>,
    %316 = vector.extract_strided_slice %305 {offsets = [16, 0], sizes = [16, 25], strides = [1, 1]} : vector<48x25xf32> to vector<16x25xf32>
    %c480_180 = arith.constant 480 : index
    %c0_181 = arith.constant 0 : index
    %317 = vector.load %arg10[%c480_180, %c0_181] : memref<768x25xf32, #tpu.memory_space<vmem>>, vector<16x25xf32>
    tpu.vector_store %arg10[%c480_180, %c0_181], %316 {strides = array<i32>} : memref<768x25xf32, #tpu.memory_space<vmem>>, vector<16x25xf32>,
    %318 = vector.extract_strided_slice %304 {offsets = [16, 0], sizes = [8, 25], strides = [1, 1]} : vector<48x25xf32> to vector<8x25xf32>
    %c368_182 = arith.constant 368 : index
    %c0_183 = arith.constant 0 : index
    %319 = vector.load %arg9[%c368_182, %c0_183] : memref<768x25xf32, #tpu.memory_space<vmem>>, vector<8x25xf32>
    tpu.vector_store %arg9[%c368_182, %c0_183], %318 {strides = array<i32>} : memref<768x25xf32, #tpu.memory_space<vmem>>, vector<8x25xf32>,
    %320 = vector.extract_strided_slice %304 {offsets = [40, 0], sizes = [8, 25], strides = [1, 1]} : vector<48x25xf32> to vector<8x25xf32>
    %c752 = arith.constant 752 : index
    %c0_184 = arith.constant 0 : index
    %321 = vector.load %arg9[%c752, %c0_184] : memref<768x25xf32, #tpu.memory_space<vmem>>, vector<8x25xf32>
    tpu.vector_store %arg9[%c752, %c0_184], %320 {strides = array<i32>} : memref<768x25xf32, #tpu.memory_space<vmem>>, vector<8x25xf32>,
    %322 = vector.extract_strided_slice %305 {offsets = [32, 0], sizes = [16, 25], strides = [1, 1]} : vector<48x25xf32> to vector<16x25xf32>
    %c736_185 = arith.constant 736 : index
    %c0_186 = arith.constant 0 : index
    %323 = vector.load %arg10[%c736_185, %c0_186] : memref<768x25xf32, #tpu.memory_space<vmem>>, vector<16x25xf32>
    tpu.vector_store %arg10[%c736_185, %c0_186], %322 {strides = array<i32>} : memref<768x25xf32, #tpu.memory_space<vmem>>, vector<16x25xf32>,
    %324 = vector.extract_strided_slice %4 {offsets = [0, 375], sizes = [48, 25], strides = [1, 1]} : vector<48x400xf32> to vector<48x25xf32>
    %325 = arith.addf %324, %8 : vector<48x25xf32>
    %326 = vector.extract_strided_slice %5 {offsets = [0, 375], sizes = [48, 25], strides = [1, 1]} : vector<48x400xf32> to vector<48x25xf32>
    %327 = vector.extract_strided_slice %325 {offsets = [0, 0], sizes = [8, 25], strides = [1, 1]} : vector<48x25xf32> to vector<8x25xf32>
    %c120 = arith.constant 120 : index
    %c0_187 = arith.constant 0 : index
    %328 = vector.load %arg9[%c120, %c0_187] : memref<768x25xf32, #tpu.memory_space<vmem>>, vector<8x25xf32>
    tpu.vector_store %arg9[%c120, %c0_187], %327 {strides = array<i32>} : memref<768x25xf32, #tpu.memory_space<vmem>>, vector<8x25xf32>,
    %329 = vector.extract_strided_slice %325 {offsets = [24, 0], sizes = [8, 25], strides = [1, 1]} : vector<48x25xf32> to vector<8x25xf32>
    %c504 = arith.constant 504 : index
    %c0_188 = arith.constant 0 : index
    %330 = vector.load %arg9[%c504, %c0_188] : memref<768x25xf32, #tpu.memory_space<vmem>>, vector<8x25xf32>
    tpu.vector_store %arg9[%c504, %c0_188], %329 {strides = array<i32>} : memref<768x25xf32, #tpu.memory_space<vmem>>, vector<8x25xf32>,
    %331 = vector.extract_strided_slice %326 {offsets = [0, 0], sizes = [16, 25], strides = [1, 1]} : vector<48x25xf32> to vector<16x25xf32>
    %c240_189 = arith.constant 240 : index
    %c0_190 = arith.constant 0 : index
    %332 = vector.load %arg10[%c240_189, %c0_190] : memref<768x25xf32, #tpu.memory_space<vmem>>, vector<16x25xf32>
    tpu.vector_store %arg10[%c240_189, %c0_190], %331 {strides = array<i32>} : memref<768x25xf32, #tpu.memory_space<vmem>>, vector<16x25xf32>,
    %333 = vector.extract_strided_slice %325 {offsets = [8, 0], sizes = [8, 25], strides = [1, 1]} : vector<48x25xf32> to vector<8x25xf32>
    %c248 = arith.constant 248 : index
    %c0_191 = arith.constant 0 : index
    %334 = vector.load %arg9[%c248, %c0_191] : memref<768x25xf32, #tpu.memory_space<vmem>>, vector<8x25xf32>
    tpu.vector_store %arg9[%c248, %c0_191], %333 {strides = array<i32>} : memref<768x25xf32, #tpu.memory_space<vmem>>, vector<8x25xf32>,
    %335 = vector.extract_strided_slice %325 {offsets = [32, 0], sizes = [8, 25], strides = [1, 1]} : vector<48x25xf32> to vector<8x25xf32>
    %c632 = arith.constant 632 : index
    %c0_192 = arith.constant 0 : index
    %336 = vector.load %arg9[%c632, %c0_192] : memref<768x25xf32, #tpu.memory_space<vmem>>, vector<8x25xf32>
    tpu.vector_store %arg9[%c632, %c0_192], %335 {strides = array<i32>} : memref<768x25xf32, #tpu.memory_space<vmem>>, vector<8x25xf32>,
    %337 = vector.extract_strided_slice %326 {offsets = [16, 0], sizes = [16, 25], strides = [1, 1]} : vector<48x25xf32> to vector<16x25xf32>
    %c496_193 = arith.constant 496 : index
    %c0_194 = arith.constant 0 : index
    %338 = vector.load %arg10[%c496_193, %c0_194] : memref<768x25xf32, #tpu.memory_space<vmem>>, vector<16x25xf32>
    tpu.vector_store %arg10[%c496_193, %c0_194], %337 {strides = array<i32>} : memref<768x25xf32, #tpu.memory_space<vmem>>, vector<16x25xf32>,
    %339 = vector.extract_strided_slice %325 {offsets = [16, 0], sizes = [8, 25], strides = [1, 1]} : vector<48x25xf32> to vector<8x25xf32>
    %c376 = arith.constant 376 : index
    %c0_195 = arith.constant 0 : index
    %340 = vector.load %arg9[%c376, %c0_195] : memref<768x25xf32, #tpu.memory_space<vmem>>, vector<8x25xf32>
    tpu.vector_store %arg9[%c376, %c0_195], %339 {strides = array<i32>} : memref<768x25xf32, #tpu.memory_space<vmem>>, vector<8x25xf32>,
    %341 = vector.extract_strided_slice %325 {offsets = [40, 0], sizes = [8, 25], strides = [1, 1]} : vector<48x25xf32> to vector<8x25xf32>
    %c760 = arith.constant 760 : index
    %c0_196 = arith.constant 0 : index
    %342 = vector.load %arg9[%c760, %c0_196] : memref<768x25xf32, #tpu.memory_space<vmem>>, vector<8x25xf32>
    tpu.vector_store %arg9[%c760, %c0_196], %341 {strides = array<i32>} : memref<768x25xf32, #tpu.memory_space<vmem>>, vector<8x25xf32>,
    %343 = vector.extract_strided_slice %326 {offsets = [32, 0], sizes = [16, 25], strides = [1, 1]} : vector<48x25xf32> to vector<16x25xf32>
    %c752_197 = arith.constant 752 : index
    %c0_198 = arith.constant 0 : index
    %344 = vector.load %arg10[%c752_197, %c0_198] : memref<768x25xf32, #tpu.memory_space<vmem>>, vector<16x25xf32>
    tpu.vector_store %arg10[%c752_197, %c0_198], %343 {strides = array<i32>} : memref<768x25xf32, #tpu.memory_space<vmem>>, vector<16x25xf32>,
    %c0_199 = arith.constant 0 : index
    %c0_200 = arith.constant 0 : index
    %345 = vector.load %arg9[%c0_199, %c0_200] : memref<768x25xf32, #tpu.memory_space<vmem>>, vector<128x25xf32>
    %c384_201 = arith.constant 384 : index
    %c0_202 = arith.constant 0 : index
    %346 = vector.load %arg9[%c384_201, %c0_202] : memref<768x25xf32, #tpu.memory_space<vmem>>, vector<128x25xf32>
    %cst_203 = arith.constant dense<0.000000e+00> : vector<25x25xf32>
    %347 = tpu.matmul %345, %346, %cst_203 {dimension_numbers = #tpu.dot_dimension_numbers<[0], [0], [1], [1], [0, 1, 1, 1], [], []>} : vector<128x25xf32>, vector<128x25xf32>, vector<25x25xf32> -> vector<25x25xf32>
    %cst_204 = arith.constant 7.812500e-03 : f32
    %348 = vector.broadcast %cst_204 : f32 to vector<25x25xf32>
    %349 = arith.mulf %347, %348 : vector<25x25xf32>
    %350 = math.tanh %349 : vector<25x25xf32>
    %c0_205 = arith.constant 0 : index
    %351 = memref.load %arg7[%c0_205] : memref<3xf32, #tpu.memory_space<smem>>
    %352 = vector.broadcast %351 : f32 to vector<25x25xf32>
    %353 = arith.mulf %350, %352 : vector<25x25xf32>
    %c0_206 = arith.constant 0 : index
    %c0_207 = arith.constant 0 : index
    %c0_208 = arith.constant 0 : index
    %354 = vector.load %arg4[%c0_206, %c0_207, %c0_208] : memref<3x25x25xf32, #tpu.memory_space<vmem>>, vector<1x25x25xf32>
    %355 = vector.shape_cast %354 : vector<1x25x25xf32> to vector<25x25xf32>
    %356 = arith.addf %353, %355 : vector<25x25xf32>
    %c0_209 = arith.constant 0 : index
    %c0_210 = arith.constant 0 : index
    %357 = vector.load %arg10[%c0_209, %c0_210] : memref<768x25xf32, #tpu.memory_space<vmem>>, vector<256x25xf32>
    %cst_211 = arith.constant dense<0.000000e+00> : vector<256x25xf32>
    %358 = tpu.matmul %357, %356, %cst_211 {dimension_numbers = #tpu.dot_dimension_numbers<[1], [0], [0], [1], [0, 0, 1, 1], [], []>} : vector<256x25xf32>, vector<25x25xf32>, vector<256x25xf32> -> vector<256x25xf32>
    %c128_212 = arith.constant 128 : index
    %c0_213 = arith.constant 0 : index
    %359 = vector.load %arg9[%c128_212, %c0_213] : memref<768x25xf32, #tpu.memory_space<vmem>>, vector<128x25xf32>
    %c512_214 = arith.constant 512 : index
    %c0_215 = arith.constant 0 : index
    %360 = vector.load %arg9[%c512_214, %c0_215] : memref<768x25xf32, #tpu.memory_space<vmem>>, vector<128x25xf32>
    %cst_216 = arith.constant dense<0.000000e+00> : vector<25x25xf32>
    %361 = tpu.matmul %359, %360, %cst_216 {dimension_numbers = #tpu.dot_dimension_numbers<[0], [0], [1], [1], [0, 1, 1, 1], [], []>} : vector<128x25xf32>, vector<128x25xf32>, vector<25x25xf32> -> vector<25x25xf32>
    %cst_217 = arith.constant 7.812500e-03 : f32
    %362 = vector.broadcast %cst_217 : f32 to vector<25x25xf32>
    %363 = arith.mulf %361, %362 : vector<25x25xf32>
    %364 = math.tanh %363 : vector<25x25xf32>
    %c1 = arith.constant 1 : index
    %365 = memref.load %arg7[%c1] : memref<3xf32, #tpu.memory_space<smem>>
    %366 = vector.broadcast %365 : f32 to vector<25x25xf32>
    %367 = arith.mulf %364, %366 : vector<25x25xf32>
    %c1_218 = arith.constant 1 : index
    %c0_219 = arith.constant 0 : index
    %c0_220 = arith.constant 0 : index
    %368 = vector.load %arg4[%c1_218, %c0_219, %c0_220] : memref<3x25x25xf32, #tpu.memory_space<vmem>>, vector<1x25x25xf32>
    %369 = vector.shape_cast %368 : vector<1x25x25xf32> to vector<25x25xf32>
    %370 = arith.addf %367, %369 : vector<25x25xf32>
    %c256_221 = arith.constant 256 : index
    %c0_222 = arith.constant 0 : index
    %371 = vector.load %arg10[%c256_221, %c0_222] : memref<768x25xf32, #tpu.memory_space<vmem>>, vector<256x25xf32>
    %cst_223 = arith.constant dense<0.000000e+00> : vector<256x25xf32>
    %372 = tpu.matmul %371, %370, %cst_223 {dimension_numbers = #tpu.dot_dimension_numbers<[1], [0], [0], [1], [0, 0, 1, 1], [], []>} : vector<256x25xf32>, vector<25x25xf32>, vector<256x25xf32> -> vector<256x25xf32>
    %373 = arith.addf %358, %372 : vector<256x25xf32>
    %c256_224 = arith.constant 256 : index
    %c0_225 = arith.constant 0 : index
    %374 = vector.load %arg9[%c256_224, %c0_225] : memref<768x25xf32, #tpu.memory_space<vmem>>, vector<128x25xf32>
    %c640_226 = arith.constant 640 : index
    %c0_227 = arith.constant 0 : index
    %375 = vector.load %arg9[%c640_226, %c0_227] : memref<768x25xf32, #tpu.memory_space<vmem>>, vector<128x25xf32>
    %cst_228 = arith.constant dense<0.000000e+00> : vector<25x25xf32>
    %376 = tpu.matmul %374, %375, %cst_228 {dimension_numbers = #tpu.dot_dimension_numbers<[0], [0], [1], [1], [0, 1, 1, 1], [], []>} : vector<128x25xf32>, vector<128x25xf32>, vector<25x25xf32> -> vector<25x25xf32>
    %cst_229 = arith.constant 7.812500e-03 : f32
    %377 = vector.broadcast %cst_229 : f32 to vector<25x25xf32>
    %378 = arith.mulf %376, %377 : vector<25x25xf32>
    %379 = math.tanh %378 : vector<25x25xf32>
    %c2 = arith.constant 2 : index
    %380 = memref.load %arg7[%c2] : memref<3xf32, #tpu.memory_space<smem>>
    %381 = vector.broadcast %380 : f32 to vector<25x25xf32>
    %382 = arith.mulf %379, %381 : vector<25x25xf32>
    %c2_230 = arith.constant 2 : index
    %c0_231 = arith.constant 0 : index
    %c0_232 = arith.constant 0 : index
    %383 = vector.load %arg4[%c2_230, %c0_231, %c0_232] : memref<3x25x25xf32, #tpu.memory_space<vmem>>, vector<1x25x25xf32>
    %384 = vector.shape_cast %383 : vector<1x25x25xf32> to vector<25x25xf32>
    %385 = arith.addf %382, %384 : vector<25x25xf32>
    %c512_233 = arith.constant 512 : index
    %c0_234 = arith.constant 0 : index
    %386 = vector.load %arg10[%c512_233, %c0_234] : memref<768x25xf32, #tpu.memory_space<vmem>>, vector<256x25xf32>
    %cst_235 = arith.constant dense<0.000000e+00> : vector<256x25xf32>
    %387 = tpu.matmul %386, %385, %cst_235 {dimension_numbers = #tpu.dot_dimension_numbers<[1], [0], [0], [1], [0, 0, 1, 1], [], []>} : vector<256x25xf32>, vector<25x25xf32>, vector<256x25xf32> -> vector<256x25xf32>
    %388 = arith.addf %373, %387 : vector<256x25xf32>
    %389 = vector.extract_strided_slice %388 {offsets = [0, 0], sizes = [16, 25], strides = [1, 1]} : vector<256x25xf32> to vector<16x25xf32>
    %c0_236 = arith.constant 0 : index
    %c0_237 = arith.constant 0 : index
    %390 = vector.load %arg11[%c0_236, %c0_237] : memref<16x400xf32, #tpu.memory_space<vmem>>, vector<16x25xf32>
    tpu.vector_store %arg11[%c0_236, %c0_237], %389 {strides = array<i32>} : memref<16x400xf32, #tpu.memory_space<vmem>>, vector<16x25xf32>,
    %391 = vector.extract_strided_slice %388 {offsets = [16, 0], sizes = [16, 25], strides = [1, 1]} : vector<256x25xf32> to vector<16x25xf32>
    %c0_238 = arith.constant 0 : index
    %c25 = arith.constant 25 : index
    %392 = vector.load %arg11[%c0_238, %c25] : memref<16x400xf32, #tpu.memory_space<vmem>>, vector<16x25xf32>
    tpu.vector_store %arg11[%c0_238, %c25], %391 {strides = array<i32>} : memref<16x400xf32, #tpu.memory_space<vmem>>, vector<16x25xf32>,
    %393 = vector.extract_strided_slice %388 {offsets = [32, 0], sizes = [16, 25], strides = [1, 1]} : vector<256x25xf32> to vector<16x25xf32>
    %c0_239 = arith.constant 0 : index
    %c50 = arith.constant 50 : index
    %394 = vector.load %arg11[%c0_239, %c50] : memref<16x400xf32, #tpu.memory_space<vmem>>, vector<16x25xf32>
    tpu.vector_store %arg11[%c0_239, %c50], %393 {strides = array<i32>} : memref<16x400xf32, #tpu.memory_space<vmem>>, vector<16x25xf32>,
    %395 = vector.extract_strided_slice %388 {offsets = [48, 0], sizes = [16, 25], strides = [1, 1]} : vector<256x25xf32> to vector<16x25xf32>
    %c0_240 = arith.constant 0 : index
    %c75 = arith.constant 75 : index
    %396 = vector.load %arg11[%c0_240, %c75] : memref<16x400xf32, #tpu.memory_space<vmem>>, vector<16x25xf32>
    tpu.vector_store %arg11[%c0_240, %c75], %395 {strides = array<i32>} : memref<16x400xf32, #tpu.memory_space<vmem>>, vector<16x25xf32>,
    %397 = vector.extract_strided_slice %388 {offsets = [64, 0], sizes = [16, 25], strides = [1, 1]} : vector<256x25xf32> to vector<16x25xf32>
    %c0_241 = arith.constant 0 : index
    %c100 = arith.constant 100 : index
    %398 = vector.load %arg11[%c0_241, %c100] : memref<16x400xf32, #tpu.memory_space<vmem>>, vector<16x25xf32>
    tpu.vector_store %arg11[%c0_241, %c100], %397 {strides = array<i32>} : memref<16x400xf32, #tpu.memory_space<vmem>>, vector<16x25xf32>,
    %399 = vector.extract_strided_slice %388 {offsets = [80, 0], sizes = [16, 25], strides = [1, 1]} : vector<256x25xf32> to vector<16x25xf32>
    %c0_242 = arith.constant 0 : index
    %c125 = arith.constant 125 : index
    %400 = vector.load %arg11[%c0_242, %c125] : memref<16x400xf32, #tpu.memory_space<vmem>>, vector<16x25xf32>
    tpu.vector_store %arg11[%c0_242, %c125], %399 {strides = array<i32>} : memref<16x400xf32, #tpu.memory_space<vmem>>, vector<16x25xf32>,
    %401 = vector.extract_strided_slice %388 {offsets = [96, 0], sizes = [16, 25], strides = [1, 1]} : vector<256x25xf32> to vector<16x25xf32>
    %c0_243 = arith.constant 0 : index
    %c150 = arith.constant 150 : index
    %402 = vector.load %arg11[%c0_243, %c150] : memref<16x400xf32, #tpu.memory_space<vmem>>, vector<16x25xf32>
    tpu.vector_store %arg11[%c0_243, %c150], %401 {strides = array<i32>} : memref<16x400xf32, #tpu.memory_space<vmem>>, vector<16x25xf32>,
    %403 = vector.extract_strided_slice %388 {offsets = [112, 0], sizes = [16, 25], strides = [1, 1]} : vector<256x25xf32> to vector<16x25xf32>
    %c0_244 = arith.constant 0 : index
    %c175 = arith.constant 175 : index
    %404 = vector.load %arg11[%c0_244, %c175] : memref<16x400xf32, #tpu.memory_space<vmem>>, vector<16x25xf32>
    tpu.vector_store %arg11[%c0_244, %c175], %403 {strides = array<i32>} : memref<16x400xf32, #tpu.memory_space<vmem>>, vector<16x25xf32>,
    %405 = vector.extract_strided_slice %388 {offsets = [128, 0], sizes = [16, 25], strides = [1, 1]} : vector<256x25xf32> to vector<16x25xf32>
    %c0_245 = arith.constant 0 : index
    %c200_246 = arith.constant 200 : index
    %406 = vector.load %arg11[%c0_245, %c200_246] : memref<16x400xf32, #tpu.memory_space<vmem>>, vector<16x25xf32>
    tpu.vector_store %arg11[%c0_245, %c200_246], %405 {strides = array<i32>} : memref<16x400xf32, #tpu.memory_space<vmem>>, vector<16x25xf32>,
    %407 = vector.extract_strided_slice %388 {offsets = [144, 0], sizes = [16, 25], strides = [1, 1]} : vector<256x25xf32> to vector<16x25xf32>
    %c0_247 = arith.constant 0 : index
    %c225 = arith.constant 225 : index
    %408 = vector.load %arg11[%c0_247, %c225] : memref<16x400xf32, #tpu.memory_space<vmem>>, vector<16x25xf32>
    tpu.vector_store %arg11[%c0_247, %c225], %407 {strides = array<i32>} : memref<16x400xf32, #tpu.memory_space<vmem>>, vector<16x25xf32>,
    %409 = vector.extract_strided_slice %388 {offsets = [160, 0], sizes = [16, 25], strides = [1, 1]} : vector<256x25xf32> to vector<16x25xf32>
    %c0_248 = arith.constant 0 : index
    %c250 = arith.constant 250 : index
    %410 = vector.load %arg11[%c0_248, %c250] : memref<16x400xf32, #tpu.memory_space<vmem>>, vector<16x25xf32>
    tpu.vector_store %arg11[%c0_248, %c250], %409 {strides = array<i32>} : memref<16x400xf32, #tpu.memory_space<vmem>>, vector<16x25xf32>,
    %411 = vector.extract_strided_slice %388 {offsets = [176, 0], sizes = [16, 25], strides = [1, 1]} : vector<256x25xf32> to vector<16x25xf32>
    %c0_249 = arith.constant 0 : index
    %c275 = arith.constant 275 : index
    %412 = vector.load %arg11[%c0_249, %c275] : memref<16x400xf32, #tpu.memory_space<vmem>>, vector<16x25xf32>
    tpu.vector_store %arg11[%c0_249, %c275], %411 {strides = array<i32>} : memref<16x400xf32, #tpu.memory_space<vmem>>, vector<16x25xf32>,
    %413 = vector.extract_strided_slice %388 {offsets = [192, 0], sizes = [16, 25], strides = [1, 1]} : vector<256x25xf32> to vector<16x25xf32>
    %c0_250 = arith.constant 0 : index
    %c300 = arith.constant 300 : index
    %414 = vector.load %arg11[%c0_250, %c300] : memref<16x400xf32, #tpu.memory_space<vmem>>, vector<16x25xf32>
    tpu.vector_store %arg11[%c0_250, %c300], %413 {strides = array<i32>} : memref<16x400xf32, #tpu.memory_space<vmem>>, vector<16x25xf32>,
    %415 = vector.extract_strided_slice %388 {offsets = [208, 0], sizes = [16, 25], strides = [1, 1]} : vector<256x25xf32> to vector<16x25xf32>
    %c0_251 = arith.constant 0 : index
    %c325 = arith.constant 325 : index
    %416 = vector.load %arg11[%c0_251, %c325] : memref<16x400xf32, #tpu.memory_space<vmem>>, vector<16x25xf32>
    tpu.vector_store %arg11[%c0_251, %c325], %415 {strides = array<i32>} : memref<16x400xf32, #tpu.memory_space<vmem>>, vector<16x25xf32>,
    %417 = vector.extract_strided_slice %388 {offsets = [224, 0], sizes = [16, 25], strides = [1, 1]} : vector<256x25xf32> to vector<16x25xf32>
    %c0_252 = arith.constant 0 : index
    %c350 = arith.constant 350 : index
    %418 = vector.load %arg11[%c0_252, %c350] : memref<16x400xf32, #tpu.memory_space<vmem>>, vector<16x25xf32>
    tpu.vector_store %arg11[%c0_252, %c350], %417 {strides = array<i32>} : memref<16x400xf32, #tpu.memory_space<vmem>>, vector<16x25xf32>,
    %419 = vector.extract_strided_slice %388 {offsets = [240, 0], sizes = [16, 25], strides = [1, 1]} : vector<256x25xf32> to vector<16x25xf32>
    %c0_253 = arith.constant 0 : index
    %c375 = arith.constant 375 : index
    %420 = vector.load %arg11[%c0_253, %c375] : memref<16x400xf32, #tpu.memory_space<vmem>>, vector<16x25xf32>
    tpu.vector_store %arg11[%c0_253, %c375], %419 {strides = array<i32>} : memref<16x400xf32, #tpu.memory_space<vmem>>, vector<16x25xf32>,
    %c0_254 = arith.constant 0 : index
    %c0_255 = arith.constant 0 : index
    %421 = vector.load %arg6[%c0_254, %c0_255] : memref<16x3xf32, #tpu.memory_space<vmem>>, vector<16x1xf32>
    %c0_256 = arith.constant 0 : index
    %c1_257 = arith.constant 1 : index
    %422 = vector.load %arg6[%c0_256, %c1_257] : memref<16x3xf32, #tpu.memory_space<vmem>>, vector<16x1xf32>
    %c0_258 = arith.constant 0 : index
    %c2_259 = arith.constant 2 : index
    %423 = vector.load %arg6[%c0_258, %c2_259] : memref<16x3xf32, #tpu.memory_space<vmem>>, vector<16x1xf32>
    %c0_260 = arith.constant 0 : index
    %c0_261 = arith.constant 0 : index
    %424 = vector.load %arg11[%c0_260, %c0_261] : memref<16x400xf32, #tpu.memory_space<vmem>>, vector<16x400xf32>
    %425 = arith.addf %424, %6 : vector<16x400xf32>
    %426 = vector.broadcast %421 : vector<16x1xf32> to vector<16x400xf32>
    %427 = arith.addf %425, %426 : vector<16x400xf32>
    %cst_262 = arith.constant 1.000000e-01 : f32
    %428 = vector.broadcast %cst_262 : f32 to vector<16x400xf32>
    %429 = arith.mulf %428, %427 : vector<16x400xf32>
    %430 = arith.maximumf %427, %429 : vector<16x400xf32>
    %c0_263 = arith.constant 0 : index
    %c0_264 = arith.constant 0 : index
    %431 = vector.load %arg5[%c0_263, %c0_264] : memref<16x16xf32, #tpu.memory_space<vmem>>, vector<16x16xf32>
    %cst_265 = arith.constant dense<0.000000e+00> : vector<16x400xf32>
    %432 = tpu.matmul %431, %430, %cst_265 {dimension_numbers = #tpu.dot_dimension_numbers<[1], [0], [0], [1], [0, 0, 1, 1], [], []>} : vector<16x16xf32>, vector<16x400xf32>, vector<16x400xf32> -> vector<16x400xf32>
    %433 = vector.broadcast %422 : vector<16x1xf32> to vector<16x400xf32>
    %434 = arith.addf %432, %433 : vector<16x400xf32>
    %cst_266 = arith.constant 1.000000e-01 : f32
    %435 = vector.broadcast %cst_266 : f32 to vector<16x400xf32>
    %436 = arith.mulf %435, %434 : vector<16x400xf32>
    %437 = arith.maximumf %434, %436 : vector<16x400xf32>
    %438 = vector.broadcast %423 : vector<16x1xf32> to vector<16x400xf32>
    %439 = arith.addf %7, %438 : vector<16x400xf32>
    %440 = arith.addf %439, %437 : vector<16x400xf32>
    %cst_267 = arith.constant 1.000000e-01 : f32
    %441 = vector.broadcast %cst_267 : f32 to vector<16x400xf32>
    %442 = arith.mulf %441, %440 : vector<16x400xf32>
    %443 = arith.maximumf %440, %442 : vector<16x400xf32>
    %c0_268 = arith.constant 0 : index
    %c0_269 = arith.constant 0 : index
    %c0_270 = arith.constant 0 : index
    %444 = vector.load %arg8[%c0_268, %c0_269, %c0_270] : memref<1x16x400xf32, #tpu.memory_space<vmem>>, vector<1x16x400xf32>
    %445 = vector.shape_cast %444 : vector<1x16x400xf32> to vector<16x400xf32>
    %446 = vector.shape_cast %443 : vector<16x400xf32> to vector<1x16x400xf32>
    tpu.vector_store %arg8[%c0_268, %c0_269, %c0_270], %446 {strides = array<i32>} : memref<1x16x400xf32, #tpu.memory_space<vmem>>, vector<1x16x400xf32>,
    return
  }
  func.func @transform_0(%arg0: i32) -> (i32, i32, i32) {
    %c0_i32 = arith.constant 0 : i32
    %c0_i32_0 = arith.constant 0 : i32
    %c0_i32_1 = arith.constant 0 : i32
    return %arg0, %c0_i32, %c0_i32_0 : i32, i32, i32
  }
  func.func @transform_1(%arg0: i32) -> (i32, i32) {
    %c0_i32 = arith.constant 0 : i32
    %c0_i32_0 = arith.constant 0 : i32
    %c0_i32_1 = arith.constant 0 : i32
    return %c0_i32, %c0_i32_0 : i32, i32
  }
  func.func @transform_2(%arg0: i32) -> (i32, i32) {
    %c0_i32 = arith.constant 0 : i32
    %c0_i32_0 = arith.constant 0 : i32
    %c0_i32_1 = arith.constant 0 : i32
    return %c0_i32, %c0_i32_0 : i32, i32
  }
  func.func @transform_3(%arg0: i32) -> (i32, i32, i32) {
    %c0_i32 = arith.constant 0 : i32
    %c0_i32_0 = arith.constant 0 : i32
    %c0_i32_1 = arith.constant 0 : i32
    %c0_i32_2 = arith.constant 0 : i32
    return %c0_i32, %c0_i32_0, %c0_i32_1 : i32, i32, i32
  }
  func.func @transform_4(%arg0: i32) -> (i32, i32) {
    %c0_i32 = arith.constant 0 : i32
    %c0_i32_0 = arith.constant 0 : i32
    %c0_i32_1 = arith.constant 0 : i32
    return %c0_i32, %c0_i32_0 : i32, i32
  }
  func.func @transform_5(%arg0: i32) -> (i32, i32) {
    %c0_i32 = arith.constant 0 : i32
    %c0_i32_0 = arith.constant 0 : i32
    %c0_i32_1 = arith.constant 0 : i32
    return %c0_i32, %c0_i32_0 : i32, i32
  }
  func.func @transform_6(%arg0: i32) -> i32 {
    %c0_i32 = arith.constant 0 : i32
    %c0_i32_0 = arith.constant 0 : i32
    return %c0_i32 : i32
  }
  func.func @transform_7(%arg0: i32) -> (i32, i32, i32) {
    %c0_i32 = arith.constant 0 : i32
    %c0_i32_0 = arith.constant 0 : i32
    %c0_i32_1 = arith.constant 0 : i32
    return %arg0, %c0_i32, %c0_i32_0 : i32, i32, i32
  }
}

</mosaic_0001>

<bundles_post_ra>
// kernel: st_attention_block.1
= control target key start
LH: loop header
LB: loop body
LE: loop exit
PB: predicated region body
PF: predicated region fallthrough
CT: control target
= control target key end

     0   :  { %s6956_s0 = inlined_call_operand.vmem [shape: f32[2,16,400], index: 0, kind: input, shape index: {}]   ;;  %s6957_s1 = inlined_call_operand.vmem [shape: f32[128,16], index: 1, kind: input, shape index: {}]   ;;  %s6958_s2 = inlined_call_operand.vmem [shape: f32[48,25], index: 2, kind: input, shape index: {}]   ;;  %s6959_s3 = inlined_call_operand.vmem [shape: f32[3,25,25], index: 3, kind: input, shape index: {}]   ;;  %s6960_s4 = inlined_call_operand.vmem [shape: f32[16,16], index: 4, kind: input, shape index: {}]   ;;  %s6961_s5 = inlined_call_operand.vmem [shape: f32[16,3], index: 5, kind: input, shape index: {}]   ;;  %s6962_s6 = inlined_call_operand.vmem [shape: f32[3], index: 6, kind: input, shape index: {}]   ;;  %s6963_s7 = inlined_call_operand.vmem [shape: f32[2,16,400], index: 7, kind: output, shape index: {}]  }
   0x1   :  { %7031 = sst [smem:[#allocation17_spill]] %s6956_s0 }
   0x2   :  { %7032 = sst [smem:[#allocation18_spill]] %s6957_s1 }
   0x3   :  { %7033 = sst [smem:[#allocation19_spill]] %s6958_s2 }
   0x4   :  { %7034 = sst [smem:[#allocation20_spill]] %s6960_s4 }
   0x5   :  { %7035 = sst [smem:[#allocation21_spill]] %s6962_s6 }
   0x6   :  { %7036 = sst [smem:[#allocation22_spill]] %s6963_s7 }
   0x7   :  { %12 = vsyncpa [#allocation6], 0  ;;  %s5209_s24 = smov 0  }
   0x8 LB: > { %7037 = sst [smem:[#allocation8_spill]] %s5131_s24  ;;  %s5215_s25 = sadd.s32 4294967295, %s5131_s24   ;;  %s5131_s24 = sphi %s5209_s24, %s18_s24  }
   0x9   : > { %p4206_p0 = scmp.ge.s32.totalorder %s5131_s24, 1  ;;  %p201_p1 = scmp.lt.s32.totalorder %s5131_s24, 3 }
   0xa   : > { %s7038_s6 = sld [smem:[#allocation21_spill]]  ;;  %p5030_p3 = scmp.eq.s32.totalorder %s5215_s25, 0 }
   0xb   : > { %p5222_p2 = pnand %p4206_p0, %p201_p1 }
   0xd   : > { %p5026_p4 = pneg %p5222_p2 }
   0xf   : > { %p5027_p5 = pnand %p5030_p3, %p5026_p4 }
  0x10   : > { %s229_s28 = sshll.u32 %s7038_s6, 4  ;;  %s230_s28 = int_to_ptr.vmem [resolvable:$true] %s229_s28 }
  0x11   : > { %s5106_s30 = scalar_lea.vmem %s230_s28, 16  ;;  %p5108_p7 = pneg %p5027_p5 }
  0x12   : > { %p5107_p6 = scmp.ne.s32.totalorder %s230_s28, %s5106_s30  ;;  %p5114_p10 = scmp.lt.s32.totalorder %s230_s28, %s230_s28 }
  0x13   : > { %p5115_p11 = scmp.lt.s32.totalorder %s5106_s30, %s5106_s30 }
  0x14   : > { %p5109_p8 = pnand %p5108_p7, %p5107_p6 }
  0x15   : > { %p5116_p12 = por %p5115_p11, %p5114_p10 }
  0x16   : > { %p5110_p9 = pneg %p5109_p8 }
  0x18   : > { %p5117_p13 = pnand %p5116_p12, %p5110_p9 }
  0x1a   : > { %5120 = shalt.err (!%p5117_p13)
}
  0x1b   : > { %s5133_s8 = smov [#allocation5]   ;;  %250 = sbr.rel (%p5222_p2) target bundleno = 1782 (0x6f6), region = 48 }
  0x1c   : > { %5029 = dma.vmem_to_smem (!%p5027_p5), %s230_s28, 16, %s5133_s8, [#allocation6]  }
  0x22   : > { %5126 = dma.done.wait (%p5030_p3), [#allocation6], 16  }
  0x23   : > { %5128 = vsyncadd (%p5030_p3), [#allocation6], 4294967280 }
  0x24   : > { %256 = sfence }
  0x25   : > { %s7040_s2 = sld [smem:[#allocation19_spill]]  ;;  %s6985_s11 = smov 75   ;;  %v6964_v1 = vmov 0.0   ;;  %vm317_vm0 = vcmask 130048   ;;  %vm700_vm1 = vcmask 203776   ;;  %vm1073_vm2 = vcmask 23552  }
  0x26   : > { %p283_p0 = scmp.lt.s32.totalorder %s5215_s25, 1  ;;  %430 = vmatprep.mubr.f32.mxu0 %v6964_v1  ;;  %496 = vmatprep.mubr.f32.mxu1 %v6964_v1  ;;  %s7015_s12 = smov 100   ;;  %vm1518_vm3 = vcmask 48128   ;;  %vm1963_vm4 = vcmask 72704   ;;  %vm2563_vm5 = vcmask 1040384   ;;  %vm5165_vm6 = vmmov 1  }
  0x27   : > { %s7042_s0 = sld [smem:[#allocation17_spill]]  ;;  %s6973_s17 = smov 25   ;;  %vm6424_vm7 = vmpackc.low %vm2563_vm5, %vm5165_vm6  ;;  %vm3686_vm8 = vcmask 408776   ;;  %vm3697_vm9 = vcmask 613776   ;;  %vm3708_vm10 = vcmask 818776   ;;  %vm3719_vm11 = vcmask 1023776  }
  0x28   : > { %s7098_s25 = smov (!%p283_p0, %s5215_s25), 1  ;;  %s7007_s18 = smov 22   ;;  %vm3730_vm12 = vcmask 1048552   ;;  %vm3732_vm13 = vcmask 179200   ;;  %vm3744_vm14 = vcmask 384176   ;;  %vm3755_vm15 = vcmask 589176  }
  0x29   : > { %7041 = sst [smem:[#allocation9_spill]] %s7098_s25  ;;  %s6966_s13 = sshll.u32 %s7098_s25, 6  ;;  %vm3802_vm5 = vcmask 359576   ;;  %vm3813_vm6 = vcmask 564576  }
  0x2a   : > { %s7043_s1 = sld [smem:[#allocation18_spill]]  ;;  %s6967_s23 = smov 50  }
  0x2b   : > { %v5240_v0 = vld [vmem:[%s7040_s2 + $0x8] sm:$0xff]  ;;  %s6993_s26 = smov 72   ;;  %s7005_s8 = smov 125   ;;  %v5331_v22 = vld [vmem:[%s7040_s2 + $0x20] sm:$0xff]  ;;  %v5406_v26 = vld [vmem:[%s7040_s2 + $0x18] sm:$0xff] }
  0x2c   : > { %883 = vrot.lane.b32.xlu1 %v5240_v0, %s6985_s11  ;;  %721 = vrot.lane.b32.xlu0 %v5240_v0, %s6973_s17  ;;  %s7003_s9 = smov 122   ;;  %s7013_s19 = smov 47   ;;  %v5393_v25 = vld [vmem:[%s7040_s2] sm:$0xff]  ;;  %v5415_v27 = vld [vmem:[%s7040_s2 + $0x10] sm:$0xff] }
  0x2d   : > { %s287_s16 = scalar_lea.vmem %s7042_s0, %s6966_s13  ;;  %s6983_s20 = smov 44  }
  0x2e   : > { %v294_v2 = vld [vmem:[%s287_s16 + $0x8] sm:$0xff]  ;;  %v293_v4 = vld [vmem:[%s287_s16] sm:$0xff]  ;;  %v296_v7 = vld [vmem:[%s287_s16 + $0x18] sm:$0xff]  ;;  %s7011_s29 = smov 97   ;;  %s6971_s30 = smov 94  }
  0x2f   : > { %v298_v3 = vld [vmem:[%s287_s16 + $0x28] sm:$0xff]  ;;  %v297_v6 = vld [vmem:[%s287_s16 + $0x20] sm:$0xff]  ;;  %v300_v8 = vld [vmem:[%s287_s16 + $0x38] sm:$0xff]  ;;  %s6989_s27 = smov 19   ;;  %s6981_s28 = smov 69  }
  0x30   : > { %961 = vrot.lane.b32.xlu1 %v5240_v0, %s7015_s12  ;;  %v4814_v5 = vpack.c.bf16 %v298_v3, %v294_v2  ;;  %v4816_v9 = vpack.c.bf16 %v297_v6, %v293_v4  ;;  %v4818_v10 = vpack.c.bf16 %v300_v8, %v296_v7  ;;  %v295_v11 = vld [vmem:[%s287_s16 + $0x10] sm:$0xff]  ;;  %v301_v13 = vld [vmem:[%s7043_s1] sm:$0xff]  ;;  %v5268_v14 = vld [vmem:[%s7043_s1 + $0x58] sm:$0xff]  ;;  %s6969_s10 = smov 119   ;;  %s6979_s15 = smov 103  }
  0x31   : > { %v299_v12 = vld [vmem:[%s287_s16 + $0x30] sm:$0xff]  ;;  %805 = vrot.lane.b32.xlu0 %v5240_v0, %s6967_s23  ;;  %v302_v16 = vld [vmem:[%s7043_s1 + $0x8] sm:$0xff]  ;;  %v5285_v17 = vld [vmem:[%s7043_s1 + $0x60] sm:$0xff]  ;;  %s6975_s16 = smov 78   ;;  %s6977_s21 = smov 53  }
  0x32   : > { %4815 = vmatprep.subr.bf16.mxu0 %v4814_v5  ;;  %4956 = vmatprep.subr.bf16.mxu1 %v4814_v5  ;;  %v4820_v15 = vpack.c.bf16 %v299_v12, %v295_v11  ;;  %v303_v18 = vld [vmem:[%s7043_s1 + $0x10] sm:$0xff]  ;;  %v5302_v19 = vld [vmem:[%s7043_s1 + $0x68] sm:$0xff]  ;;  %v304_v20 = vld [vmem:[%s7043_s1 + $0x18] sm:$0xff]  ;;  %s7009_s22 = smov 3   ;;  %s7017_s14 = smov 28  }
  0x33   : > { %4817 = vmatpush1.bf16.msra.mxu0 %v4816_v9  ;;  %4957 = vmatpush1.bf16.msra.mxu1 %v4816_v9  ;;  %v5319_v21 = vld [vmem:[%s7043_s1 + $0x70] sm:$0xff]  ;;  %v305_v23 = vld [vmem:[%s7043_s1 + $0x20] sm:$0xff]  ;;  %v5341_v24 = vld [vmem:[%s7043_s1 + $0x78] sm:$0xff]  ;;  %s6987_s13 = smov 106   ;;  %s7073_s0 = smov 28  }
  0x34   : > { %1172 = vrot.lane.b32.xlu1 %v5240_v0, %s7007_s18  ;;  %4819 = vmatprep.subr.bf16.mxu1 %v4818_v10  ;;  %v306_v28 = vld [vmem:[%s7043_s1 + $0x28] sm:$0xff]  ;;  %v307_v29 = vld [vmem:[%s7043_s1 + $0x30] sm:$0xff]  ;;  %v308_v30 = vld [vmem:[%s7043_s1 + $0x38] sm:$0xff]  ;;  %s7076_s6 = smov 31   ;;  %s4247_s24 = sld [smem:[#allocation5 + $0x1]] }
  0x35   : > { %1039 = vrot.lane.b32.xlu0 %v5240_v0, %s7005_s8  ;;  %v309_v31 = vld [vmem:[%s7043_s1 + $0x40] sm:$0xff]  ;;  %v310_v32 = vld [vmem:[%s7043_s1 + $0x48] sm:$0xff] }
  0x36   : > { %4215 = vmatmul.mubr.msk.f32.vlgmr.msra.gmra.mrb[0].mxu0 %vm317_vm0, %v301_v13  ;;  %4226 = vmatmul.mubr.msk.f32.vlgmr.msra.gmra.mrb[0].mxu1 %vm317_vm0, %v5268_v14 }
  0x37   : > { %436 = vmatprep.mubr.f32.mxu0 %v6964_v1  ;;  %502 = vmatprep.mubr.f32.mxu1 %v6964_v1 }
  0x38   : > { %1328 = vrot.lane.b32.xlu1 %v5240_v0, %s6993_s26  ;;  %4821 = vmatpush1.bf16.msra.mxu1 %v4820_v15 }
  0x39   : > { %1250 = vrot.lane.b32.xlu0 %v5240_v0, %s7013_s19 }
  0x3a   : > { %4216 = vmatmul.mubr.msk.f32.gmra.mrb[2].mxu0 %vm317_vm0, %v302_v16  ;;  %4227 = vmatmul.mubr.msk.f32.gmra.mrb[2].mxu1 %vm317_vm0, %v5285_v17 }
  0x3b   : > { %442 = vmatprep.mubr.f32.mxu0 %v6964_v1  ;;  %508 = vmatprep.mubr.f32.mxu1 %v6964_v1 }
  0x3c   : > { %1484 = vrot.lane.b32.xlu1 %v5240_v0, %s7003_s9 }
  0x3d   : > { %1406 = vrot.lane.b32.xlu0 %v5240_v0, %s7011_s29 }
  0x3e   : > { %4217 = vmatmul.mubr.msk.f32.gmra.mrb[4].mxu0 %vm317_vm0, %v303_v18  ;;  %4228 = vmatmul.mubr.msk.f32.gmra.mrb[4].mxu1 %vm317_vm0, %v5302_v19 }
  0x3f   : > { %448 = vmatprep.mubr.f32.mxu0 %v6964_v1  ;;  %514 = vmatprep.mubr.f32.mxu1 %v6964_v1 }
  0x40   : > { %1695 = vrot.lane.b32.xlu1 %v5240_v0, %s6983_s20 }
  0x41   : > { %1617 = vrot.lane.b32.xlu0 %v5240_v0, %s6989_s27 }
  0x42   : > { %4218 = vmatmul.mubr.msk.f32.gmra.mrb[6].mxu0 %vm317_vm0, %v304_v20  ;;  %4229 = vmatmul.mubr.msk.f32.gmra.mrb[6].mxu1 %vm317_vm0, %v5319_v21 }
  0x43   : > { %454 = vmatprep.mubr.f32.mxu0 %v6964_v1  ;;  %520 = vmatprep.mubr.f32.mxu1 %v6964_v1 }
  0x44   : > { %1851 = vrot.lane.b32.xlu1 %v5240_v0, %s6971_s30 }
  0x45   : > { %1773 = vrot.lane.b32.xlu0 %v5240_v0, %s6981_s28 }
  0x46   : > { %4219 = vmatmul.mubr.msk.f32.gmra.mrb[8].mxu0 %vm317_vm0, %v305_v23  ;;  %4230 = vmatmul.mubr.msk.f32.gmra.mrb[8].mxu1 %vm317_vm0, %v5341_v24 }
  0x47   : > { %591 = vmatprep.mubr.f32.mxu1 %v6964_v1  ;;  %460 = vmatprep.mubr.f32.mxu0 %v6964_v1 }
  0x48   : > { %727 = vrot.lane.b32.xlu1 %v5331_v22, %s6973_s17 }
  0x49   : > { %1929 = vrot.lane.b32.xlu0 %v5240_v0, %s6969_s10 }
  0x4a   : > { %4231 = vmatmul.mubr.msk.f32.vlgmr.msra.gmra.mrb[10].mxu1 %vm317_vm0, %v301_v13  ;;  %4220 = vmatmul.mubr.msk.f32.gmra.mrb[10].mxu0 %vm317_vm0, %v306_v28 }
  0x4b   : > { %597 = vmatprep.mubr.f32.mxu1 %v6964_v1  ;;  %466 = vmatprep.mubr.f32.mxu0 %v6964_v1 }
  0x4c   : > { %889 = vrot.lane.b32.xlu1 %v5331_v22, %s6985_s11 }
  0x4d   : > { %811 = vrot.lane.b32.xlu0 %v5331_v22, %s6967_s23 }
  0x4e   : > { %4232 = vmatmul.mubr.msk.f32.gmra.mrb[12].mxu1 %vm317_vm0, %v302_v16  ;;  %4221 = vmatmul.mubr.msk.f32.gmra.mrb[12].mxu0 %vm317_vm0, %v307_v29 }
  0x4f   : > { %603 = vmatprep.mubr.f32.mxu1 %v6964_v1  ;;  %472 = vmatprep.mubr.f32.mxu0 %v6964_v1 }
  0x50   : > { %967 = vrot.lane.b32.xlu1 %v5331_v22, %s7015_s12 }
  0x51   : > { %1045 = vrot.lane.b32.xlu0 %v5331_v22, %s7005_s8 }
  0x52   : > { %4233 = vmatmul.mubr.msk.f32.gmra.mrb[14].mxu1 %vm317_vm0, %v303_v18  ;;  %4222 = vmatmul.mubr.msk.f32.gmra.mrb[14].mxu0 %vm317_vm0, %v308_v30 }
  0x53   : > { %609 = vmatprep.mubr.f32.mxu1 %v6964_v1  ;;  %478 = vmatprep.mubr.f32.mxu0 %v6964_v1 }
  0x54   : > { %1256 = vrot.lane.b32.xlu1 %v5331_v22, %s7013_s19 }
  0x55   : > { %1178 = vrot.lane.b32.xlu0 %v5331_v22, %s7007_s18 }
  0x56   : > { %4234 = vmatmul.mubr.msk.f32.gmra.mrb[16].mxu1 %vm317_vm0, %v304_v20  ;;  %4223 = vmatmul.mubr.msk.f32.gmra.mrb[16].mxu0 %vm317_vm0, %v309_v31 }
  0x57   : > { %615 = vmatprep.mubr.f32.mxu1 %v6964_v1  ;;  %484 = vmatprep.mubr.f32.mxu0 %v6964_v1 }
  0x58   : > { %1412 = vrot.lane.b32.xlu1 %v5331_v22, %s7011_s29 }
  0x59   : > { %1334 = vrot.lane.b32.xlu0 %v5331_v22, %s6993_s26 }
  0x5a   : > { %4235 = vmatmul.mubr.msk.f32.gmra.mrb[18].mxu1 %vm317_vm0, %v305_v23  ;;  %4224 = vmatmul.mubr.msk.f32.gmra.mrb[18].mxu0 %vm317_vm0, %v310_v32 }
  0x5b   : > { %621 = vmatprep.mubr.f32.mxu1 %v6964_v1  ;;  %490 = vmatprep.mubr.f32.mxu0 %v6964_v1 }
  0x5c   : > { %1623 = vrot.lane.b32.xlu1 %v5331_v22, %s6989_s27 }
  0x5d   : > { %1490 = vrot.lane.b32.xlu0 %v5331_v22, %s7003_s9 }
  0x5e   : > { %4236 = vmatmul.mubr.msk.f32.gmra.mrb[20].mxu1 %vm317_vm0, %v306_v28 }
  0x5f   : > { %627 = vmatprep.mubr.f32.mxu1 %v6964_v1 }
  0x60   : > { %1779 = vrot.lane.b32.xlu1 %v5331_v22, %s6981_s28 }
  0x61   : > { %1701 = vrot.lane.b32.xlu0 %v5331_v22, %s6983_s20 }
  0x62   : > { %4237 = vmatmul.mubr.msk.f32.gmra.mrb[22].mxu1 %vm317_vm0, %v307_v29 }
  0x63   : > { %633 = vmatprep.mubr.f32.mxu1 %v6964_v1 }
  0x64   : > { %1857 = vrot.lane.b32.xlu1 %v5331_v22, %s6971_s30 }
  0x65   : > { %1935 = vrot.lane.b32.xlu0 %v5331_v22, %s6969_s10 }
  0x66   : > { %4238 = vmatmul.mubr.msk.f32.gmra.mrb[24].mxu1 %vm317_vm0, %v308_v30 }
  0x67   : > { %639 = vmatprep.mubr.f32.mxu1 %v6964_v1 }
  0x68   : > { %719 = vrot.lane.b32.xlu1 %v5393_v25, %s6973_s17 }
  0x69   : > { %1410 = vrot.lane.b32.xlu0 %v5406_v26, %s7011_s29 }
  0x6a   : > { %4239 = vmatmul.mubr.msk.f32.gmra.mrb[26].mxu1 %vm317_vm0, %v309_v31 }
  0x6b   : > { %645 = vmatprep.mubr.f32.mxu1 %v6964_v1 }
  0x6c   : > { %803 = vrot.lane.b32.xlu1 %v5393_v25, %s6967_s23 }
  0x6d   : > { %807 = vrot.lane.b32.xlu0 %v5415_v27, %s6967_s23 }
  0x6e   : > { %4240 = vmatmul.mubr.msk.f32.gmra.mrb[28].mxu1 %vm317_vm0, %v310_v32 }
  0x6f   : > { %651 = vmatprep.mubr.f32.mxu1 %v6964_v1 }
  0x70   : > { %881 = vrot.lane.b32.xlu1 %v5393_v25, %s6985_s11 }
  0x74   : > { %959 = vrot.lane.b32.xlu1 %v5393_v25, %s7015_s12 }
  0x78   : > { %1037 = vrot.lane.b32.xlu1 %v5393_v25, %s7005_s8 }
  0x7c   : > { %1170 = vrot.lane.b32.xlu1 %v5393_v25, %s7007_s18 }
  0x80   : > { %1248 = vrot.lane.b32.xlu1 %v5393_v25, %s7013_s19 }
  0x84   : > { %1326 = vrot.lane.b32.xlu1 %v5393_v25, %s6993_s26 }
  0x88   : > { %1404 = vrot.lane.b32.xlu1 %v5393_v25, %s7011_s29 }
  0x8c   : > { %1482 = vrot.lane.b32.xlu1 %v5393_v25, %s7003_s9 }
  0x90   : > { %1615 = vrot.lane.b32.xlu1 %v5393_v25, %s6989_s27 }
  0x94   : > { %1693 = vrot.lane.b32.xlu1 %v5393_v25, %s6983_s20 }
  0x98   : > { %1771 = vrot.lane.b32.xlu1 %v5393_v25, %s6981_s28 }
  0x9c   : > { %1849 = vrot.lane.b32.xlu1 %v5393_v25, %s6971_s30 }
  0x9e   : > { %v5476_v33 = vpop.permute.xlu1 %883  ;;  %v722_v54 = vpop.permute.xlu0 %721 }
  0xa0   : > { %1927 = vrot.lane.b32.xlu1 %v5393_v25, %s6969_s10 }
  0xa2   : > { %v5480_v34 = vpop.permute.xlu1 %961 }
  0xa3   : > { %v806_v57 = vpop.permute.xlu0 %805 }
  0xa4   : > { %725 = vrot.lane.b32.xlu1 %v5406_v26, %s6973_s17 }
  0xa6   : > { %v5484_v35 = vpop.permute.xlu1 %1172 }
  0xa7   : > { %v5550_v59 = vpop.permute.xlu0 %1039 }
  0xa8   : > { %809 = vrot.lane.b32.xlu1 %v5406_v26, %s6967_s23  ;;  %s6995_s23 = smov 56  }
  0xaa   : > { %v5488_v36 = vpop.permute.xlu1 %1328 }
  0xab   : > { %v5554_v61 = vpop.permute.xlu0 %1250 }
  0xac   : > { %887 = vrot.lane.b32.xlu1 %v5406_v26, %s6985_s11 }
  0xae   : > { %v5492_v37 = vpop.permute.xlu1 %1484 }
  0xaf   : > { %v5558_v63 = vpop.permute.xlu0 %1406 }
  0xb0   : > { %1043 = vrot.lane.b32.xlu1 %v5406_v26, %s7005_s8 }
  0xb2   : > { %v5496_v38 = vpop.permute.xlu1 %1695 }
  0xb3   : > { %v5575_v9 = vpop.permute.xlu0 %1617 }
  0xb4   : > { %965 = vrot.lane.b32.xlu1 %v5406_v26, %s7015_s12 }
  0xb6   : > { %v5500_v39 = vpop.permute.xlu1 %1851 }
  0xb7   : > { %v5604_v32 = vpop.permute.xlu0 %1773 }
  0xb8   : > { %1176 = vrot.lane.b32.xlu1 %v5406_v26, %s7007_s18 }
  0xba   : > { %v5504_v40 = vpop.permute.xlu1 %727 }
  0xbb   : > { %v5633_v1 = vpop.permute.xlu0 %1929 }
  0xbc   : > { %1254 = vrot.lane.b32.xlu1 %v5406_v26, %s7013_s19 }
  0xbe   : > { %v5508_v41 = vpop.permute.xlu1 %889 }
  0xc0   : > { %1332 = vrot.lane.b32.xlu1 %v5406_v26, %s6993_s26 }
  0xc2   : > { %v5512_v42 = vpop.permute.xlu1 %967 }
  0xc4   : > { %1488 = vrot.lane.b32.xlu1 %v5406_v26, %s7003_s9 }
  0xc6   : > { %v5516_v43 = vpop.permute.xlu1 %1256 }
  0xc8   : > { %1621 = vrot.lane.b32.xlu1 %v5406_v26, %s6989_s27 }
  0xca   : > { %v5520_v44 = vpop.permute.xlu1 %1412 }
  0xcc   : > { %1699 = vrot.lane.b32.xlu1 %v5406_v26, %s6983_s20  ;;  %s7021_s20 = smov 9  }
  0xce   : > { %v5524_v45 = vpop.permute.xlu1 %1623 }
  0xd0   : > { %1777 = vrot.lane.b32.xlu1 %v5406_v26, %s6981_s28  ;;  %s6999_s28 = smov 34  }
  0xd2   : > { %v5528_v46 = vpop.permute.xlu1 %1779 }
  0xd4   : > { %1933 = vrot.lane.b32.xlu1 %v5406_v26, %s6969_s10  ;;  %s7023_s10 = smov 6  }
  0xd6   : > { %v5532_v47 = vpop.permute.xlu1 %1857 }
  0xd8   : > { %1855 = vrot.lane.b32.xlu1 %v5406_v26, %s6971_s30  ;;  %s7019_s30 = smov 81  }
  0xda   : > { %v720_v48 = vpop.permute.xlu1 %719 }
  0xdc   : > { %723 = vrot.lane.b32.xlu1 %v5415_v27, %s6973_s17  ;;  %s7025_s17 = smov 31  }
  0xde   : > { %v804_v49 = vpop.permute.xlu1 %803 }
  0xe2   : > { %v882_v50 = vpop.permute.xlu1 %881 }
  0xe6   : > { %v5538_v51 = vpop.permute.xlu1 %959 }
  0xea   : > { %v5540_v52 = vpop.permute.xlu1 %1037 }
  0xee   : > { %v5542_v53 = vpop.permute.xlu1 %1170 }
  0xf2   : > { %v5544_v55 = vpop.permute.xlu1 %1248 }
  0xf6   : > { %v5546_v56 = vpop.permute.xlu1 %1326 }
  0xfa   : > { %v5548_v58 = vpop.permute.xlu1 %1404 }
  0xfe   : > { %v5552_v60 = vpop.permute.xlu1 %1482 }
 0x102   : > { %v5556_v62 = vpop.permute.xlu1 %1615 }
 0x106   : > { %v5560_v2 = vpop.permute.xlu1 %1693 }
 0x109   : > { %v5562_v3 = vpop.f32.mrb[0].mxu0  ;;  %v5564_v4 = vpop.f32.mrb[0].mxu1 }
 0x10a   : > { %v694_v5 = vadd.f32 %v5393_v25, %v5562_v3  ;;  %v5568_v6 = vpop.f32.mrb[1].mxu0  ;;  %v737_v7 = vadd.f32 %v720_v48, %v5562_v3  ;;  %712 = vst.msk [vmem:[#allocation3 + $0x208] sm:$0xff] %vm700_vm1, %v5564_v4  ;;  %v5573_v8 = vpop.f32.mrb[1].mxu1  ;;  %v821_v15 = vadd.f32 %v804_v49, %v5562_v3 }
 0x10b   : > { %v5587_v20 = vpop.permute.xlu1 %1771 }
 0x10c   : > { %701 = vst.msk [vmem:[#allocation2] sm:$0xff] %vm700_vm1, %v694_v5  ;;  %744 = vrot.lane.b32.xlu1 %v737_v7, %s6979_s15 }
 0x10d   : > { %v438_v10 = vpop.f32.mrb[2].mxu0  ;;  %v5579_v11 = vpop.f32.mrb[2].mxu1 }
 0x10e   : > { %7044 = vst [vmem:[#allocation10_spill] sm:$0xff] %v5579_v11  ;;  %v695_v12 = vadd.f32 %v5240_v0, %v438_v10  ;;  %v5582_v13 = vpop.f32.mrb[3].mxu0  ;;  %v738_v16 = vadd.f32 %v722_v54, %v438_v10  ;;  %v5585_v18 = vpop.f32.mrb[3].mxu1  ;;  %v899_v0 = vadd.f32 %v882_v50, %v5562_v3  ;;  %v900_v28 = vadd.f32 %v5476_v33, %v438_v10 }
 0x10f   : > { %7045 = vst [vmem:[#allocation11_spill] sm:$0xff] %v5585_v18  ;;  %v822_v50 = vadd.f32 %v806_v57, %v438_v10  ;;  %v1057_v54 = vadd.f32 %v5550_v59, %v438_v10  ;;  %v978_v57 = vadd.f32 %v5480_v34, %v438_v10  ;;  %v1345_v34 = vadd.f32 %v5488_v36, %v5582_v13 }
 0x110   : > { %705 = vst.msk [vmem:[#allocation2 + $0x80] sm:$0xff] %vm700_vm1, %v695_v12  ;;  %828 = vrot.lane.b32.xlu1 %v821_v15, %s6975_s16  ;;  %764 = vrot.lane.b32.xlu0 %v738_v16, %s6979_s15  ;;  %v5620_v12 = vpop.permute.xlu1 %1849 }
 0x111   : > { %v5592_v23 = vpop.f32.mrb[4].mxu0  ;;  %v5594_v25 = vpop.f32.mrb[4].mxu1 }
 0x112   : > { %v696_v29 = vadd.f32 %v5415_v27, %v5592_v23  ;;  %v5600_v30 = vpop.f32.mrb[5].mxu0  ;;  %v5602_v31 = vpop.f32.mrb[5].mxu1 }
 0x113   : > { %7046 = vst [vmem:[#allocation12_spill] sm:$0xff] %v5602_v31 }
 0x114   : > { %906 = vrot.lane.b32.xlu1 %v899_v0, %s6977_s21  ;;  %924 = vrot.lane.b32.xlu0 %v900_v28, %s6977_s21  ;;  %709 = vst.msk [vmem:[#allocation2 + $0x100] sm:$0xff] %vm700_vm1, %v696_v29  ;;  %v1189_v0 = vadd.f32 %v5484_v35, %v5582_v13  ;;  %v1058_v35 = vadd.f32 %v5550_v59, %v5582_v13  ;;  %v5646_v10 = vpop.permute.xlu1 %1927 }
 0x115   : > { %v5609_v48 = vpop.f32.mrb[6].mxu0  ;;  %v5611_v49 = vpop.f32.mrb[6].mxu1 }
 0x116   : > { %7047 = vst [vmem:[#allocation13_spill] sm:$0xff] %v5611_v49  ;;  %v697_v33 = vadd.f32 %v5406_v26, %v5609_v48  ;;  %v5616_v5 = vpop.f32.mrb[7].mxu0  ;;  %v5618_v7 = vpop.f32.mrb[7].mxu1 }
 0x117   : > { %7048 = vst [vmem:[#allocation14_spill] sm:$0xff] %v5618_v7 }
 0x118   : > { %702 = vst.msk [vmem:[#allocation2 + $0x180] sm:$0xff] %vm700_vm1, %v697_v33  ;;  %846 = vrot.lane.b32.xlu1 %v822_v50, %s6975_s16  ;;  %1104 = vrot.lane.b32.xlu0 %v1057_v54, %s7009_s22  ;;  %v812_v50 = vpop.permute.xlu0 %811  ;;  %v5660_v59 = vpop.permute.xlu1 %725 }
 0x119   : > { %v456_v15 = vpop.f32.mrb[8].mxu0  ;;  %v5625_v16 = vpop.f32.mrb[8].mxu1 }
 0x11a   : > { %7049 = vst [vmem:[#allocation15_spill] sm:$0xff] %v5625_v16  ;;  %v698_v26 = vadd.f32 %v5331_v22, %v456_v15  ;;  %v5631_v28 = vpop.f32.mrb[9].mxu1  ;;  %v458_v29 = vpop.f32.mrb[9].mxu0  ;;  %v825_v16 = vadd.f32 %v812_v50, %v456_v15  ;;  %v903_v7 = vadd.f32 %v5508_v41, %v456_v15  ;;  %v981_v41 = vadd.f32 %v5512_v42, %v456_v15 }
 0x11b   : > { %7050 = vst [vmem:[#allocation16_spill] sm:$0xff] %v5631_v28 }
 0x11c   : > { %706 = vst.msk [vmem:[#allocation2 + $0x200] sm:$0xff] %vm700_vm1, %v698_v26  ;;  %1002 = vrot.lane.b32.xlu1 %v978_v57, %s7017_s14  ;;  %1213 = vrot.lane.b32.xlu0 %v1189_v0, %s6987_s13  ;;  %v1502_v26 = vadd.f32 %v5492_v37, %v5582_v13  ;;  %v1267_v57 = vadd.f32 %v5554_v61, %v5582_v13  ;;  %v1046_v61 = vpop.permute.xlu0 %1045  ;;  %v5674_v49 = vpop.permute.xlu1 %809 }
 0x11d   : > { %v5638_v33 = vpop.f32.mrb[10].mxu1  ;;  %v1064_v18 = vadd.f32 %v1046_v61, %v458_v29 }
 0x11e   : > { %v5640_v22 = vpop.f32.mrb[11].mxu1 }
 0x120   : > { %1369 = vrot.lane.b32.xlu0 %v1345_v34, %s6995_s23  ;;  %1106 = vrot.lane.b32.xlu1 %v1058_v35, %s7009_s22  ;;  %v1423_v34 = vadd.f32 %v5558_v63, %v5582_v13  ;;  %v741_v35 = vadd.f32 %v5504_v40, %v456_v15  ;;  %v1179_v40 = vpop.permute.xlu0 %1178  ;;  %v1063_v13 = vadd.f32 %v1046_v61, %v456_v15 }
 0x121   : > { %v599_v54 = vpop.f32.mrb[12].mxu1  ;;  %v1192_v50 = vadd.f32 %v1179_v40, %v458_v29 }
 0x122   : > { %v5654_v0 = vpop.f32.mrb[13].mxu1  ;;  %v1503_v15 = vadd.f32 %v5492_v37, %v599_v54  ;;  %v1868_v37 = vadd.f32 %v5500_v39, %v599_v54 }
 0x124   : > { %1549 = vrot.lane.b32.xlu0 %v1502_v26, %s7023_s10  ;;  %1291 = vrot.lane.b32.xlu1 %v1267_v57, %s7019_s30  ;;  %v1335_v31 = vpop.permute.xlu0 %1334 }
 0x125   : > { %v5658_v36 = vpop.f32.mrb[14].mxu1 }
 0x126   : > { %v5665_v28 = vpop.f32.mrb[15].mxu1 }
 0x128   : > { %1447 = vrot.lane.b32.xlu1 %v1423_v34, %s7025_s17  ;;  %769 = vrot.lane.b32.xlu0 %v741_v35, %s6979_s15  ;;  %v5682_v35 = vpop.permute.xlu1 %887  ;;  %s6997_s15 = smov 59  }
 0x129   : > { %v5669_v26 = vpop.f32.mrb[16].mxu1 }
 0x12a   : > { %v5671_v57 = vpop.f32.mrb[17].mxu1 }
 0x12c   : > { %851 = vrot.lane.b32.xlu1 %v825_v16, %s6975_s16  ;;  %929 = vrot.lane.b32.xlu0 %v903_v7, %s6977_s21  ;;  %v1270_v7 = vadd.f32 %v5516_v43, %v458_v29  ;;  %v1348_v16 = vadd.f32 %v1335_v31, %v458_v29  ;;  %v5688_v61 = vpop.permute.xlu1 %1043  ;;  %v1634_v43 = vadd.f32 %v5575_v9, %v599_v54  ;;  %s6991_s16 = smov 109   ;;  %s7001_s21 = smov 84  }
 0x12d   : > { %v617_v63 = vpop.f32.mrb[18].mxu1  ;;  %v1712_v31 = vadd.f32 %v5496_v38, %v599_v54  ;;  %v1947_v9 = vadd.f32 %v5633_v1, %v599_v54  ;;  %v1948_v38 = vadd.f32 %v5633_v1, %v5654_v0  ;;  %v1055_v1 = vadd.f32 %v5540_v52, %v5562_v3 }
 0x12e   : > { %v5678_v34 = vpop.f32.mrb[19].mxu1 }
 0x130   : > { %1113 = vrot.lane.b32.xlu1 %v1063_v13, %s7009_s22  ;;  %1115 = vrot.lane.b32.xlu0 %v1064_v18, %s7009_s22  ;;  %v1491_v18 = vpop.permute.xlu0 %1490  ;;  %v1426_v13 = vadd.f32 %v5520_v44, %v458_v29  ;;  %v5695_v42 = vpop.permute.xlu1 %965  ;;  %v1790_v44 = vadd.f32 %v5604_v32, %v599_v54  ;;  %v1637_v32 = vadd.f32 %v5524_v45, %v617_v63 }
 0x131   : > { %v1508_v11 = vadd.f32 %v1491_v18, %v458_v29  ;;  %v1509_v39 = vadd.f32 %v1491_v18, %v617_v63  ;;  %v1793_v54 = vadd.f32 %v5528_v46, %v617_v63 }
 0x134   : > { %1007 = vrot.lane.b32.xlu1 %v981_v41, %s7017_s14  ;;  %1218 = vrot.lane.b32.xlu0 %v1192_v50, %s6987_s13  ;;  %v5703_v29 = vpop.permute.xlu1 %1176  ;;  %v1702_v40 = vpop.permute.xlu0 %1701 }
 0x135   : > { %v1715_v50 = vadd.f32 %v1702_v40, %v617_v63 }
 0x138   : > { %1296 = vrot.lane.b32.xlu1 %v1270_v7, %s7019_s30  ;;  %1374 = vrot.lane.b32.xlu0 %v1348_v16, %s6995_s23  ;;  %v5727_v45 = vpop.permute.xlu0 %1935  ;;  %v1871_v7 = vadd.f32 %v5532_v47, %v617_v63  ;;  %v1188_v16 = vadd.f32 %v5542_v53, %v5568_v6  ;;  %v1056_v53 = vadd.f32 %v5540_v52, %v5568_v6 }
 0x139   : > { %v1953_v46 = vadd.f32 %v5727_v45, %v617_v63  ;;  %v1344_v63 = vadd.f32 %v5546_v56, %v5568_v6  ;;  %v1422_v56 = vadd.f32 %v5548_v58, %v5568_v6 }
 0x13c   : > { %1452 = vrot.lane.b32.xlu1 %v1426_v13, %s7025_s17  ;;  %1558 = vrot.lane.b32.xlu0 %v1508_v11, %s7023_s10  ;;  %v5713_v11 = vpop.permute.xlu1 %1254  ;;  %v977_v13 = vadd.f32 %v5538_v51, %v5562_v3  ;;  %v5759_v51 = vpop.f32.mrb[10].mxu0 }
 0x13d   : > { %v5765_v3 = vpop.f32.mrb[11].mxu0 }
 0x13e   : > { %v5767_v52 = vpop.f32.mrb[12].mxu0 }
 0x13f   : > { %703 = vst.msk [vmem:[#allocation3] sm:$0xff] %vm700_vm1, %v5767_v52 }
 0x140   : > { %1551 = vrot.lane.b32.xlu1 %v1503_v15, %s7023_s10  ;;  %1658 = vrot.lane.b32.xlu0 %v1634_v43, %s6991_s16  ;;  %v5719_v41 = vpop.permute.xlu1 %1332  ;;  %v1266_v15 = vadd.f32 %v5544_v55, %v5568_v6  ;;  %v5757_v43 = vld [vmem:[%s7040_s2 + $0x28] sm:$0xff]  ;;  %s7075_s2 = smov 81  }
 0x141   : > { %v699_v55 = vadd.f32 %v5757_v43, %v5759_v51 }
 0x143   : > { %710 = vst.msk [vmem:[#allocation2 + $0x280] sm:$0xff] %vm700_vm1, %v699_v55  ;;  %v1789_v55 = vadd.f32 %v5587_v20, %v5638_v33  ;;  %v902_v20 = vadd.f32 %v5682_v35, %v5609_v48 }
 0x144   : > { %1736 = vrot.lane.b32.xlu1 %v1712_v31, %s7001_s21  ;;  %1814 = vrot.lane.b32.xlu0 %v1790_v44, %s6997_s15  ;;  %v5729_v0 = vpop.permute.xlu1 %1488  ;;  %v5774_v31 = vpop.f32.mrb[13].mxu0 }
 0x148   : > { %1892 = vrot.lane.b32.xlu1 %v1868_v37, %s6999_s28  ;;  %1994 = vrot.lane.b32.xlu0 %v1947_v9, %s7021_s20  ;;  %v5738_v18 = vpop.permute.xlu1 %1621  ;;  %v5781_v37 = vpop.f32.mrb[14].mxu0  ;;  %v1501_v9 = vadd.f32 %v5552_v60, %v5638_v33 }
 0x149   : > { %704 = vst.msk [vmem:[#allocation3 + $0x8] sm:$0xff] %vm700_vm1, %v5781_v37  ;;  %v5785_v58 = vpop.f32.mrb[15].mxu0 }
 0x14c   : > { %1996 = vrot.lane.b32.xlu1 %v1948_v38, %s7021_s20  ;;  %1663 = vrot.lane.b32.xlu0 %v1637_v32, %s6991_s16  ;;  %v5748_v47 = vpop.permute.xlu1 %1699  ;;  %v5789_v38 = vpop.f32.mrb[16].mxu0 }
 0x14d   : > { %707 = vst.msk [vmem:[#allocation3 + $0x100] sm:$0xff] %vm700_vm1, %v5789_v38  ;;  %v5796_v32 = vpop.f32.mrb[17].mxu0 }
 0x150   : > { %1560 = vrot.lane.b32.xlu1 %v1509_v39, %s7023_s10  ;;  %1819 = vrot.lane.b32.xlu0 %v1793_v54, %s6997_s15  ;;  %v5776_v44 = vpop.permute.xlu1 %1777  ;;  %v5798_v39 = vpop.f32.mrb[18].mxu0 }
 0x151   : > { %708 = vst.msk [vmem:[#allocation3 + $0x108] sm:$0xff] %vm700_vm1, %v5798_v39 }
 0x154   : > { %1741 = vrot.lane.b32.xlu1 %v1715_v50, %s7001_s21  ;;  %1069 = vrot.lane.b32.xlu0 %v1055_v1, %s7009_s22  ;;  %v5800_v54 = vpop.permute.xlu1 %1933  ;;  %v1500_v50 = vadd.f32 %v5552_v60, %v5568_v6  ;;  %v5816_v1 = vpop.permute.xlu0 %1410  ;;  %v1633_v60 = vadd.f32 %v5556_v62, %v5638_v33  ;;  %v1945_v6 = vadd.f32 %v5646_v10, %v5638_v33 }
 0x158   : > { %2003 = vrot.lane.b32.xlu1 %v1953_v46, %s7021_s20  ;;  %885 = vrot.lane.b32.xlu0 %v5415_v27, %s6985_s11  ;;  %v5808_v40 = vpop.permute.xlu1 %1855  ;;  %s7051_s11 = smov 44  }
 0x15c   : > { %1897 = vrot.lane.b32.xlu1 %v1871_v7, %s6999_s28  ;;  %1195 = vrot.lane.b32.xlu0 %v1188_v16, %s6987_s13  ;;  %v5821_v46 = vpop.permute.xlu1 %723  ;;  %v5827_v7 = vpop.permute.xlu0 %807  ;;  %s7052_s13 = smov 69  }
 0x160   : > { %984 = vrot.lane.b32.xlu1 %v977_v13, %s7017_s14  ;;  %1273 = vrot.lane.b32.xlu0 %v1266_v15, %s7019_s30 }
 0x164   : > { %1071 = vrot.lane.b32.xlu1 %v1056_v53, %s7009_s22  ;;  %1351 = vrot.lane.b32.xlu0 %v1344_v63, %s6995_s23  ;;  %v1711_v53 = vadd.f32 %v5560_v2, %v5638_v33  ;;  %v5849_v2 = vpop.f32.mrb[19].mxu0  ;;  %s7056_s23 = smov 94  }
 0x168   : > { %963 = vrot.lane.b32.xlu1 %v5415_v27, %s7015_s12  ;;  %1429 = vrot.lane.b32.xlu0 %v1422_v56, %s7025_s17  ;;  %v740_v56 = vadd.f32 %v5660_v59, %v5609_v48  ;;  %v1946_v59 = vadd.f32 %v5646_v10, %v5640_v22 }
 0x16c   : > { %1041 = vrot.lane.b32.xlu1 %v5415_v27, %s7005_s8  ;;  %1516 = vrot.lane.b32.xlu0 %v1501_v9, %s7023_s10 }
 0x170   : > { %1174 = vrot.lane.b32.xlu1 %v5415_v27, %s7007_s18  ;;  %1408 = vrot.lane.b32.xlu0 %v5415_v27, %s7011_s29 }
 0x174   : > { %1252 = vrot.lane.b32.xlu1 %v5415_v27, %s7013_s19  ;;  %1486 = vrot.lane.b32.xlu0 %v5415_v27, %s7003_s9  ;;  %s7060_s9 = smov 106  }
 0x178   : > { %1514 = vrot.lane.b32.xlu1 %v1500_v50, %s7023_s10  ;;  %1619 = vrot.lane.b32.xlu0 %v5415_v27, %s6989_s27  ;;  %s7053_s27 = smov 103  }
 0x17c   : > { %1330 = vrot.lane.b32.xlu1 %v5415_v27, %s6993_s26  ;;  %1697 = vrot.lane.b32.xlu0 %v5415_v27, %s7051_s11  ;;  %s7055_s26 = smov 53  }
 0x17e   : > { %v745_v16 = vpop.permute.xlu1 %744 }
 0x17f   : > { %747 = vst.msk [vmem:[#allocation2 + $0x8] sm:$0xff] %vm700_vm1, %v745_v16  ;;  %v1867_v16 = vadd.f32 %v5620_v12, %v5638_v33  ;;  %v1062_v12 = vadd.f32 %v5688_v61, %v5616_v5 }
 0x180   : > { %1640 = vrot.lane.b32.xlu1 %v1633_v60, %s6991_s16  ;;  %1959 = vrot.lane.b32.xlu0 %v1945_v6, %s7021_s20  ;;  %s7054_s16 = smov 25  }
 0x182   : > { %v829_v13 = vpop.permute.xlu1 %828  ;;  %v765_v15 = vpop.permute.xlu0 %764 }
 0x183   : > { %831 = vst.msk [vmem:[#allocation2 + $0x10] sm:$0xff] %vm700_vm1, %v829_v13  ;;  %767 = vst.msk [vmem:[#allocation2 + $0x88] sm:$0xff] %vm700_vm1, %v765_v15  ;;  %v824_v15 = vadd.f32 %v5674_v49, %v5609_v48 }
 0x184   : > { %1718 = vrot.lane.b32.xlu1 %v1711_v53, %s7001_s21  ;;  %1775 = vrot.lane.b32.xlu0 %v5415_v27, %s7052_s13  ;;  %s7059_s21 = smov 78  }
 0x186   : > { %v907_v62 = vpop.permute.xlu1 %906  ;;  %v925_v63 = vpop.permute.xlu0 %924 }
 0x187   : > { %909 = vst.msk [vmem:[#allocation2 + $0x18] sm:$0xff] %vm700_vm1, %v907_v62  ;;  %927 = vst.msk [vmem:[#allocation2 + $0x98] sm:$0xff] %vm700_vm1, %v925_v63  ;;  %v1191_v63 = vadd.f32 %v5703_v29, %v5616_v5  ;;  %v980_v29 = vadd.f32 %v5695_v42, %v5609_v48 }
 0x188   : > { %1796 = vrot.lane.b32.xlu1 %v1789_v55, %s6997_s15  ;;  %749 = vrot.lane.b32.xlu0 %v740_v56, %s7053_s27  ;;  %s7057_s15 = smov 119  }
 0x18a   : > { %v847_v9 = vpop.permute.xlu1 %846  ;;  %v1105_v50 = vpop.permute.xlu0 %1104 }
 0x18b   : > { %849 = vst.msk [vmem:[#allocation2 + $0x90] sm:$0xff] %vm700_vm1, %v847_v9 }
 0x18c   : > { %1874 = vrot.lane.b32.xlu1 %v1867_v16, %s6999_s28  ;;  %729 = vrot.lane.b32.xlu0 %v5757_v43, %s7054_s16  ;;  %s7058_s28 = smov 75  }
 0x18e   : > { %v1003_v60 = vpop.permute.xlu1 %1002  ;;  %v1214_v6 = vpop.permute.xlu0 %1213 }
 0x18f   : > { %1005 = vst.msk [vmem:[#allocation2 + $0xa0] sm:$0xff] %vm700_vm1, %v1003_v60  ;;  %1216 = vst.msk [vmem:[#allocation2 + $0xb0] sm:$0xff] %vm700_vm1, %v1214_v6 }
 0x190   : > { %1961 = vrot.lane.b32.xlu1 %v1946_v59, %s7021_s20  ;;  %911 = vrot.lane.b32.xlu0 %v902_v20, %s7055_s26  ;;  %v1954_v59 = vadd.f32 %v5727_v45, %v5678_v34  ;;  %v1269_v34 = vadd.f32 %v5713_v11, %v5616_v5 }
 0x192   : > { %v1370_v33 = vpop.permute.xlu0 %1369  ;;  %v1107_v13 = vpop.permute.xlu1 %1106 }
 0x193   : > { %1372 = vst.msk [vmem:[#allocation2 + $0xc0] sm:$0xff] %vm700_vm1, %v1370_v33  ;;  %v1108_v22 = vsel %vm1073_vm2, %v1105_v50, %v1107_v13  ;;  %v2279_v50 = vld [vmem:[#allocation2 + $0x200] sm:$0xff] }
 0x194   : > { %1110 = vst.msk [vmem:[#allocation2 + $0xa8] sm:$0xff] %vm700_vm1, %v1108_v22  ;;  %1853 = vrot.lane.b32.xlu1 %v5415_v27, %s7056_s23  ;;  %1081 = vrot.lane.b32.xlu0 %v1062_v12, %s7009_s22 }
 0x196   : > { %v5875_v10 = vpop.permute.xlu0 %1549  ;;  %v1292_v35 = vpop.permute.xlu1 %1291 }
 0x197   : > { %1294 = vst.msk [vmem:[#allocation2 + $0xb8] sm:$0xff] %vm700_vm1, %v1292_v35 }
 0x198   : > { %1931 = vrot.lane.b32.xlu1 %v5415_v27, %s7057_s15  ;;  %891 = vrot.lane.b32.xlu0 %v5757_v43, %s7058_s28  ;;  %v1061_v27 = vadd.f32 %v5688_v61, %v5609_v48 }
 0x19a   : > { %v1448_v53 = vpop.permute.xlu1 %1447  ;;  %v770_v62 = vpop.permute.xlu0 %769 }
 0x19b   : > { %1450 = vst.msk [vmem:[#allocation2 + $0xc8] sm:$0xff] %vm700_vm1, %v1448_v53  ;;  %772 = vst.msk [vmem:[#allocation2 + $0x208] sm:$0xff] %vm700_vm1, %v770_v62  ;;  %v311_v62 = vld [vmem:[%s7043_s1 + $0x50] sm:$0xff]  ;;  %s7074_s1 = smov 6  }
 0x19c   : > { %833 = vrot.lane.b32.xlu1 %v824_v15, %s7059_s21  ;;  %1047 = vrot.lane.b32.xlu0 %v5757_v43, %s7005_s8  ;;  %s7061_s8 = smov 50  }
 0x19d   : > { %4241 = vmatmul.mubr.msk.f32.gmra.mrb[30].mxu1 %vm317_vm0, %v311_v62  ;;  %4225 = vmatmul.mubr.msk.f32.gmra.mrb[20].mxu0 %vm317_vm0, %v311_v62 }
 0x19e   : > { %v852_v55 = vpop.permute.xlu1 %851  ;;  %v930_v56 = vpop.permute.xlu0 %929 }
 0x19f   : > { %854 = vst.msk [vmem:[#allocation2 + $0x210] sm:$0xff] %vm700_vm1, %v852_v55  ;;  %932 = vst.msk [vmem:[#allocation2 + $0x218] sm:$0xff] %vm700_vm1, %v930_v56  ;;  %v7062_v56 = vmov 0.0  }
 0x1a0   : > { %1079 = vrot.lane.b32.xlu1 %v1061_v27, %s7009_s22  ;;  %1200 = vrot.lane.b32.xlu0 %v1191_v63, %s7060_s9  ;;  %s7064_s22 = smov 84  }
 0x1a1   : > { %657 = vmatprep.mubr.f32.mxu1 %v7062_v56 }
 0x1a2   : > { %v1114_v49 = vpop.permute.xlu1 %1113  ;;  %v1116_v9 = vpop.permute.xlu0 %1115  ;;  %v2280_v16 = vld [vmem:[#allocation2 + $0x208] sm:$0xff]  ;;  %4242 = vmatmul.mubr.msk.f32.gmra.mrb[32].mxu1 %vm317_vm0, %v5268_v14  ;;  %v1507_v14 = vadd.f32 %v5729_v0, %v5669_v26 }
 0x1a3   : > { %v1117_v20 = vsel %vm1073_vm2, %v1114_v49, %v1116_v9  ;;  %v4854_v61 = vpack.c.bf16 %v2280_v16, %v2279_v50  ;;  %v1425_v50 = vadd.f32 %v5816_v1, %v5616_v5  ;;  %663 = vmatprep.mubr.f32.mxu1 %v7062_v56 }
 0x1a4   : > { %1119 = vst.msk [vmem:[#allocation2 + $0x228] sm:$0xff] %vm700_vm1, %v1117_v20  ;;  %813 = vrot.lane.b32.xlu1 %v5757_v43, %s7061_s8  ;;  %1180 = vrot.lane.b32.xlu0 %v5757_v43, %s7007_s18  ;;  %s7063_s18 = smov 122  }
 0x1a5   : > { %4855 = vmatprep.subr.bf16.mxu1 %v4854_v61 }
 0x1a6   : > { %v1008_v60 = vpop.permute.xlu1 %1007  ;;  %4857 = vmatpush3.bf16.msra.mxu1 %v4854_v61  ;;  %v1219_v6 = vpop.permute.xlu0 %1218  ;;  %v2281_v12 = vld [vmem:[#allocation2 + $0x210] sm:$0xff]  ;;  %v2282_v33 = vld [vmem:[#allocation2 + $0x218] sm:$0xff] }
 0x1a7   : > { %1010 = vst.msk [vmem:[#allocation2 + $0x220] sm:$0xff] %vm700_vm1, %v1008_v60  ;;  %1221 = vst.msk [vmem:[#allocation2 + $0x230] sm:$0xff] %vm700_vm1, %v1219_v6  ;;  %v4858_v13 = vpack.c.bf16 %v2282_v33, %v2281_v12  ;;  %4243 = vmatmul.mubr.msk.f32.gmra.mrb[34].mxu1 %vm317_vm0, %v5285_v17 }
 0x1a8   : > { %989 = vrot.lane.b32.xlu1 %v980_v29, %s7017_s14  ;;  %2005 = vrot.lane.b32.xlu0 %v1954_v59, %s7021_s20 }
 0x1a9   : > { %4859 = vmatprep.subr.bf16.mxu1 %v4858_v13  ;;  %669 = vmatprep.mubr.f32.mxu1 %v7062_v56 }
 0x1aa   : > { %4861 = vmatpush3.bf16.msra.mxu1 %v4858_v13  ;;  %v1297_v48 = vpop.permute.xlu1 %1296  ;;  %v1375_v42 = vpop.permute.xlu0 %1374 }
 0x1ab   : > { %1299 = vst.msk [vmem:[#allocation2 + $0x238] sm:$0xff] %vm700_vm1, %v1297_v48  ;;  %1377 = vst.msk [vmem:[#allocation2 + $0x240] sm:$0xff] %vm700_vm1, %v1375_v42  ;;  %v2284_v15 = vld [vmem:[#allocation2 + $0x228] sm:$0xff]  ;;  %4244 = vmatmul.mubr.msk.f32.gmra.mrb[36].mxu1 %vm317_vm0, %v5302_v19  ;;  %v5962_v13 = vpop.f32.mrb[20].mxu1  ;;  %v2263_v48 = vld [vmem:[#allocation2 + $0x80] sm:$0xff] }
 0x1ac   : > { %969 = vrot.lane.b32.xlu1 %v5757_v43, %s7015_s12  ;;  %675 = vmatprep.mubr.f32.mxu1 %v7062_v56  ;;  %v5964_v42 = vpop.f32.mrb[21].mxu1  ;;  %s7067_s12 = smov 59  }
 0x1ae   : > { %v1453_v45 = vpop.permute.xlu1 %1452  ;;  %v1559_v22 = vpop.permute.xlu0 %1558  ;;  %v2283_v35 = vld [vmem:[#allocation2 + $0x220] sm:$0xff]  ;;  %v2285_v63 = vld [vmem:[#allocation2 + $0x230] sm:$0xff] }
 0x1af   : > { %1455 = vst.msk [vmem:[#allocation2 + $0x248] sm:$0xff] %vm700_vm1, %v1453_v45  ;;  %v4862_v53 = vpack.c.bf16 %v2284_v15, %v2283_v35  ;;  %4245 = vmatmul.mubr.msk.f32.gmra.mrb[38].mxu1 %vm317_vm0, %v5319_v21  ;;  %v1714_v21 = vadd.f32 %v5748_v47, %v5669_v26  ;;  %v2264_v15 = vld [vmem:[#allocation2 + $0x88] sm:$0xff] }
 0x1b0   : > { %1278 = vrot.lane.b32.xlu1 %v1269_v34, %s7019_s30  ;;  %681 = vmatprep.mubr.f32.mxu1 %v7062_v56 }
 0x1b1   : > { %4863 = vmatprep.subr.bf16.mxu1 %v4862_v53 }
 0x1b2   : > { %v1552_v27 = vpop.permute.xlu1 %1551  ;;  %4865 = vmatpush3.bf16.msra.mxu1 %v4862_v53  ;;  %v1659_v11 = vpop.permute.xlu0 %1658  ;;  %v2286_v55 = vld [vmem:[#allocation2 + $0x238] sm:$0xff]  ;;  %v2287_v20 = vld [vmem:[#allocation2 + $0x240] sm:$0xff] }
 0x1b3   : > { %v1553_v49 = vsel %vm1518_vm3, %v5875_v10, %v1552_v27  ;;  %1661 = vst.msk [vmem:[#allocation2 + $0xd8] sm:$0xff] %vm700_vm1, %v1659_v11  ;;  %v4866_v9 = vpack.c.bf16 %v2286_v55, %v2285_v63  ;;  %4246 = vmatmul.mubr.msk.f32.gmra.mrb[40].mxu1 %vm317_vm0, %v5341_v24  ;;  %v1951_v24 = vadd.f32 %v5800_v54, %v5669_v26 }
 0x1b4   : > { %1555 = vst.msk [vmem:[#allocation2 + $0xd0] sm:$0xff] %vm700_vm1, %v1553_v49  ;;  %1258 = vrot.lane.b32.xlu1 %v5757_v43, %s7013_s19  ;;  %s7066_s19 = smov 3  }
 0x1b5   : > { %4867 = vmatprep.subr.bf16.mxu1 %v4866_v9 }
 0x1b6   : > { %v1737_v16 = vpop.permute.xlu1 %1736  ;;  %4869 = vmatpush3.bf16.msra.mxu1 %v4866_v9  ;;  %v1815_v10 = vpop.permute.xlu0 %1814  ;;  %v2288_v61 = vld [vmem:[#allocation2 + $0x248] sm:$0xff]  ;;  %v2265_v9 = vld [vmem:[#allocation2 + $0x90] sm:$0xff] }
 0x1b7   : > { %1739 = vst.msk [vmem:[#allocation2 + $0xe0] sm:$0xff] %vm700_vm1, %v1737_v16  ;;  %1817 = vst.msk [vmem:[#allocation2 + $0xe8] sm:$0xff] %vm700_vm1, %v1815_v10  ;;  %v4870_v29 = vpack.c.bf16 %v2288_v61, %v2287_v20 }
 0x1b8   : > { %1434 = vrot.lane.b32.xlu1 %v1425_v50, %s7025_s17 }
 0x1b9   : > { %4871 = vmatprep.subr.bf16.mxu1 %v4870_v29 }
 0x1ba   : > { %v1893_v1 = vpop.permute.xlu1 %1892  ;;  %4873 = vmatpush3.bf16.msra.mxu1 %v4870_v29  ;;  %v1995_v59 = vpop.permute.xlu0 %1994 }
 0x1bb   : > { %1895 = vst.msk [vmem:[#allocation2 + $0xf0] sm:$0xff] %vm700_vm1, %v1893_v1  ;;  %v1870_v1 = vadd.f32 %v5808_v40, %v5669_v26  ;;  %v2268_v40 = vld [vmem:[#allocation2 + $0xa8] sm:$0xff] }
 0x1bc   : > { %1526 = vrot.lane.b32.xlu1 %v1507_v14, %s7023_s10  ;;  %v2266_v14 = vld [vmem:[#allocation2 + $0x98] sm:$0xff] }
 0x1be   : > { %v1997_v60 = vpop.permute.xlu1 %1996  ;;  %v1664_v6 = vpop.permute.xlu0 %1663 }
 0x1bf   : > { %v1998_v17 = vsel %vm1963_vm4, %v1995_v59, %v1997_v60  ;;  %1666 = vst.msk [vmem:[#allocation2 + $0x258] sm:$0xff] %vm700_vm1, %v1664_v6 }
 0x1c0   : > { %2000 = vst.msk [vmem:[#allocation2 + $0xf8] sm:$0xff] %vm700_vm1, %v1998_v17  ;;  %1414 = vrot.lane.b32.xlu1 %v5757_v43, %s7011_s29  ;;  %s7065_s29 = smov 34   ;;  %v2267_v17 = vld [vmem:[#allocation2 + $0xa0] sm:$0xff] }
 0x1c2   : > { %v1561_v12 = vpop.permute.xlu1 %1560  ;;  %v1820_v33 = vpop.permute.xlu0 %1819 }
 0x1c3   : > { %v1562_v19 = vsel %vm1518_vm3, %v1559_v22, %v1561_v12  ;;  %1822 = vst.msk [vmem:[#allocation2 + $0x268] sm:$0xff] %vm700_vm1, %v1820_v33  ;;  %v5971_v22 = vpop.f32.mrb[22].mxu1 }
 0x1c4   : > { %1564 = vst.msk [vmem:[#allocation2 + $0x250] sm:$0xff] %vm700_vm1, %v1562_v19  ;;  %1492 = vrot.lane.b32.xlu1 %v5757_v43, %s7063_s18  ;;  %v5974_v35 = vpop.f32.mrb[23].mxu1 }
 0x1c5   : > { %v5976_v53 = vpop.f32.mrb[24].mxu1 }
 0x1c6   : > { %v1742_v34 = vpop.permute.xlu1 %1741  ;;  %2295 = vxpose.xlu0.b32.start [1/16] (narrow) %v2263_v48, 32  ;;  %v1070_v45 = vpop.permute.xlu0 %1069  ;;  %v2290_v11 = vld [vmem:[#allocation2 + $0x258] sm:$0xff]  ;;  %v823_v48 = vadd.f32 %v5827_v7, %v5592_v23 }
 0x1c7   : > { %1744 = vst.msk [vmem:[#allocation2 + $0x260] sm:$0xff] %vm700_vm1, %v1742_v34  ;;  %v5982_v63 = vpop.f32.mrb[25].mxu1 }
 0x1c8   : > { %1723 = vrot.lane.b32.xlu1 %v1714_v21, %s7064_s22  ;;  %v5985_v49 = vpop.f32.mrb[26].mxu1 }
 0x1c9   : > { %v5991_v29 = vpop.f32.mrb[27].mxu1 }
 0x1ca   : > { %v5980_v62 = vpop.permute.xlu1 %2003  ;;  %2296 = vxpose.xlu0.b32.cont [2/16] (narrow) %v2264_v15, 32  ;;  %v886_v47 = vpop.permute.xlu0 %885  ;;  %v2292_v20 = vld [vmem:[#allocation2 + $0x268] sm:$0xff]  ;;  %v2269_v15 = vld [vmem:[#allocation2 + $0xb0] sm:$0xff] }
 0x1cb   : > { %v2289_v27 = vld [vmem:[#allocation2 + $0x250] sm:$0xff]  ;;  %v5997_v6 = vpop.f32.mrb[28].mxu1 }
 0x1cc   : > { %1969 = vrot.lane.b32.xlu1 %v1951_v24, %s7021_s20  ;;  %v4874_v55 = vpack.c.bf16 %v2290_v11, %v2289_v27  ;;  %v2270_v11 = vld [vmem:[#allocation2 + $0xb8] sm:$0xff] }
 0x1ce   : > { %v1898_v50 = vpop.permute.xlu1 %1897  ;;  %2297 = vxpose.xlu0.b32.cont [3/16] (narrow) %v2265_v9, 32  ;;  %4875 = vmatprep.subr.bf16.mxu1 %v4874_v55  ;;  %v1196_v16 = vpop.permute.xlu0 %1195  ;;  %v2291_v10 = vld [vmem:[#allocation2 + $0x260] sm:$0xff] }
 0x1cf   : > { %1900 = vst.msk [vmem:[#allocation2 + $0x270] sm:$0xff] %vm700_vm1, %v1898_v50  ;;  %1198 = vst.msk [vmem:[#allocation2 + $0x30] sm:$0xff] %vm700_vm1, %v1196_v16  ;;  %4877 = vmatpush3.bf16.msra.mxu1 %v4874_v55  ;;  %v4878_v61 = vpack.c.bf16 %v2292_v20, %v2291_v10  ;;  %v2271_v16 = vld [vmem:[#allocation2 + $0xc0] sm:$0xff] }
 0x1d0   : > { %1703 = vrot.lane.b32.xlu1 %v5757_v43, %s7051_s11 }
 0x1d1   : > { %4879 = vmatprep.subr.bf16.mxu1 %v4878_v61 }
 0x1d2   : > { %v985_v59 = vpop.permute.xlu1 %984  ;;  %2298 = vxpose.xlu0.b32.cont [4/16] (narrow) %v2266_v14, 32  ;;  %v1274_v60 = vpop.permute.xlu0 %1273  ;;  %v2272_v14 = vld [vmem:[#allocation2 + $0xc8] sm:$0xff] }
 0x1d3   : > { %987 = vst.msk [vmem:[#allocation2 + $0x20] sm:$0xff] %vm700_vm1, %v985_v59  ;;  %1276 = vst.msk [vmem:[#allocation2 + $0x38] sm:$0xff] %vm700_vm1, %v1274_v60  ;;  %4881 = vmatpush3.bf16.msra.mxu1 %v4878_v61 }
 0x1d4   : > { %1879 = vrot.lane.b32.xlu1 %v1870_v1, %s7065_s29 }
 0x1d6   : > { %v1072_v12 = vpop.permute.xlu1 %1071  ;;  %2299 = vxpose.xlu0.b32.cont [5/16] (narrow) %v2267_v17, 32  ;;  %v1352_v33 = vpop.permute.xlu0 %1351  ;;  %v2273_v17 = vld [vmem:[#allocation2 + $0xd0] sm:$0xff] }
 0x1d7   : > { %v1074_v19 = vsel %vm1073_vm2, %v1070_v45, %v1072_v12  ;;  %1354 = vst.msk [vmem:[#allocation2 + $0x40] sm:$0xff] %vm700_vm1, %v1352_v33  ;;  %v901_v45 = vadd.f32 %v886_v47, %v5592_v23 }
 0x1d8   : > { %1076 = vst.msk [vmem:[#allocation2 + $0x28] sm:$0xff] %vm700_vm1, %v1074_v19  ;;  %1859 = vrot.lane.b32.xlu1 %v5757_v43, %s7056_s23  ;;  %v2274_v19 = vld [vmem:[#allocation2 + $0xd8] sm:$0xff] }
 0x1da   : > { %v964_v21 = vpop.permute.xlu1 %963  ;;  %2300 = vxpose.xlu0.b32.cont [6/16] (narrow) %v2268_v40, 32  ;;  %v1430_v34 = vpop.permute.xlu0 %1429 }
 0x1db   : > { %1432 = vst.msk [vmem:[#allocation2 + $0x48] sm:$0xff] %vm700_vm1, %v1430_v34  ;;  %v979_v55 = vadd.f32 %v964_v21, %v5592_v23  ;;  %v2275_v21 = vld [vmem:[#allocation2 + $0xe0] sm:$0xff] }
 0x1dc   : > { %864 = vrot.lane.b32.xlu1 %v823_v48, %s7059_s21 }
 0x1de   : > { %v6010_v24 = vpop.permute.xlu1 %1041  ;;  %2301 = vxpose.xlu0.b32.cont [7/16] (narrow) %v2269_v15, 32  ;;  %v1517_v27 = vpop.permute.xlu0 %1516 }
 0x1df   : > { %v1060_v47 = vadd.f32 %v6010_v24, %v5600_v30 }
 0x1e0   : > { %942 = vrot.lane.b32.xlu1 %v901_v45, %s7055_s26  ;;  %v2276_v45 = vld [vmem:[#allocation2 + $0xe8] sm:$0xff] }
 0x1e2   : > { %v6014_v7 = vpop.permute.xlu1 %1174  ;;  %2302 = vxpose.xlu0.b32.cont [8/16] (narrow) %v2270_v11, 32  ;;  %v1409_v9 = vpop.permute.xlu0 %1408 }
 0x1e3   : > { %v6017_v50 = vadd.f32 %v1409_v9, %v5600_v30 }
 0x1e4   : > { %1020 = vrot.lane.b32.xlu1 %v979_v55, %s7017_s14  ;;  %v2277_v55 = vld [vmem:[#allocation2 + $0xf0] sm:$0xff] }
 0x1e6   : > { %v6022_v10 = vpop.permute.xlu1 %1252  ;;  %2303 = vxpose.xlu0.b32.cont [9/16] (narrow) %v2271_v16, 32  ;;  %v1487_v20 = vpop.permute.xlu0 %1486 }
 0x1e7   : > { %v6025_v61 = vadd.f32 %v1487_v20, %v5600_v30  ;;  %v1505_v9 = vadd.f32 %v1487_v20, %v5658_v36 }
 0x1e8   : > { %1140 = vrot.lane.b32.xlu1 %v1060_v47, %s7066_s19 }
 0x1ea   : > { %v1515_v1 = vpop.permute.xlu1 %1514  ;;  %2304 = vxpose.xlu0.b32.cont [10/16] (narrow) %v2272_v14, 32  ;;  %v6028_v59 = vpop.permute.xlu0 %1619  ;;  %v2278_v14 = vld [vmem:[#allocation2 + $0xf8] sm:$0xff] }
 0x1eb   : > { %v1519_v60 = vsel %vm1518_vm3, %v1515_v1, %v1517_v27 }
 0x1ec   : > { %1521 = vst.msk [vmem:[#allocation2 + $0x50] sm:$0xff] %vm700_vm1, %v1519_v60  ;;  %857 = vrot.lane.b32.xlu1 %v5798_v39, %s7059_s21 }
 0x1ee   : > { %v6034_v12 = vpop.permute.xlu1 %1330  ;;  %2305 = vxpose.xlu0.b32.cont [11/16] (narrow) %v2273_v17, 32  ;;  %v1698_v33 = vpop.permute.xlu0 %1697  ;;  %v2076_v17 = vld [vmem:[#allocation2 + $0x180] sm:$0xff] }
 0x1f0   : > { %933 = vrot.lane.b32.xlu1 %v5789_v38, %s7055_s26 }
 0x1f2   : > { %v1641_v40 = vpop.permute.xlu1 %1640  ;;  %2306 = vxpose.xlu0.b32.cont [12/16] (narrow) %v2274_v19, 32  ;;  %v1960_v48 = vpop.permute.xlu0 %1959 }
 0x1f3   : > { %1643 = vst.msk [vmem:[#allocation2 + $0x58] sm:$0xff] %vm700_vm1, %v1641_v40 }
 0x1f4   : > { %935 = vrot.lane.b32.xlu1 %v5798_v39, %s7055_s26 }
 0x1f6   : > { %v1719_v34 = vpop.permute.xlu1 %1718  ;;  %2307 = vxpose.xlu0.b32.cont [13/16] (narrow) %v2275_v21, 32  ;;  %v1776_v15 = vpop.permute.xlu0 %1775 }
 0x1f7   : > { %1721 = vst.msk [vmem:[#allocation2 + $0x60] sm:$0xff] %vm700_vm1, %v1719_v34 }
 0x1f8   : > { %1011 = vrot.lane.b32.xlu1 %v5789_v38, %s7017_s14 }
 0x1fa   : > { %v1797_v27 = vpop.permute.xlu1 %1796  ;;  %2308 = vxpose.xlu0.b32.cont [14/16] (narrow) %v2276_v45, 32  ;;  %v750_v11 = vpop.permute.xlu0 %749  ;;  %v1713_v45 = vadd.f32 %v1698_v33, %v5658_v36 }
 0x1fb   : > { %1799 = vst.msk [vmem:[#allocation2 + $0x68] sm:$0xff] %vm700_vm1, %v1797_v27  ;;  %752 = vst.msk [vmem:[#allocation2 + $0x188] sm:$0xff] %vm700_vm1, %v750_v11  ;;  %v1791_v11 = vadd.f32 %v1776_v15, %v5658_v36 }
 0x1fc   : > { %1013 = vrot.lane.b32.xlu1 %v5798_v39, %s7017_s14  ;;  %s7068_s14 = smov 56  }
 0x1fe   : > { %v1875_v16 = vpop.permute.xlu1 %1874  ;;  %2309 = vxpose.xlu0.b32.cont [15/16] (narrow) %v2277_v55, 32  ;;  %v730_v47 = vpop.permute.xlu0 %729 }
 0x1ff   : > { %1877 = vst.msk [vmem:[#allocation2 + $0x70] sm:$0xff] %vm700_vm1, %v1875_v16 }
 0x200   : > { %1585 = vrot.lane.b32.xlu1 %v1505_v9, %s7023_s10 }
 0x202   : > { %v1962_v1 = vpop.permute.xlu1 %1961  ;;  %2310 = vxpose.xlu0.b32.end [16/16] (narrow) %v2278_v14, 32  ;;  %v912_v60 = vpop.permute.xlu0 %911  ;;  %v2077_v19 = vld [vmem:[#allocation2 + $0x188] sm:$0xff] }
 0x203   : > { %v1964_v40 = vsel %vm1963_vm4, %v1960_v48, %v1962_v1  ;;  %914 = vst.msk [vmem:[#allocation2 + $0x198] sm:$0xff] %vm700_vm1, %v912_v60  ;;  %v4822_v21 = vpack.c.bf16 %v2077_v19, %v2076_v17 }
 0x204   : > { %1966 = vst.msk [vmem:[#allocation2 + $0x78] sm:$0xff] %vm700_vm1, %v1964_v40  ;;  %1124 = vrot.lane.b32.xlu1 %v5796_v32, %s7066_s19 }
 0x205   : > { %4823 = vmatprep.subr.bf16.mxu0 %v4822_v21 }
 0x206   : > { %v1854_v20 = vpop.permute.xlu1 %1853  ;;  %4825 = vmatpush3.bf16.msra.mxu0 %v4822_v21  ;;  %v1082_v34 = vpop.permute.xlu0 %1081 }
 0x207   : > { %v1869_v16 = vadd.f32 %v1854_v20, %v5658_v36 }
 0x208   : > { %1128 = vrot.lane.b32.xlu1 %v5849_v2, %s7066_s19 }
 0x20a   : > { %v6059_v27 = vpop.permute.xlu1 %1931  ;;  %v892_v48 = vpop.permute.xlu0 %891  ;;  %v2079_v40 = vld [vmem:[#allocation2 + $0x198] sm:$0xff] }
 0x20b   : > { %v1950_v15 = vadd.f32 %v6059_v27, %v5665_v28  ;;  %v742_v28 = vadd.f32 %v730_v47, %v5759_v51 }
 0x20c   : > { %1754 = vrot.lane.b32.xlu1 %v1713_v45, %s7064_s22 }
 0x20e   : > { %v834_v55 = vpop.permute.xlu1 %833  ;;  %v6063_v9 = vpop.permute.xlu0 %1047 }
 0x20f   : > { %836 = vst.msk [vmem:[#allocation2 + $0x190] sm:$0xff] %vm700_vm1, %v834_v55 }
 0x210   : > { %1832 = vrot.lane.b32.xlu1 %v1791_v11, %s7067_s12  ;;  %v6080_v11 = vpop.f32.mrb[29].mxu1 }
 0x212   : > { %v1080_v14 = vpop.permute.xlu1 %1079  ;;  %v1201_v1 = vpop.permute.xlu0 %1200 }
 0x213   : > { %v1083_v33 = vsel %vm1073_vm2, %v1080_v14, %v1082_v34  ;;  %1203 = vst.msk [vmem:[#allocation2 + $0x1b0] sm:$0xff] %vm700_vm1, %v1201_v1 }
 0x214   : > { %1085 = vst.msk [vmem:[#allocation2 + $0x1a8] sm:$0xff] %vm700_vm1, %v1083_v33  ;;  %1910 = vrot.lane.b32.xlu1 %v1869_v16, %s7065_s29 }
 0x216   : > { %v814_v60 = vpop.permute.xlu1 %813  ;;  %v6074_v17 = vpop.permute.xlu0 %1180  ;;  %v2078_v19 = vld [vmem:[#allocation2 + $0x190] sm:$0xff] }
 0x217   : > { %v4826_v21 = vpack.c.bf16 %v2079_v40, %v2078_v19  ;;  %v826_v47 = vadd.f32 %v814_v60, %v5759_v51  ;;  %v904_v60 = vadd.f32 %v892_v48, %v5759_v51  ;;  %v1065_v48 = vadd.f32 %v6063_v9, %v5759_v51 }
 0x218   : > { %2030 = vrot.lane.b32.xlu1 %v1950_v15, %s7021_s20  ;;  %v2293_v15 = vld [vmem:[#allocation2 + $0x270] sm:$0xff]  ;;  %s7070_s20 = smov 109  }
 0x219   : > { %4827 = vmatprep.subr.bf16.mxu0 %v4826_v21 }
 0x21a   : > { %v990_v20 = vpop.permute.xlu1 %989  ;;  %4829 = vmatpush3.bf16.msra.mxu0 %v4826_v21  ;;  %v2006_v34 = vpop.permute.xlu0 %2005  ;;  %v1347_v21 = vadd.f32 %v5719_v41, %v5616_v5 }
 0x21b   : > { %992 = vst.msk [vmem:[#allocation2 + $0x1a0] sm:$0xff] %vm700_vm1, %v990_v20  ;;  %v2007_v45 = vsel %vm1963_vm4, %v5980_v62, %v2006_v34  ;;  %v2081_v1 = vld [vmem:[#allocation2 + $0x1a8] sm:$0xff]  ;;  %v2082_v34 = vld [vmem:[#allocation2 + $0x1b0] sm:$0xff] }
 0x21c   : > { %2009 = vst.msk [vmem:[#allocation2 + $0x278] sm:$0xff] %vm700_vm1, %v2007_v45  ;;  %1302 = vrot.lane.b32.xlu1 %v5849_v2, %s7019_s30  ;;  %s7069_s30 = smov 72  }
 0x21e   : > { %v970_v55 = vpop.permute.xlu1 %969 }
 0x220   : > { %789 = vrot.lane.b32.xlu1 %v742_v28, %s7053_s27 }
 0x222   : > { %v1279_v16 = vpop.permute.xlu1 %1278  ;;  %v2080_v14 = vld [vmem:[#allocation2 + $0x1a0] sm:$0xff] }
 0x223   : > { %1281 = vst.msk [vmem:[#allocation2 + $0x1b8] sm:$0xff] %vm700_vm1, %v1279_v16  ;;  %v4830_v33 = vpack.c.bf16 %v2081_v1, %v2080_v14  ;;  %v2294_v62 = vld [vmem:[#allocation2 + $0x278] sm:$0xff]  ;;  %v1506_v16 = vadd.f32 %v5729_v0, %v5616_v5  ;;  %v1636_v5 = vadd.f32 %v5738_v18, %v5669_v26  ;;  %v1792_v18 = vadd.f32 %v5776_v44, %v5669_v26 }
 0x224   : > { %1378 = vrot.lane.b32.xlu1 %v5796_v32, %s7068_s14  ;;  %v4882_v19 = vpack.c.bf16 %v2294_v62, %v2293_v15  ;;  %v1952_v62 = vadd.f32 %v5800_v54, %v5671_v57  ;;  %v739_v54 = vadd.f32 %v5821_v46, %v5592_v23  ;;  %v1193_v46 = vadd.f32 %v6074_v17, %v5765_v3 }
 0x225   : > { %4831 = vmatprep.subr.bf16.mxu0 %v4830_v33 }
 0x226   : > { %v6090_v40 = vpop.permute.xlu1 %1258  ;;  %4833 = vmatpush3.bf16.msra.mxu0 %v4830_v33  ;;  %4883 = vmatprep.subr.bf16.mxu1 %v4882_v19  ;;  %v1066_v33 = vadd.f32 %v6063_v9, %v5765_v3 }
 0x227   : > { %4885 = vmatpush3.bf16.msra.mxu1 %v4882_v19  ;;  %v982_v19 = vadd.f32 %v970_v55, %v5759_v51 }
 0x228   : > { %1380 = vrot.lane.b32.xlu1 %v5849_v2, %s7068_s14 }
 0x22a   : > { %v1435_v20 = vpop.permute.xlu1 %1434  ;;  %v2083_v45 = vld [vmem:[#allocation2 + $0x1b8] sm:$0xff] }
 0x22b   : > { %1437 = vst.msk [vmem:[#allocation2 + $0x1c8] sm:$0xff] %vm700_vm1, %v1435_v20  ;;  %1356 = vrot.lane.b32.xlu0 %v1347_v21, %s7068_s14  ;;  %v4834_v28 = vpack.c.bf16 %v2083_v45, %v2082_v34  ;;  %v1059_v45 = vadd.f32 %v6010_v24, %v5592_v23  ;;  %v1190_v23 = vadd.f32 %v6014_v7, %v5600_v30 }
 0x22c   : > { %869 = vrot.lane.b32.xlu1 %v826_v47, %s7059_s21 }
 0x22d   : > { %4835 = vmatprep.subr.bf16.mxu0 %v4834_v28 }
 0x22e   : > { %v6103_v14 = vpop.permute.xlu1 %1526  ;;  %4837 = vmatpush3.bf16.msra.mxu0 %v4834_v28  ;;  %v1271_v28 = vadd.f32 %v6090_v40, %v5765_v3  ;;  %v1268_v40 = vadd.f32 %v6022_v10, %v5600_v30 }
 0x22f   : > { %1524 = vrot.lane.b32.xlu0 %v1506_v16, %s7023_s10  ;;  %s7071_s10 = smov 19  }
 0x230   : > { %947 = vrot.lane.b32.xlu1 %v904_v60, %s7055_s26 }
 0x232   : > { %v6107_v41 = vpop.permute.xlu1 %1414 }
 0x233   : > { %1336 = vrot.lane.b32.xlu0 %v5757_v43, %s7069_s30 }
 0x234   : > { %1456 = vrot.lane.b32.xlu1 %v5796_v32, %s7025_s17 }
 0x236   : > { %v6115_v0 = vpop.permute.xlu1 %1492 }
 0x237   : > { %1645 = vrot.lane.b32.xlu0 %v1636_v5, %s7070_s20  ;;  %v1346_v5 = vadd.f32 %v6034_v12, %v5600_v30  ;;  %v1635_v12 = vadd.f32 %v6028_v59, %v5658_v36 }
 0x238   : > { %1458 = vrot.lane.b32.xlu1 %v5849_v2, %s7025_s17  ;;  %s7072_s17 = smov 9  }
 0x23a   : > { %v1724_v1 = vpop.permute.xlu1 %1723 }
 0x23b   : > { %1726 = vst.msk [vmem:[#allocation2 + $0x1e0] sm:$0xff] %vm700_vm1, %v1724_v1  ;;  %1625 = vrot.lane.b32.xlu0 %v5757_v43, %s7071_s10 }
 0x23c   : > { %1147 = vrot.lane.b32.xlu1 %v1065_v48, %s7066_s19 }
 0x23e   : > { %v6130_v15 = vpop.permute.xlu1 %1969 }
 0x23f   : > { %1801 = vrot.lane.b32.xlu0 %v1792_v18, %s7067_s12 }
 0x240   : > { %1149 = vrot.lane.b32.xlu1 %v1066_v33, %s7066_s19 }
 0x242   : > { %v6137_v47 = vpop.permute.xlu1 %1703 }
 0x243   : > { %1971 = vrot.lane.b32.xlu0 %v1952_v62, %s7072_s17 }
 0x244   : > { %1025 = vrot.lane.b32.xlu1 %v982_v19, %s7073_s0 }
 0x246   : > { %v1880_v26 = vpop.permute.xlu1 %1879  ;;  %v2311_v44 = vpop.trf.xlu0 }
 0x247   : > { %1882 = vst.msk [vmem:[#allocation2 + $0x1f0] sm:$0xff] %vm700_vm1, %v1880_v26  ;;  %1781 = vrot.lane.b32.xlu0 %v5757_v43, %s7052_s13  ;;  %4602 = vmatprep.mubr.f32.mxu1 %v2311_v44 }
 0x248   : > { %1567 = vrot.lane.b32.xlu1 %v5796_v32, %s7074_s1 }
 0x24a   : > { %v6146_v57 = vpop.permute.xlu1 %1859  ;;  %v2312_v51 = vpop.trf.xlu0 }
 0x24b   : > { %1937 = vrot.lane.b32.xlu0 %v5757_v43, %s7057_s15  ;;  %4603 = vmatmul.mubr.f32.vlgmr.msra.gmra.mrb[42].mxu1 %v2312_v51  ;;  %v2435_v43 = vld [vmem:[#allocation3 + $0x100] sm:$0xff] }
 0x24c   : > { %1569 = vrot.lane.b32.xlu1 %v5985_v49, %s7074_s1 }
 0x24e   : > { %v865_v9 = vpop.permute.xlu1 %864  ;;  %v2313_v55 = vpop.trf.xlu0 }
 0x24f   : > { %867 = vst.msk [vmem:[#allocation2 + $0x110] sm:$0xff] %vm700_vm1, %v865_v9  ;;  %784 = vrot.lane.b32.xlu0 %v739_v54, %s7053_s27  ;;  %4605 = vmatprep.mubr.f32.mxu1 %v2313_v55 }
 0x250   : > { %1571 = vrot.lane.b32.xlu1 %v5849_v2, %s7074_s1 }
 0x252   : > { %v943_v21 = vpop.permute.xlu1 %942  ;;  %v2314_v20 = vpop.trf.xlu0 }
 0x253   : > { %945 = vst.msk [vmem:[#allocation2 + $0x118] sm:$0xff] %vm700_vm1, %v943_v21  ;;  %4606 = vmatmul.mubr.f32.gmra.mrb[44].mxu1 %v2314_v20  ;;  %775 = vrot.lane.b32.xlu0 %v5789_v38, %s7053_s27 }
 0x254   : > { %4616 = vmatprep.mubr.msk.f32.mxu1 %vm700_vm1, %v2435_v43  ;;  %1573 = vrot.lane.b32.xlu1 %v5997_v6, %s7074_s1 }
 0x256   : > { %v1021_v34 = vpop.permute.xlu1 %1020 }
 0x257   : > { %1023 = vst.msk [vmem:[#allocation2 + $0x120] sm:$0xff] %vm700_vm1, %v1021_v34  ;;  %777 = vrot.lane.b32.xlu0 %v5798_v39, %s7053_s27 }
 0x258   : > { %1236 = vrot.lane.b32.xlu1 %v1193_v46, %s7060_s9 }
 0x25a   : > { %v6174_v16 = vpop.permute.xlu1 %1140 }
 0x25b   : > { %1138 = vrot.lane.b32.xlu0 %v1059_v45, %s7066_s19 }
 0x25c   : > { %1314 = vrot.lane.b32.xlu1 %v1271_v28, %s7075_s2 }
 0x25e   : > { %v858_v17 = vpop.permute.xlu1 %857 }
 0x25f   : > { %862 = vst.msk [vmem:[#allocation3 + $0x128] sm:$0xff] %vm700_vm1, %v858_v17  ;;  %855 = vrot.lane.b32.xlu0 %v5789_v38, %s7059_s21 }
 0x260   : > { %1667 = vrot.lane.b32.xlu1 %v5985_v49, %s7070_s20 }
 0x262   : > { %v934_v24 = vpop.permute.xlu1 %933 }
 0x263   : > { %939 = vst.msk [vmem:[#allocation3 + $0x130] sm:$0xff] %vm700_vm1, %v934_v24  ;;  %1231 = vrot.lane.b32.xlu0 %v1190_v23, %s7060_s9 }
 0x264   : > { %1669 = vrot.lane.b32.xlu1 %v5997_v6, %s7070_s20 }
 0x266   : > { %v936_v60 = vpop.permute.xlu1 %935 }
 0x267   : > { %940 = vst.msk [vmem:[#allocation3 + $0x138] sm:$0xff] %vm700_vm1, %v936_v60  ;;  %1309 = vrot.lane.b32.xlu0 %v1268_v40, %s7075_s2  ;;  %v2085_v40 = vld [vmem:[#allocation2 + $0x1c8] sm:$0xff] }
 0x26a   : > { %v1012_v7 = vpop.permute.xlu1 %1011 }
 0x26b   : > { %1017 = vst.msk [vmem:[#allocation3 + $0x140] sm:$0xff] %vm700_vm1, %v1012_v7  ;;  %1387 = vrot.lane.b32.xlu0 %v1346_v5, %s7068_s14 }
 0x26e   : > { %v1014_v48 = vpop.permute.xlu1 %1013 }
 0x26f   : > { %1018 = vst.msk [vmem:[#allocation3 + $0x148] sm:$0xff] %vm700_vm1, %v1014_v48  ;;  %1465 = vrot.lane.b32.xlu0 %v6017_v50, %s7076_s6 }
 0x272   : > { %v6200_v10 = vpop.permute.xlu1 %1585 }
 0x273   : > { %1583 = vrot.lane.b32.xlu0 %v6025_v61, %s7074_s1  ;;  %v1949_v61 = vadd.f32 %v6059_v27, %v5658_v36  ;;  %v1511_v36 = vadd.f32 %v6115_v0, %v5962_v13 }
 0x276   : > { %v6204_v1 = vpop.permute.xlu1 %1124 }
 0x277   : > { %1122 = vrot.lane.b32.xlu0 %v5789_v38, %s7066_s19 }
 0x27a   : > { %v6208_v30 = vpop.permute.xlu1 %1128 }
 0x27b   : > { %1126 = vrot.lane.b32.xlu0 %v5798_v39, %s7066_s19  ;;  %v6222_v39 = vpop.f32.mrb[30].mxu1 }
 0x27c   : > { %v6226_v59 = vpop.f32.mrb[31].mxu1 }
 0x27d   : > { %v6231_v62 = vpop.f32.mrb[32].mxu1 }
 0x27e   : > { %v1755_v18 = vpop.permute.xlu1 %1754  ;;  %v6233_v19 = vpop.f32.mrb[33].mxu1 }
 0x27f   : > { %1757 = vst.msk [vmem:[#allocation2 + $0x160] sm:$0xff] %vm700_vm1, %v1755_v18  ;;  %1676 = vrot.lane.b32.xlu0 %v1635_v12, %s7070_s20 }
 0x282   : > { %v1833_v50 = vpop.permute.xlu1 %1832 }
 0x283   : > { %1835 = vst.msk [vmem:[#allocation2 + $0x168] sm:$0xff] %vm700_vm1, %v1833_v50  ;;  %1222 = vrot.lane.b32.xlu0 %v5796_v32, %s7060_s9 }
 0x286   : > { %v1911_v38 = vpop.permute.xlu1 %1910 }
 0x287   : > { %1913 = vst.msk [vmem:[#allocation2 + $0x170] sm:$0xff] %vm700_vm1, %v1911_v38  ;;  %1224 = vrot.lane.b32.xlu0 %v5849_v2, %s7060_s9  ;;  %v6238_v2 = vpop.f32.mrb[34].mxu1 }
 0x288   : > { %v6242_v27 = vpop.f32.mrb[35].mxu1 }
 0x289   : > { %v6246_v51 = vpop.f32.mrb[36].mxu1 }
 0x28a   : > { %v6228_v33 = vpop.permute.xlu1 %2030  ;;  %v6248_v54 = vpop.f32.mrb[37].mxu1 }
 0x28b   : > { %2028 = vrot.lane.b32.xlu0 %v1949_v61, %s7072_s17 }
 0x28e   : > { %v1303_v26 = vpop.permute.xlu1 %1302 }
 0x28f   : > { %1307 = vst.msk [vmem:[#allocation3 + $0x178] sm:$0xff] %vm700_vm1, %v1303_v26  ;;  %1300 = vrot.lane.b32.xlu0 %v5796_v32, %s7075_s2  ;;  %v6253_v32 = vpop.f32.mrb[38].mxu1 }
 0x290   : > { %v6255_v55 = vpop.f32.mrb[39].mxu1 }
 0x291   : > { %v6260_v20 = vpop.f32.mrb[40].mxu1 }
 0x292   : > { %v790_v44 = vpop.permute.xlu1 %789  ;;  %v6262_v43 = vpop.f32.mrb[41].mxu1 }
 0x293   : > { %792 = vst.msk [vmem:[#allocation2 + $0x288] sm:$0xff] %vm700_vm1, %v790_v44  ;;  %1594 = vrot.lane.b32.xlu0 %v1511_v36, %s7074_s1 }
 0x296   : > { %v1379_v9 = vpop.permute.xlu1 %1378 }
 0x297   : > { %1384 = vst.msk [vmem:[#allocation3 + $0x180] sm:$0xff] %vm700_vm1, %v1379_v9  ;;  %2012 = vrot.lane.b32.xlu0 %v5985_v49, %s7072_s17 }
 0x29a   : > { %v1381_v21 = vpop.permute.xlu1 %1380 }
 0x29b   : > { %1385 = vst.msk [vmem:[#allocation3 + $0x188] sm:$0xff] %vm700_vm1, %v1381_v21  ;;  %2016 = vrot.lane.b32.xlu0 %v5997_v6, %s7072_s17  ;;  %v1510_v21 = vadd.f32 %v6115_v0, %v5765_v3 }
 0x29d   : > { %v1357_v46 = vpop.permute.xlu0 %1356 }
 0x29e   : > { %1359 = vst.msk [vmem:[#allocation2 + $0x1c0] sm:$0xff] %vm700_vm1, %v1357_v46  ;;  %v870_v34 = vpop.permute.xlu1 %869 }
 0x29f   : > { %872 = vst.msk [vmem:[#allocation2 + $0x290] sm:$0xff] %vm700_vm1, %v870_v34 }
 0x2a1   : > { %v1525_v45 = vpop.permute.xlu0 %1524 }
 0x2a2   : > { %v1528_v28 = vsel %vm1518_vm3, %v1525_v45, %v6103_v14  ;;  %v948_v17 = vpop.permute.xlu1 %947  ;;  %v1427_v14 = vadd.f32 %v6107_v41, %v5765_v3  ;;  %v2060_v45 = vld [vmem:[#allocation2] sm:$0xff] }
 0x2a3   : > { %1530 = vst.msk [vmem:[#allocation2 + $0x1d0] sm:$0xff] %vm700_vm1, %v1528_v28  ;;  %950 = vst.msk [vmem:[#allocation2 + $0x298] sm:$0xff] %vm700_vm1, %v948_v17  ;;  %v2088_v17 = vld [vmem:[#allocation2 + $0x1e0] sm:$0xff] }
 0x2a5   : > { %v1337_v23 = vpop.permute.xlu0 %1336  ;;  %v2084_v24 = vld [vmem:[#allocation2 + $0x1c0] sm:$0xff] }
 0x2a6   : > { %v1349_v60 = vadd.f32 %v1337_v23, %v5765_v3  ;;  %v1457_v5 = vpop.permute.xlu1 %1456  ;;  %v4838_v7 = vpack.c.bf16 %v2085_v40, %v2084_v24  ;;  %v2061_v3 = vld [vmem:[#allocation2 + $0x8] sm:$0xff] }
 0x2a7   : > { %1462 = vst.msk [vmem:[#allocation3 + $0x190] sm:$0xff] %vm700_vm1, %v1457_v5  ;;  %v2090_v5 = vld [vmem:[#allocation2 + $0x1f0] sm:$0xff] }
 0x2a8   : > { %4839 = vmatprep.subr.bf16.mxu0 %v4838_v7  ;;  %1392 = vrot.lane.b32.xlu1 %v1349_v60, %s7068_s14 }
 0x2a9   : > { %4841 = vmatpush3.bf16.msra.mxu0 %v4838_v7  ;;  %v1646_v48 = vpop.permute.xlu0 %1645 }
 0x2aa   : > { %1648 = vst.msk [vmem:[#allocation2 + $0x1d8] sm:$0xff] %vm700_vm1, %v1646_v48  ;;  %v1459_v12 = vpop.permute.xlu1 %1458  ;;  %v2086_v61 = vld [vmem:[#allocation2 + $0x1d0] sm:$0xff] }
 0x2ab   : > { %1463 = vst.msk [vmem:[#allocation3 + $0x198] sm:$0xff] %vm700_vm1, %v1459_v12  ;;  %v2062_v12 = vld [vmem:[#allocation2 + $0x10] sm:$0xff] }
 0x2ac   : > { %1470 = vrot.lane.b32.xlu1 %v1427_v14, %s7076_s6 }
 0x2ad   : > { %v1626_v18 = vpop.permute.xlu0 %1625 }
 0x2ae   : > { %v1148_v50 = vpop.permute.xlu1 %1147  ;;  %v1638_v24 = vadd.f32 %v1626_v18, %v5962_v13 }
 0x2b0   : > { %1745 = vrot.lane.b32.xlu1 %v5985_v49, %s7064_s22 }
 0x2b1   : > { %v1802_v38 = vpop.permute.xlu0 %1801  ;;  %v2087_v26 = vld [vmem:[#allocation2 + $0x1d8] sm:$0xff] }
 0x2b2   : > { %1804 = vst.msk [vmem:[#allocation2 + $0x1e8] sm:$0xff] %vm700_vm1, %v1802_v38  ;;  %v1150_v36 = vpop.permute.xlu1 %1149  ;;  %v4842_v44 = vpack.c.bf16 %v2087_v26, %v2086_v61  ;;  %v2063_v38 = vld [vmem:[#allocation2 + $0x18] sm:$0xff] }
 0x2b3   : > { %v1151_v41 = vsel %vm1073_vm2, %v1148_v50, %v1150_v36  ;;  %v1716_v36 = vadd.f32 %v6137_v47, %v5962_v13 }
 0x2b4   : > { %1153 = vst.msk [vmem:[#allocation2 + $0x2a8] sm:$0xff] %vm700_vm1, %v1151_v41  ;;  %4843 = vmatprep.subr.bf16.mxu0 %v4842_v44  ;;  %1747 = vrot.lane.b32.xlu1 %v5997_v6, %s7064_s22  ;;  %v2064_v41 = vld [vmem:[#allocation2 + $0x20] sm:$0xff] }
 0x2b5   : > { %4845 = vmatpush3.bf16.msra.mxu0 %v4842_v44  ;;  %v1972_v9 = vpop.permute.xlu0 %1971 }
 0x2b6   : > { %v1973_v46 = vsel %vm1963_vm4, %v6130_v15, %v1972_v9  ;;  %v1026_v34 = vpop.permute.xlu1 %1025 }
 0x2b7   : > { %1975 = vst.msk [vmem:[#allocation2 + $0x1f8] sm:$0xff] %vm700_vm1, %v1973_v46  ;;  %1028 = vst.msk [vmem:[#allocation2 + $0x2a0] sm:$0xff] %vm700_vm1, %v1026_v34  ;;  %v2065_v34 = vld [vmem:[#allocation2 + $0x28] sm:$0xff] }
 0x2b8   : > { %1592 = vrot.lane.b32.xlu1 %v1510_v21, %s7074_s1 }
 0x2b9   : > { %v1782_v28 = vpop.permute.xlu0 %1781  ;;  %2092 = vxpose.xlu0.b32.start [1/16] (narrow) %v2060_v45, 32  ;;  %v2089_v23 = vld [vmem:[#allocation2 + $0x1e8] sm:$0xff] }
 0x2ba   : > { %v1568_v40 = vpop.permute.xlu1 %1567  ;;  %v4846_v60 = vpack.c.bf16 %v2089_v23, %v2088_v17  ;;  %v1794_v21 = vadd.f32 %v1782_v28, %v5962_v13  ;;  %v2066_v28 = vld [vmem:[#allocation2 + $0x30] sm:$0xff] }
 0x2bc   : > { %4847 = vmatprep.subr.bf16.mxu0 %v4846_v60  ;;  %1681 = vrot.lane.b32.xlu1 %v1638_v24, %s7070_s20 }
 0x2bd   : > { %4849 = vmatpush3.bf16.msra.mxu0 %v4846_v60  ;;  %v1938_v0 = vpop.permute.xlu0 %1937  ;;  %2093 = vxpose.xlu0.b32.cont [2/16] (narrow) %v2061_v3, 32 }
 0x2be   : > { %v1570_v15 = vpop.permute.xlu1 %1569  ;;  %v2091_v7 = vld [vmem:[#allocation2 + $0x1f8] sm:$0xff]  ;;  %v1955_v60 = vadd.f32 %v1938_v0, %v5962_v13 }
 0x2bf   : > { %v1575_v48 = vsel %vm1518_vm3, %v1568_v40, %v1570_v15  ;;  %v4850_v14 = vpack.c.bf16 %v2091_v7, %v2090_v5  ;;  %v1956_v5 = vadd.f32 %v1938_v0, %v5964_v42  ;;  %v2071_v42 = vld [vmem:[#allocation2 + $0x58] sm:$0xff] }
 0x2c0   : > { %1579 = vst.msk [vmem:[#allocation3 + $0x1a0] sm:$0xff] %vm700_vm1, %v1575_v48  ;;  %1823 = vrot.lane.b32.xlu1 %v5985_v49, %s7067_s12  ;;  %v1872_v48 = vadd.f32 %v6146_v57, %v5962_v13  ;;  %v2072_v57 = vld [vmem:[#allocation2 + $0x60] sm:$0xff] }
 0x2c1   : > { %4851 = vmatprep.subr.bf16.mxu0 %v4850_v14  ;;  %v785_v18 = vpop.permute.xlu0 %784  ;;  %2094 = vxpose.xlu0.b32.cont [3/16] (narrow) %v2062_v12, 32 }
 0x2c2   : > { %787 = vst.msk [vmem:[#allocation2 + $0x108] sm:$0xff] %vm700_vm1, %v785_v18  ;;  %4853 = vmatpush3.bf16.msra.mxu0 %v4850_v14  ;;  %v1572_v50 = vpop.permute.xlu1 %1571  ;;  %v2070_v14 = vld [vmem:[#allocation2 + $0x50] sm:$0xff]  ;;  %v6335_v18 = vpop.f32.mrb[20].mxu0 }
 0x2c3   : > { %711 = vst.msk [vmem:[#allocation3 + $0x200] sm:$0xff] %vm700_vm1, %v6335_v18 }
 0x2c4   : > { %1825 = vrot.lane.b32.xlu1 %v5997_v6, %s7067_s12 }
 0x2c5   : > { %v776_v61 = vpop.permute.xlu0 %775  ;;  %2095 = vxpose.xlu0.b32.cont [4/16] (narrow) %v2063_v38, 32 }
 0x2c6   : > { %781 = vst.msk [vmem:[#allocation3 + $0x110] sm:$0xff] %vm700_vm1, %v776_v61  ;;  %v1574_v26 = vpop.permute.xlu1 %1573 }
 0x2c7   : > { %v1576_v44 = vsel %vm1518_vm3, %v1572_v50, %v1574_v26 }
 0x2c8   : > { %1580 = vst.msk [vmem:[#allocation3 + $0x1a8] sm:$0xff] %vm700_vm1, %v1576_v44  ;;  %1759 = vrot.lane.b32.xlu1 %v1716_v36, %s7064_s22 }
 0x2c9   : > { %v778_v9 = vpop.permute.xlu0 %777  ;;  %2096 = vxpose.xlu0.b32.cont [5/16] (narrow) %v2064_v41, 32  ;;  %v3117_v41 = vld [vmem:[#allocation2 + $0x108] sm:$0xff] }
 0x2ca   : > { %782 = vst.msk [vmem:[#allocation3 + $0x118] sm:$0xff] %vm700_vm1, %v778_v9  ;;  %v1237_v46 = vpop.permute.xlu1 %1236 }
 0x2cb   : > { %1239 = vst.msk [vmem:[#allocation2 + $0x2b0] sm:$0xff] %vm700_vm1, %v1237_v46 }
 0x2cc   : > { %1837 = vrot.lane.b32.xlu1 %v1794_v21, %s7067_s12  ;;  %v6363_v21 = vpop.f32.mrb[21].mxu0 }
 0x2cd   : > { %v1139_v47 = vpop.permute.xlu0 %1138  ;;  %2097 = vxpose.xlu0.b32.cont [6/16] (narrow) %v2065_v34, 32  ;;  %v3118_v34 = vld [vmem:[#allocation2 + $0x110] sm:$0xff] }
 0x2ce   : > { %v1142_v45 = vsel %vm1073_vm2, %v1139_v47, %v6174_v16  ;;  %v1315_v17 = vpop.permute.xlu1 %1314  ;;  %v2067_v16 = vld [vmem:[#allocation2 + $0x38] sm:$0xff] }
 0x2cf   : > { %1144 = vst.msk [vmem:[#allocation2 + $0x128] sm:$0xff] %vm700_vm1, %v1142_v45  ;;  %1317 = vst.msk [vmem:[#allocation2 + $0x2b8] sm:$0xff] %vm700_vm1, %v1315_v17  ;;  %v3119_v45 = vld [vmem:[#allocation2 + $0x118] sm:$0xff]  ;;  %v3120_v17 = vld [vmem:[#allocation2 + $0x120] sm:$0xff] }
 0x2d0   : > { %1901 = vrot.lane.b32.xlu1 %v5985_v49, %s7065_s29  ;;  %v2068_v49 = vld [vmem:[#allocation2 + $0x40] sm:$0xff] }
 0x2d1   : > { %v856_v23 = vpop.permute.xlu0 %855  ;;  %2098 = vxpose.xlu0.b32.cont [7/16] (narrow) %v2066_v28, 32 }
 0x2d2   : > { %861 = vst.msk [vmem:[#allocation3 + $0x120] sm:$0xff] %vm700_vm1, %v856_v23  ;;  %v1668_v24 = vpop.permute.xlu1 %1667 }
 0x2d3   : > { %1673 = vst.msk [vmem:[#allocation3 + $0x1b0] sm:$0xff] %vm700_vm1, %v1668_v24 }
 0x2d4   : > { %1903 = vrot.lane.b32.xlu1 %v5997_v6, %s7065_s29  ;;  %v2069_v6 = vld [vmem:[#allocation2 + $0x48] sm:$0xff] }
 0x2d5   : > { %v1232_v40 = vpop.permute.xlu0 %1231  ;;  %2099 = vxpose.xlu0.b32.cont [8/16] (narrow) %v2067_v16, 32 }
 0x2d6   : > { %1234 = vst.msk [vmem:[#allocation2 + $0x130] sm:$0xff] %vm700_vm1, %v1232_v40  ;;  %v1670_v3 = vpop.permute.xlu1 %1669 }
 0x2d7   : > { %1674 = vst.msk [vmem:[#allocation3 + $0x1b8] sm:$0xff] %vm700_vm1, %v1670_v3 }
 0x2d8   : > { %2037 = vrot.lane.b32.xlu1 %v1955_v60, %s7072_s17 }
 0x2d9   : > { %v1310_v15 = vpop.permute.xlu0 %1309  ;;  %2100 = vxpose.xlu0.b32.cont [9/16] (narrow) %v2068_v49, 32 }
 0x2da   : > { %1312 = vst.msk [vmem:[#allocation2 + $0x138] sm:$0xff] %vm700_vm1, %v1310_v15 }
 0x2dc   : > { %2039 = vrot.lane.b32.xlu1 %v1956_v5, %s7072_s17 }
 0x2dd   : > { %v1388_v7 = vpop.permute.xlu0 %1387  ;;  %2101 = vxpose.xlu0.b32.cont [10/16] (narrow) %v2069_v6, 32  ;;  %v3122_v28 = vld [vmem:[#allocation2 + $0x130] sm:$0xff] }
 0x2de   : > { %1390 = vst.msk [vmem:[#allocation2 + $0x140] sm:$0xff] %vm700_vm1, %v1388_v7 }
 0x2e0   : > { %1915 = vrot.lane.b32.xlu1 %v1872_v48, %s7065_s29 }
 0x2e1   : > { %v1466_v12 = vpop.permute.xlu0 %1465  ;;  %2102 = vxpose.xlu0.b32.cont [11/16] (narrow) %v2070_v14, 32  ;;  %v3123_v23 = vld [vmem:[#allocation2 + $0x138] sm:$0xff] }
 0x2e2   : > { %1468 = vst.msk [vmem:[#allocation2 + $0x148] sm:$0xff] %vm700_vm1, %v1466_v12 }
 0x2e4   : > { %2014 = vrot.lane.b32.xlu1 %v5991_v29, %s7072_s17 }
 0x2e5   : > { %v1584_v0 = vpop.permute.xlu0 %1583  ;;  %2103 = vxpose.xlu0.b32.cont [12/16] (narrow) %v2071_v42, 32  ;;  %v3124_v24 = vld [vmem:[#allocation2 + $0x140] sm:$0xff] }
 0x2e6   : > { %v1587_v13 = vsel %vm1518_vm3, %v1584_v0, %v6200_v10  ;;  %v2073_v10 = vld [vmem:[#allocation2 + $0x68] sm:$0xff]  ;;  %v3128_v0 = vld [vmem:[#allocation2 + $0x160] sm:$0xff] }
 0x2e7   : > { %1589 = vst.msk [vmem:[#allocation2 + $0x150] sm:$0xff] %vm700_vm1, %v1587_v13 }
 0x2e8   : > { %2018 = vrot.lane.b32.xlu1 %v6080_v11, %s7072_s17  ;;  %v2074_v11 = vld [vmem:[#allocation2 + $0x70] sm:$0xff] }
 0x2e9   : > { %v1123_v50 = vpop.permute.xlu0 %1122  ;;  %2104 = vxpose.xlu0.b32.cont [13/16] (narrow) %v2072_v57, 32  ;;  %v2421_v57 = vstv %s4247_s24 }
 0x2ea   : > { %v1130_v29 = vsel %vm1073_vm2, %v1123_v50, %v6204_v1  ;;  %v2075_v1 = vld [vmem:[#allocation2 + $0x78] sm:$0xff] }
 0x2eb   : > { %1134 = vst.msk [vmem:[#allocation3 + $0x150] sm:$0xff] %vm700_vm1, %v1130_v29 }
 0x2ec   : > { %755 = vrot.lane.b32.xlu1 %v5767_v52, %s7053_s27 }
 0x2ed   : > { %v1127_v38 = vpop.permute.xlu0 %1126  ;;  %2105 = vxpose.xlu0.b32.cont [14/16] (narrow) %v2073_v10, 32 }
 0x2ee   : > { %v1131_v61 = vsel %vm1073_vm2, %v1127_v38, %v6208_v30  ;;  %v3116_v30 = vld [vmem:[#allocation2 + $0x100] sm:$0xff]  ;;  %v3126_v15 = vld [vmem:[#allocation2 + $0x150] sm:$0xff]  ;;  %v4249_v38 = vld [vmem:[%s6959_s3 + $0x28] sm:$0xff] }
 0x2ef   : > { %1135 = vst.msk [vmem:[#allocation3 + $0x158] sm:$0xff] %vm700_vm1, %v1131_v61 }
 0x2f0   : > { %757 = vrot.lane.b32.xlu1 %v5781_v37, %s7053_s27 }
 0x2f1   : > { %v1677_v26 = vpop.permute.xlu0 %1676  ;;  %2106 = vxpose.xlu0.b32.cont [15/16] (narrow) %v2074_v11, 32  ;;  %v3129_v11 = vld [vmem:[#allocation2 + $0x168] sm:$0xff] }
 0x2f2   : > { %1679 = vst.msk [vmem:[#allocation2 + $0x158] sm:$0xff] %vm700_vm1, %v1677_v26 }
 0x2f4   : > { %837 = vrot.lane.b32.xlu1 %v5767_v52, %s7059_s21 }
 0x2f5   : > { %v1223_v36 = vpop.permute.xlu0 %1222  ;;  %2107 = vxpose.xlu0.b32.end [16/16] (narrow) %v2075_v1, 32  ;;  %v4248_v1 = vld [vmem:[%s6959_s3 + $0x20] sm:$0xff] }
 0x2f6   : > { %1228 = vst.msk [vmem:[#allocation3 + $0x160] sm:$0xff] %vm700_vm1, %v1223_v36 }
 0x2f8   : > { %839 = vrot.lane.b32.xlu1 %v5781_v37, %s7059_s21 }
 0x2f9   : > { %3148 = vxpose.xlu0.b32.start [1/16] (narrow) %v3116_v30, 32  ;;  %v1225_v44 = vpop.permute.xlu0 %1224  ;;  %v3127_v6 = vld [vmem:[#allocation2 + $0x158] sm:$0xff] }
 0x2fa   : > { %1229 = vst.msk [vmem:[#allocation3 + $0x168] sm:$0xff] %vm700_vm1, %v1225_v44 }
 0x2fc   : > { %915 = vrot.lane.b32.xlu1 %v5767_v52, %s7055_s26 }
 0x2fd   : > { %3149 = vxpose.xlu0.b32.cont [2/16] (narrow) %v3117_v41, 32  ;;  %v2029_v9 = vpop.permute.xlu0 %2028 }
 0x2fe   : > { %v2032_v46 = vsel %vm1963_vm4, %v2029_v9, %v6228_v33  ;;  %v3121_v33 = vld [vmem:[#allocation2 + $0x128] sm:$0xff] }
 0x2ff   : > { %2034 = vst.msk [vmem:[#allocation2 + $0x178] sm:$0xff] %vm700_vm1, %v2032_v46  ;;  %v3130_v46 = vld [vmem:[#allocation2 + $0x170] sm:$0xff] }
 0x300   : > { %917 = vrot.lane.b32.xlu1 %v5781_v37, %s7055_s26 }
 0x301   : > { %3150 = vxpose.xlu0.b32.cont [3/16] (narrow) %v3118_v34, 32  ;;  %v1301_v47 = vpop.permute.xlu0 %1300 }
 0x302   : > { %1306 = vst.msk [vmem:[#allocation3 + $0x170] sm:$0xff] %vm700_vm1, %v1301_v47 }
 0x304   : > { %993 = vrot.lane.b32.xlu1 %v5767_v52, %s7073_s0 }
 0x305   : > { %3151 = vxpose.xlu0.b32.cont [4/16] (narrow) %v3119_v45, 32  ;;  %v1595_v13 = vpop.permute.xlu0 %1594 }
 0x308   : > { %995 = vrot.lane.b32.xlu1 %v5781_v37, %s7073_s0 }
 0x309   : > { %3152 = vxpose.xlu0.b32.cont [5/16] (narrow) %v3120_v17, 32  ;;  %v6405_v41 = vpop.permute.xlu0 %2012  ;;  %v4251_v17 = vld [vmem:[%s6959_s3 + $0x38] sm:$0x1] }
 0x30c   : > { %1088 = vrot.lane.b32.xlu1 %v5767_v52, %s7066_s19  ;;  %v3125_v52 = vld [vmem:[#allocation2 + $0x148] sm:$0xff] }
 0x30d   : > { %3153 = vxpose.xlu0.b32.cont [6/16] (narrow) %v3121_v33, 32 }
 0x310   : > { %1090 = vrot.lane.b32.xlu1 %v5774_v31, %s7066_s19 }
 0x311   : > { %3154 = vxpose.xlu0.b32.cont [7/16] (narrow) %v3122_v28, 32  ;;  %v3131_v28 = vld [vmem:[#allocation2 + $0x178] sm:$0xff] }
 0x314   : > { %1092 = vrot.lane.b32.xlu1 %v5781_v37, %s7066_s19 }
 0x315   : > { %3155 = vxpose.xlu0.b32.cont [8/16] (narrow) %v3123_v23, 32 }
 0x318   : > { %1094 = vrot.lane.b32.xlu1 %v5785_v58, %s7066_s19 }
 0x319   : > { %3156 = vxpose.xlu0.b32.cont [9/16] (narrow) %v3124_v24, 32  ;;  %v4250_v24 = vld [vmem:[%s6959_s3 + $0x30] sm:$0xff] }
 0x31a   : > { %v1393_v16 = vpop.permute.xlu1 %1392 }
 0x31b   : > { %1395 = vst.msk [vmem:[#allocation2 + $0x2c0] sm:$0xff] %vm700_vm1, %v1393_v16  ;;  %v6419_v16 = vpop.permute.xlu0 %2016 }
 0x31c   : > { %1204 = vrot.lane.b32.xlu1 %v5774_v31, %s7060_s9 }
 0x31d   : > { %3157 = vxpose.xlu0.b32.cont [10/16] (narrow) %v3125_v52, 32 }
 0x31e   : > { %v4604_v40 = vpop.f32.mrb[42].mxu1  ;;  %v1471_v60 = vpop.permute.xlu1 %1470 }
 0x31f   : > { %v2413_v3 = vmul.f32 0.0078125, %v4604_v40  ;;  %1473 = vst.msk [vmem:[#allocation2 + $0x2c8] sm:$0xff] %vm700_vm1, %v1471_v60  ;;  %v2393_v37 = vpop.f32.mrb[43].mxu1 }
 0x320   : > { %v2412_v49 = vmul.f32 0.0078125, %v2393_v37  ;;  %1206 = vrot.lane.b32.xlu1 %v5785_v58, %s7060_s9 }
 0x321   : > { %5082 = vtanh.f32 %v2413_v3  ;;  %3158 = vxpose.xlu0.b32.cont [11/16] (narrow) %v3126_v15, 32 }
 0x322   : > { %5084 = vtanh.f32 %v2412_v49  ;;  %v1746_v5 = vpop.permute.xlu1 %1745  ;;  %v3133_v49 = vld [vmem:[#allocation2 + $0x288] sm:$0xff] }
 0x323   : > { %1751 = vst.msk [vmem:[#allocation3 + $0x1c0] sm:$0xff] %vm700_vm1, %v1746_v5 }
 0x324   : > { %1282 = vrot.lane.b32.xlu1 %v5774_v31, %s7075_s2 }
 0x325   : > { %3159 = vxpose.xlu0.b32.cont [12/16] (narrow) %v3127_v6, 32 }
 0x326   : > { %v4607_v7 = vpop.f32.mrb[44].mxu1  ;;  %v1748_v48 = vpop.permute.xlu1 %1747 }
 0x327   : > { %v2415_v14 = vmul.f32 0.0078125, %v4607_v7  ;;  %1752 = vst.msk [vmem:[#allocation3 + $0x1c8] sm:$0xff] %vm700_vm1, %v1748_v48  ;;  %v2403_v12 = vpop.f32.mrb[45].mxu1  ;;  %v3132_v7 = vld [vmem:[#allocation2 + $0x280] sm:$0xff] }
 0x328   : > { %v2414_v42 = vmul.f32 0.0078125, %v2403_v12  ;;  %1284 = vrot.lane.b32.xlu1 %v5785_v58, %s7075_s2  ;;  %v4906_v48 = vpack.c.bf16 %v3133_v49, %v3132_v7  ;;  %v3135_v12 = vld [vmem:[#allocation2 + $0x298] sm:$0xff] }
 0x329   : > { %5086 = vtanh.f32 %v2415_v14  ;;  %3160 = vxpose.xlu0.b32.cont [13/16] (narrow) %v3128_v0, 32  ;;  %v3134_v14 = vld [vmem:[#allocation2 + $0x290] sm:$0xff] }
 0x32a   : > { %5088 = vtanh.f32 %v2414_v42  ;;  %v1593_v50 = vpop.permute.xlu1 %1592 }
 0x32b   : > { %v5083_v29 = vpop.eup %5082  ;;  %v1596_v10 = vsel %vm1518_vm3, %v1593_v50, %v1595_v13  ;;  %v2436_v13 = vld [vmem:[#allocation3 + $0x108] sm:$0xff]  ;;  %v4910_v50 = vpack.c.bf16 %v3135_v12, %v3134_v14  ;;  %v2447_v12 = vld [vmem:[#allocation3 + $0x160] sm:$0xff] }
 0x32c   : > { %v5085_v61 = vpop.eup %5084  ;;  %1598 = vst.msk [vmem:[#allocation2 + $0x2d0] sm:$0xff] %vm700_vm1, %v1596_v10  ;;  %1360 = vrot.lane.b32.xlu1 %v5774_v31, %s7068_s14  ;;  %v2423_v26 = vmul.f32 %v5083_v29, %v2421_v57  ;;  %v3136_v29 = vld [vmem:[#allocation2 + $0x2a0] sm:$0xff] }
 0x32d   : > { %3161 = vxpose.xlu0.b32.cont [14/16] (narrow) %v3129_v11, 32  ;;  %v2422_v36 = vmul.f32 %v5085_v61, %v2421_v57  ;;  %v3137_v61 = vld [vmem:[#allocation2 + $0x2a8] sm:$0xff]  ;;  %v2439_v11 = vld [vmem:[#allocation3 + $0x120] sm:$0xff] }
 0x32e   : > { %v1682_v30 = vpop.permute.xlu1 %1681  ;;  %v2432_v44 = vadd.f32 %v4249_v38, %v2423_v26  ;;  %v2438_v38 = vld [vmem:[#allocation3 + $0x118] sm:$0xff]  ;;  %v4914_v26 = vpack.c.bf16 %v3137_v61, %v3136_v29 }
 0x32f   : > { %1684 = vst.msk [vmem:[#allocation2 + $0x2d8] sm:$0xff] %vm700_vm1, %v1682_v30  ;;  %v2431_v9 = vadd.f32 %v4248_v1, %v2422_v36  ;;  %v3139_v1 = vld [vmem:[#allocation2 + $0x2b8] sm:$0xff] }
 0x330   : > { %1362 = vrot.lane.b32.xlu1 %v5785_v58, %s7068_s14 }
 0x331   : > { %3162 = vxpose.xlu0.b32.cont [15/16] (narrow) %v3130_v46, 32  ;;  %v4886_v34 = vpack.c.bf16 %v2432_v44, %v2431_v9  ;;  %v2440_v44 = vld [vmem:[#allocation3 + $0x128] sm:$0xff]  ;;  %v2231_v9 = vld [vmem:[#allocation3] sm:$0xff]  ;;  %v3138_v46 = vld [vmem:[#allocation2 + $0x2b0] sm:$0xff] }
 0x332   : > { %v1824_v47 = vpop.permute.xlu1 %1823 }
 0x333   : > { %v5087_v45 = vpop.eup %5086  ;;  %1829 = vst.msk [vmem:[#allocation3 + $0x1d0] sm:$0xff] %vm700_vm1, %v1824_v47  ;;  %4887 = vmatprep.subr.bf16.mxu1 %v4886_v34  ;;  %v4918_v47 = vpack.c.bf16 %v3139_v1, %v3138_v46  ;;  %v2452_v1 = vld [vmem:[#allocation3 + $0x188] sm:$0xff]  ;;  %v2457_v46 = vld [vmem:[#allocation3 + $0x1b0] sm:$0xff] }
 0x334   : > { %v5089_v33 = vpop.eup %5088  ;;  %4889 = vmatpush3.bf16.msra.mxu1 %v4886_v34  ;;  %1438 = vrot.lane.b32.xlu1 %v5774_v31, %s7076_s6  ;;  %v2425_v23 = vmul.f32 %v5087_v45, %v2421_v57  ;;  %v2441_v34 = vld [vmem:[#allocation3 + $0x130] sm:$0xff]  ;;  %v3141_v45 = vld [vmem:[#allocation2 + $0x2c8] sm:$0xff] }
 0x335   : > { %3163 = vxpose.xlu0.b32.end [16/16] (narrow) %v3131_v28, 32  ;;  %v2424_v52 = vmul.f32 %v5089_v33, %v2421_v57  ;;  %v2437_v57 = vld [vmem:[#allocation3 + $0x110] sm:$0xff]  ;;  %v2442_v33 = vld [vmem:[#allocation3 + $0x138] sm:$0xff]  ;;  %v3140_v28 = vld [vmem:[#allocation2 + $0x2c0] sm:$0xff] }
 0x336   : > { %v1826_v40 = vpop.permute.xlu1 %1825  ;;  %v2434_v60 = vadd.f32 %v4251_v17, %v2425_v23  ;;  %v2443_v23 = vld [vmem:[#allocation3 + $0x140] sm:$0xff] }
 0x337   : > { %1830 = vst.msk [vmem:[#allocation3 + $0x1d8] sm:$0xff] %vm700_vm1, %v1826_v40  ;;  %v2433_v3 = vadd.f32 %v4250_v24, %v2424_v52  ;;  %v4922_v24 = vpack.c.bf16 %v3141_v45, %v3140_v28  ;;  %v3143_v52 = vld [vmem:[#allocation2 + $0x2d8] sm:$0xff] }
 0x338   : > { %1440 = vrot.lane.b32.xlu1 %v5785_v58, %s7076_s6 }
 0x339   : > { %v2108_v15 = vpop.trf.xlu0  ;;  %v4890_v5 = vpack.c.bf16 %v2434_v60, %v2433_v3  ;;  %v2444_v60 = vld [vmem:[#allocation3 + $0x148] sm:$0xff]  ;;  %v3142_v3 = vld [vmem:[#allocation2 + $0x2d0] sm:$0xff] }
 0x33a   : > { %v1760_v6 = vpop.permute.xlu1 %1759  ;;  %4564 = vmatprep.mubr.f32.mxu0 %v2108_v15  ;;  %v2445_v15 = vld [vmem:[#allocation3 + $0x150] sm:$0xff] }
 0x33b   : > { %1762 = vst.msk [vmem:[#allocation2 + $0x2e0] sm:$0xff] %vm700_vm1, %v1760_v6  ;;  %4892 = vmatprep.subr.msk.bf16.mxu1 %vm6424_vm7, %v4890_v5 }
 0x33c   : > { %4895 = vmatpush3.bf16.msk.msra.mxu1 %vm6424_vm7, %v4890_v5  ;;  %1533 = vrot.lane.b32.xlu1 %v5774_v31, %s7074_s1  ;;  %v4926_v5 = vpack.c.bf16 %v3143_v52, %v3142_v3 }
 0x33d   : > { %v2109_v42 = vpop.trf.xlu0  ;;  %4907 = vmatprep.subr.bf16.mxu1 %v4906_v48 }
 0x33e   : > { %v1838_v0 = vpop.permute.xlu1 %1837  ;;  %4565 = vmatmul.mubr.f32.vlgmr.msra.gmra.mrb[22].mxu0 %v2109_v42 }
 0x33f   : > { %1840 = vst.msk [vmem:[#allocation2 + $0x2e8] sm:$0xff] %vm700_vm1, %v1838_v0  ;;  %4617 = vmatmul.mubr.msk.f32.vlgmr.msra.gmra.mrb[46].mxu1 %vm700_vm1, %v2436_v13  ;;  %v2448_v13 = vld [vmem:[#allocation3 + $0x168] sm:$0xff] }
 0x340   : > { %4619 = vmatprep.mubr.msk.f32.mxu1 %vm700_vm1, %v2437_v57  ;;  %4909 = vmatpush3.bf16.msra.mxu1 %v4906_v48  ;;  %v2446_v48 = vld [vmem:[#allocation3 + $0x158] sm:$0xff] }
 0x341   : > { %1535 = vrot.lane.b32.xlu1 %v5971_v22, %s7074_s1  ;;  %v2110_v31 = vpop.trf.xlu0  ;;  %4911 = vmatprep.subr.bf16.mxu1 %v4910_v50 }
 0x342   : > { %v1902_v10 = vpop.permute.xlu1 %1901  ;;  %4567 = vmatprep.mubr.f32.mxu0 %v2110_v31  ;;  %v3144_v14 = vld [vmem:[#allocation2 + $0x2e0] sm:$0xff]  ;;  %v2450_v31 = vld [vmem:[#allocation3 + $0x178] sm:$0xff] }
 0x343   : > { %1907 = vst.msk [vmem:[#allocation3 + $0x1e0] sm:$0xff] %vm700_vm1, %v1902_v10  ;;  %4620 = vmatmul.mubr.msk.f32.gmra.mrb[48].mxu1 %vm700_vm1, %v2438_v38 }
 0x344   : > { %4622 = vmatprep.mubr.msk.f32.mxu1 %vm700_vm1, %v2439_v11  ;;  %4913 = vmatpush3.bf16.msra.mxu1 %v4910_v50  ;;  %v2449_v50 = vld [vmem:[#allocation3 + $0x170] sm:$0xff] }
 0x345   : > { %1539 = vrot.lane.b32.xlu1 %v5976_v53, %s7074_s1  ;;  %v2111_v36 = vpop.trf.xlu0  ;;  %4915 = vmatprep.subr.bf16.mxu1 %v4914_v26 }
 0x346   : > { %4568 = vmatmul.mubr.f32.gmra.mrb[24].mxu0 %v2111_v36  ;;  %v1904_v30 = vpop.permute.xlu1 %1903  ;;  %v3145_v6 = vld [vmem:[#allocation2 + $0x2e8] sm:$0xff] }
 0x347   : > { %1908 = vst.msk [vmem:[#allocation3 + $0x1e8] sm:$0xff] %vm700_vm1, %v1904_v30  ;;  %4623 = vmatmul.mubr.msk.f32.gmra.mrb[50].mxu1 %vm700_vm1, %v2440_v44  ;;  %4672 = vmatprep.mubr.msk.f32.mxu0 %vm700_vm1, %v2231_v9  ;;  %v4930_v42 = vpack.c.bf16 %v3145_v6, %v3144_v14  ;;  %v2454_v30 = vld [vmem:[#allocation3 + $0x198] sm:$0xff]  ;;  %v2456_v9 = vld [vmem:[#allocation3 + $0x1a8] sm:$0xff] }
 0x348   : > { %4625 = vmatprep.mubr.msk.f32.mxu1 %vm700_vm1, %v2441_v34  ;;  %4917 = vmatpush3.bf16.msra.mxu1 %v4914_v26 }
 0x349   : > { %1649 = vrot.lane.b32.xlu1 %v5971_v22, %s7070_s20  ;;  %4919 = vmatprep.subr.bf16.mxu1 %v4918_v47 }
 0x34a   : > { %v2038_v17 = vpop.permute.xlu1 %2037  ;;  %v2463_v28 = vld [vmem:[#allocation3 + $0x1e0] sm:$0xff] }
 0x34b   : > { %4626 = vmatmul.mubr.msk.f32.gmra.mrb[52].mxu1 %vm700_vm1, %v2442_v33 }
 0x34c   : > { %4628 = vmatprep.mubr.msk.f32.mxu1 %vm700_vm1, %v2443_v23  ;;  %4921 = vmatpush3.bf16.msra.mxu1 %v4918_v47  ;;  %v2459_v47 = vld [vmem:[#allocation3 + $0x1c0] sm:$0xff] }
 0x34d   : > { %1651 = vrot.lane.b32.xlu1 %v5976_v53, %s7070_s20  ;;  %4923 = vmatprep.subr.bf16.mxu1 %v4922_v24 }
 0x34e   : > { %v2040_v40 = vpop.permute.xlu1 %2039 }
 0x34f   : > { %v2041_v49 = vsel %vm1963_vm4, %v2038_v17, %v2040_v40  ;;  %4629 = vmatmul.mubr.msk.f32.gmra.mrb[54].mxu1 %vm700_vm1, %v2444_v60  ;;  %v2461_v17 = vld [vmem:[#allocation3 + $0x1d0] sm:$0xff] }
 0x350   : > { %2043 = vst.msk [vmem:[#allocation2 + $0x2f8] sm:$0xff] %vm700_vm1, %v2041_v49  ;;  %4631 = vmatprep.mubr.msk.f32.mxu1 %vm700_vm1, %v2445_v15  ;;  %4925 = vmatpush3.bf16.msra.mxu1 %v4922_v24 }
 0x351   : > { %1727 = vrot.lane.b32.xlu1 %v5971_v22, %s7064_s22  ;;  %4927 = vmatprep.subr.bf16.mxu1 %v4926_v5 }
 0x352   : > { %v1916_v7 = vpop.permute.xlu1 %1915 }
 0x353   : > { %1918 = vst.msk [vmem:[#allocation2 + $0x2f0] sm:$0xff] %vm700_vm1, %v1916_v7  ;;  %4632 = vmatmul.mubr.msk.f32.gmra.mrb[56].mxu1 %vm700_vm1, %v2446_v48 }
 0x354   : > { %4634 = vmatprep.mubr.msk.f32.mxu1 %vm700_vm1, %v2447_v12  ;;  %4929 = vmatpush3.bf16.msra.mxu1 %v4926_v5 }
 0x355   : > { %1729 = vrot.lane.b32.xlu1 %v5976_v53, %s7064_s22  ;;  %4931 = vmatprep.subr.bf16.mxu1 %v4930_v42 }
 0x356   : > { %v2015_v0 = vpop.permute.xlu1 %2014 }
 0x357   : > { %v2020_v57 = vsel %vm1963_vm4, %v6405_v41, %v2015_v0  ;;  %4635 = vmatmul.mubr.msk.f32.gmra.mrb[58].mxu1 %vm700_vm1, %v2448_v13  ;;  %v3147_v38 = vld [vmem:[#allocation2 + $0x2f8] sm:$0xff]  ;;  %v2451_v41 = vld [vmem:[#allocation3 + $0x180] sm:$0xff] }
 0x358   : > { %2024 = vst.msk [vmem:[#allocation3 + $0x1f0] sm:$0xff] %vm700_vm1, %v2020_v57  ;;  %4637 = vmatprep.mubr.msk.f32.mxu1 %vm700_vm1, %v2449_v50  ;;  %4933 = vmatpush3.bf16.msra.mxu1 %v4930_v42 }
 0x359   : > { %1805 = vrot.lane.b32.xlu1 %v5971_v22, %s7067_s12 }
 0x35a   : > { %v2019_v29 = vpop.permute.xlu1 %2018  ;;  %v3146_v10 = vld [vmem:[#allocation2 + $0x2f0] sm:$0xff] }
 0x35b   : > { %v2021_v61 = vsel %vm1963_vm4, %v6419_v16, %v2019_v29  ;;  %4638 = vmatmul.mubr.msk.f32.gmra.mrb[60].mxu1 %vm700_vm1, %v2450_v31  ;;  %v4934_v11 = vpack.c.bf16 %v3147_v38, %v3146_v10  ;;  %v2453_v16 = vld [vmem:[#allocation3 + $0x190] sm:$0xff] }
 0x35c   : > { %2025 = vst.msk [vmem:[#allocation3 + $0x1f8] sm:$0xff] %vm700_vm1, %v2021_v61  ;;  %4640 = vmatprep.mubr.msk.f32.mxu1 %vm700_vm1, %v2451_v41 }
 0x35d   : > { %1807 = vrot.lane.b32.xlu1 %v5976_v53, %s7067_s12  ;;  %4935 = vmatprep.subr.bf16.mxu1 %v4934_v11 }
 0x35e   : > { %1537 = vrot.lane.b32.xlu0 %v5785_v58, %s7074_s1  ;;  %4937 = vmatpush3.bf16.msra.mxu1 %v4934_v11  ;;  %v756_v26 = vpop.permute.xlu1 %755  ;;  %v2455_v58 = vld [vmem:[#allocation3 + $0x1a0] sm:$0xff] }
 0x35f   : > { %761 = vst.msk [vmem:[#allocation3 + $0x10] sm:$0xff] %vm700_vm1, %v756_v26  ;;  %4641 = vmatmul.mubr.msk.f32.gmra.mrb[62].mxu1 %vm700_vm1, %v2452_v1  ;;  %v2465_v24 = vld [vmem:[#allocation3 + $0x1f0] sm:$0xff] }
 0x360   : > { %4643 = vmatprep.mubr.msk.f32.mxu1 %vm700_vm1, %v2453_v16 }
 0x361   : > { %1883 = vrot.lane.b32.xlu1 %v5971_v22, %s7065_s29 }
 0x362   : > { %1982 = vrot.lane.b32.xlu0 %v5976_v53, %s7072_s17  ;;  %v758_v36 = vpop.permute.xlu1 %757 }
 0x363   : > { %762 = vst.msk [vmem:[#allocation3 + $0x18] sm:$0xff] %vm700_vm1, %v758_v36  ;;  %4644 = vmatmul.mubr.msk.f32.gmra.mrb[64].mxu1 %vm700_vm1, %v2454_v30  ;;  %v2466_v60 = vld [vmem:[#allocation3 + $0x1f8] sm:$0xff] }
 0x364   : > { %4646 = vmatprep.mubr.msk.f32.mxu1 %vm700_vm1, %v2455_v58 }
 0x365   : > { %1885 = vrot.lane.b32.xlu1 %v5976_v53, %s7065_s29  ;;  %v2458_v53 = vld [vmem:[#allocation3 + $0x1b8] sm:$0xff] }
 0x366   : > { %v838_v44 = vpop.permute.xlu1 %837  ;;  %795 = vrot.lane.b32.xlu0 %v6335_v18, %s7053_s27 }
 0x367   : > { %843 = vst.msk [vmem:[#allocation3 + $0x20] sm:$0xff] %vm700_vm1, %v838_v44  ;;  %4647 = vmatmul.mubr.msk.f32.gmra.mrb[66].mxu1 %vm700_vm1, %v2456_v9 }
 0x368   : > { %4649 = vmatprep.mubr.msk.f32.mxu1 %vm700_vm1, %v2457_v46 }
 0x369   : > { %1978 = vrot.lane.b32.xlu1 %v5971_v22, %s7072_s17  ;;  %v2460_v22 = vld [vmem:[#allocation3 + $0x1c8] sm:$0xff] }
 0x36a   : > { %v840_v34 = vpop.permute.xlu1 %839  ;;  %873 = vrot.lane.b32.xlu0 %v6335_v18, %s7059_s21 }
 0x36b   : > { %844 = vst.msk [vmem:[#allocation3 + $0x28] sm:$0xff] %vm700_vm1, %v840_v34  ;;  %4650 = vmatmul.mubr.msk.f32.gmra.mrb[68].mxu1 %vm700_vm1, %v2458_v53 }
 0x36c   : > { %4652 = vmatprep.mubr.msk.f32.mxu1 %vm700_vm1, %v2459_v47 }
 0x36d   : > { %1980 = vrot.lane.b32.xlu1 %v5974_v35, %s7072_s17  ;;  %v2462_v35 = vld [vmem:[#allocation3 + $0x1d8] sm:$0xff] }
 0x36e   : > { %v916_v45 = vpop.permute.xlu1 %915  ;;  %951 = vrot.lane.b32.xlu0 %v6335_v18, %s7055_s26 }
 0x36f   : > { %921 = vst.msk [vmem:[#allocation3 + $0x30] sm:$0xff] %vm700_vm1, %v916_v45  ;;  %4653 = vmatmul.mubr.msk.f32.gmra.mrb[70].mxu1 %vm700_vm1, %v2460_v22 }
 0x370   : > { %4655 = vmatprep.mubr.msk.f32.mxu1 %vm700_vm1, %v2461_v17 }
 0x371   : > { %1984 = vrot.lane.b32.xlu1 %v5982_v63, %s7072_s17  ;;  %v2464_v63 = vld [vmem:[#allocation3 + $0x1e8] sm:$0xff] }
 0x372   : > { %v918_v33 = vpop.permute.xlu1 %917  ;;  %1029 = vrot.lane.b32.xlu0 %v6335_v18, %s7073_s0 }
 0x373   : > { %922 = vst.msk [vmem:[#allocation3 + $0x38] sm:$0xff] %vm700_vm1, %v918_v33  ;;  %4656 = vmatmul.mubr.msk.f32.gmra.mrb[72].mxu1 %vm700_vm1, %v2462_v35 }
 0x374   : > { %4658 = vmatprep.mubr.msk.f32.mxu1 %vm700_vm1, %v2463_v28 }
 0x375   : > { %797 = vrot.lane.b32.xlu1 %v5564_v4, %s7053_s27 }
 0x376   : > { %v994_v23 = vpop.permute.xlu1 %993  ;;  %1156 = vrot.lane.b32.xlu0 %v6335_v18, %s7066_s19 }
 0x377   : > { %999 = vst.msk [vmem:[#allocation3 + $0x40] sm:$0xff] %vm700_vm1, %v994_v23  ;;  %4659 = vmatmul.mubr.msk.f32.gmra.mrb[74].mxu1 %vm700_vm1, %v2464_v63 }
 0x378   : > { %4661 = vmatprep.mubr.msk.f32.mxu1 %vm700_vm1, %v2465_v24 }
 0x379   : > { %875 = vrot.lane.b32.xlu1 %v5564_v4, %s7059_s21  ;;  %v3164_v52 = vpop.trf.xlu0  ;;  %s4318_s21 = sld [smem:[#allocation5 + $0x2]] }
 0x37a   : > { %v996_v40 = vpop.permute.xlu1 %995  ;;  %1160 = vrot.lane.b32.xlu0 %v5564_v4, %s7066_s19 }
 0x37b   : > { %1000 = vst.msk [vmem:[#allocation3 + $0x48] sm:$0xff] %vm700_vm1, %v996_v40  ;;  %4662 = vmatmul.mubr.msk.f32.gmra.mrb[76].mxu1 %vm700_vm1, %v2466_v60 }
 0x37c   : > { %4752 = vmatprep.mubr.f32.mxu1 %v3164_v52 }
 0x37d   : > { %953 = vrot.lane.b32.xlu1 %v5564_v4, %s7055_s26  ;;  %v3165_v18 = vpop.trf.xlu0 }
 0x37e   : > { %v1089_v3 = vpop.permute.xlu1 %1088  ;;  %1240 = vrot.lane.b32.xlu0 %v6363_v21, %s7060_s9 }
 0x37f   : > { %4753 = vmatmul.mubr.f32.vlgmr.msra.gmra.mrb[78].mxu1 %v3165_v18 }
 0x381   : > { %1031 = vrot.lane.b32.xlu1 %v5564_v4, %s7073_s0  ;;  %v3166_v49 = vpop.trf.xlu0  ;;  %s2217_s0 = sld [smem:[#allocation5]] }
 0x382   : > { %v1091_v15 = vpop.permute.xlu1 %1090  ;;  %1318 = vrot.lane.b32.xlu0 %v6363_v21, %s7075_s2  ;;  %4755 = vmatprep.mubr.f32.mxu1 %v3166_v49 }
 0x383   : > { %v1096_v5 = vsel %vm1073_vm2, %v1089_v3, %v1091_v15 }
 0x384   : > { %1100 = vst.msk [vmem:[#allocation3 + $0x50] sm:$0xff] %vm700_vm1, %v1096_v5 }
 0x385   : > { %1158 = vrot.lane.b32.xlu1 %v6363_v21, %s7066_s19  ;;  %v3167_v6 = vpop.trf.xlu0 }
 0x386   : > { %4756 = vmatmul.mubr.f32.gmra.mrb[80].mxu1 %v3167_v6  ;;  %v1093_v7 = vpop.permute.xlu1 %1092  ;;  %1396 = vrot.lane.b32.xlu0 %v6363_v21, %s7068_s14 }
 0x387   : > { %3983 = vmatprep.mubr.f32.mxu1 %v7062_v56 }
 0x389   : > { %1162 = vrot.lane.b32.xlu1 %v5573_v8, %s7066_s19  ;;  %s7094_s19 = sld [smem:[#allocation22_spill]] }
 0x38a   : > { %v1095_v4 = vpop.permute.xlu1 %1094  ;;  %1474 = vrot.lane.b32.xlu0 %v6363_v21, %s7076_s6 }
 0x38b   : > { %v1097_v48 = vsel %vm1073_vm2, %v1093_v7, %v1095_v4 }
 0x38c   : > { %1101 = vst.msk [vmem:[#allocation3 + $0x58] sm:$0xff] %vm700_vm1, %v1097_v48 }
 0x38d   : > { %1242 = vrot.lane.b32.xlu1 %v5573_v8, %s7060_s9 }
 0x38e   : > { %v1205_v14 = vpop.permute.xlu1 %1204  ;;  %1601 = vrot.lane.b32.xlu0 %v6363_v21, %s7074_s1 }
 0x38f   : > { %1210 = vst.msk [vmem:[#allocation3 + $0x60] sm:$0xff] %vm700_vm1, %v1205_v14 }
 0x391   : > { %1320 = vrot.lane.b32.xlu1 %v5573_v8, %s7075_s2  ;;  %s7082_s2 = smov 47  }
 0x392   : > { %v1207_v12 = vpop.permute.xlu1 %1206  ;;  %1605 = vrot.lane.b32.xlu0 %v5573_v8, %s7074_s1 }
 0x393   : > { %1211 = vst.msk [vmem:[#allocation3 + $0x68] sm:$0xff] %vm700_vm1, %v1207_v12 }
 0x395   : > { %1398 = vrot.lane.b32.xlu1 %v5573_v8, %s7068_s14 }
 0x396   : > { %v1283_v42 = vpop.permute.xlu1 %1282  ;;  %1685 = vrot.lane.b32.xlu0 %v6222_v39, %s7070_s20 }
 0x397   : > { %1288 = vst.msk [vmem:[#allocation3 + $0x70] sm:$0xff] %vm700_vm1, %v1283_v42 }
 0x399   : > { %1476 = vrot.lane.b32.xlu1 %v5573_v8, %s7076_s6  ;;  %s7083_s6 = smov 97  }
 0x39a   : > { %v1285_v21 = vpop.permute.xlu1 %1284  ;;  %1763 = vrot.lane.b32.xlu0 %v6222_v39, %s7064_s22 }
 0x39b   : > { %1289 = vst.msk [vmem:[#allocation3 + $0x78] sm:$0xff] %vm700_vm1, %v1285_v21 }
 0x39d   : > { %1603 = vrot.lane.b32.xlu1 %v6222_v39, %s7074_s1 }
 0x39e   : > { %v1361_v0 = vpop.permute.xlu1 %1360  ;;  %1841 = vrot.lane.b32.xlu0 %v6222_v39, %s7067_s12 }
 0x39f   : > { %1366 = vst.msk [vmem:[#allocation3 + $0x80] sm:$0xff] %vm700_vm1, %v1361_v0 }
 0x3a1   : > { %1607 = vrot.lane.b32.xlu1 %v6231_v62, %s7074_s1 }
 0x3a2   : > { %v1363_v13 = vpop.permute.xlu1 %1362  ;;  %1919 = vrot.lane.b32.xlu0 %v6222_v39, %s7065_s29 }
 0x3a3   : > { %1367 = vst.msk [vmem:[#allocation3 + $0x88] sm:$0xff] %vm700_vm1, %v1363_v13 }
 0x3a5   : > { %1687 = vrot.lane.b32.xlu1 %v6231_v62, %s7070_s20 }
 0x3a6   : > { %v1439_v8 = vpop.permute.xlu1 %1438  ;;  %2046 = vrot.lane.b32.xlu0 %v6222_v39, %s7072_s17 }
 0x3a7   : > { %1444 = vst.msk [vmem:[#allocation3 + $0x90] sm:$0xff] %vm700_vm1, %v1439_v8 }
 0x3a9   : > { %1765 = vrot.lane.b32.xlu1 %v6231_v62, %s7064_s22 }
 0x3aa   : > { %v1441_v57 = vpop.permute.xlu1 %1440  ;;  %2050 = vrot.lane.b32.xlu0 %v6231_v62, %s7072_s17 }
 0x3ab   : > { %1445 = vst.msk [vmem:[#allocation3 + $0x98] sm:$0xff] %vm700_vm1, %v1441_v57 }
 0x3ad   : > { %1843 = vrot.lane.b32.xlu1 %v6231_v62, %s7067_s12  ;;  %s7090_s12 = sld [smem:[#allocation9_spill]] }
 0x3ae   : > { %v1534_v50 = vpop.permute.xlu1 %1533 }
 0x3b1   : > { %1921 = vrot.lane.b32.xlu1 %v6231_v62, %s7065_s29 }
 0x3b3   : > { %v1536_v29 = vpop.permute.xlu1 %1535 }
 0x3b4   : > { %v1541_v39 = vsel %vm1518_vm3, %v1534_v50, %v1536_v29 }
 0x3b5   : > { %1545 = vst.msk [vmem:[#allocation3 + $0xa0] sm:$0xff] %vm700_vm1, %v1541_v39  ;;  %2048 = vrot.lane.b32.xlu1 %v6226_v59, %s7072_s17 }
 0x3b7   : > { %v1540_v31 = vpop.permute.xlu1 %1539 }
 0x3b9   : > { %2052 = vrot.lane.b32.xlu1 %v6233_v19, %s7072_s17  ;;  %s7093_s17 = sshll.u32 %s7090_s12, 6 }
 0x3ba   : > { %s6936_s20 = scalar_lea.vmem %s7094_s19, %s7093_s17 }
 0x3bb   : > { %v1650_v10 = vpop.permute.xlu1 %1649 }
 0x3bc   : > { %1655 = vst.msk [vmem:[#allocation3 + $0xb0] sm:$0xff] %vm700_vm1, %v1650_v10 }
 0x3bf   : > { %v1652_v38 = vpop.permute.xlu1 %1651 }
 0x3c0   : > { %1656 = vst.msk [vmem:[#allocation3 + $0xb8] sm:$0xff] %vm700_vm1, %v1652_v38 }
 0x3c3   : > { %v1728_v61 = vpop.permute.xlu1 %1727 }
 0x3c4   : > { %1733 = vst.msk [vmem:[#allocation3 + $0xc0] sm:$0xff] %vm700_vm1, %v1728_v61 }
 0x3c7   : > { %v1730_v62 = vpop.permute.xlu1 %1729 }
 0x3c8   : > { %1734 = vst.msk [vmem:[#allocation3 + $0xc8] sm:$0xff] %vm700_vm1, %v1730_v62 }
 0x3cb   : > { %v1806_v41 = vpop.permute.xlu1 %1805 }
 0x3cc   : > { %1811 = vst.msk [vmem:[#allocation3 + $0xd0] sm:$0xff] %vm700_vm1, %v1806_v41 }
 0x3cf   : > { %v1808_v59 = vpop.permute.xlu1 %1807 }
 0x3d0   : > { %1812 = vst.msk [vmem:[#allocation3 + $0xd8] sm:$0xff] %vm700_vm1, %v1808_v59  ;;  %v1538_v11 = vpop.permute.xlu0 %1537 }
 0x3d1   : > { %v1542_v19 = vsel %vm1518_vm3, %v1538_v11, %v1540_v31 }
 0x3d2   : > { %1546 = vst.msk [vmem:[#allocation3 + $0xa8] sm:$0xff] %vm700_vm1, %v1542_v19 }
 0x3d3   : > { %v1884_v26 = vpop.permute.xlu1 %1883 }
 0x3d4   : > { %1889 = vst.msk [vmem:[#allocation3 + $0xe0] sm:$0xff] %vm700_vm1, %v1884_v26  ;;  %v1983_v1 = vpop.permute.xlu0 %1982 }
 0x3d7   : > { %v1886_v16 = vpop.permute.xlu1 %1885 }
 0x3d8   : > { %1890 = vst.msk [vmem:[#allocation3 + $0xe8] sm:$0xff] %vm700_vm1, %v1886_v16  ;;  %v796_v36 = vpop.permute.xlu0 %795 }
 0x3d9   : > { %801 = vst.msk [vmem:[#allocation3 + $0x210] sm:$0xff] %vm700_vm1, %v796_v36  ;;  %v2218_v36 = vstv %s2217_s0 }
 0x3db   : > { %v1979_v30 = vpop.permute.xlu1 %1978 }
 0x3dc   : > { %v874_v58 = vpop.permute.xlu0 %873 }
 0x3dd   : > { %879 = vst.msk [vmem:[#allocation3 + $0x220] sm:$0xff] %vm700_vm1, %v874_v58 }
 0x3df   : > { %v1981_v44 = vpop.permute.xlu1 %1980 }
 0x3e0   : > { %v1986_v9 = vsel %vm1963_vm4, %v1979_v30, %v1981_v44  ;;  %v952_v46 = vpop.permute.xlu0 %951  ;;  %v2224_v44 = vld [vmem:[%s6959_s3 + $0x8] sm:$0xff] }
 0x3e1   : > { %1990 = vst.msk [vmem:[#allocation3 + $0xf0] sm:$0xff] %vm700_vm1, %v1986_v9  ;;  %957 = vst.msk [vmem:[#allocation3 + $0x230] sm:$0xff] %vm700_vm1, %v952_v46 }
 0x3e3   : > { %v1985_v34 = vpop.permute.xlu1 %1984 }
 0x3e4   : > { %v1987_v53 = vsel %vm1963_vm4, %v1983_v1, %v1985_v34  ;;  %v1030_v47 = vpop.permute.xlu0 %1029 }
 0x3e5   : > { %1991 = vst.msk [vmem:[#allocation3 + $0xf8] sm:$0xff] %vm700_vm1, %v1987_v53  ;;  %1035 = vst.msk [vmem:[#allocation3 + $0x240] sm:$0xff] %vm700_vm1, %v1030_v47  ;;  %v2223_v47 = vld [vmem:[%s6959_s3] sm:$0xff] }
 0x3e7   : > { %v798_v45 = vpop.permute.xlu1 %797 }
 0x3e8   : > { %802 = vst.msk [vmem:[#allocation3 + $0x218] sm:$0xff] %vm700_vm1, %v798_v45  ;;  %v1157_v22 = vpop.permute.xlu0 %1156 }
 0x3eb   : > { %v876_v17 = vpop.permute.xlu1 %875 }
 0x3ec   : > { %880 = vst.msk [vmem:[#allocation3 + $0x228] sm:$0xff] %vm700_vm1, %v876_v17  ;;  %v1161_v33 = vpop.permute.xlu0 %1160 }
 0x3ef   : > { %v954_v35 = vpop.permute.xlu1 %953 }
 0x3f0   : > { %958 = vst.msk [vmem:[#allocation3 + $0x238] sm:$0xff] %vm700_vm1, %v954_v35  ;;  %v1241_v28 = vpop.permute.xlu0 %1240 }
 0x3f1   : > { %1246 = vst.msk [vmem:[#allocation3 + $0x260] sm:$0xff] %vm700_vm1, %v1241_v28 }
 0x3f3   : > { %v1032_v23 = vpop.permute.xlu1 %1031 }
 0x3f4   : > { %1036 = vst.msk [vmem:[#allocation3 + $0x248] sm:$0xff] %vm700_vm1, %v1032_v23  ;;  %v1319_v63 = vpop.permute.xlu0 %1318 }
 0x3f5   : > { %1324 = vst.msk [vmem:[#allocation3 + $0x270] sm:$0xff] %vm700_vm1, %v1319_v63 }
 0x3f7   : > { %v1159_v24 = vpop.permute.xlu1 %1158  ;;  %v3295_v37 = vld [vmem:[#allocation3 + $0x238] sm:$0xff] }
 0x3f8   : > { %v1164_v52 = vsel %vm1073_vm2, %v1157_v22, %v1159_v24  ;;  %v1397_v40 = vpop.permute.xlu0 %1396 }
 0x3f9   : > { %1168 = vst.msk [vmem:[#allocation3 + $0x250] sm:$0xff] %vm700_vm1, %v1164_v52  ;;  %1402 = vst.msk [vmem:[#allocation3 + $0x280] sm:$0xff] %vm700_vm1, %v1397_v40  ;;  %v2226_v40 = vld [vmem:[%s6959_s3 + $0x18] sm:$0x1] }
 0x3fb   : > { %v1163_v60 = vpop.permute.xlu1 %1162 }
 0x3fc   : > { %v1165_v18 = vsel %vm1073_vm2, %v1161_v33, %v1163_v60  ;;  %v1475_v3 = vpop.permute.xlu0 %1474  ;;  %vm3777_vm2 = vcmask 999176  }
 0x3fd   : > { %1169 = vst.msk [vmem:[#allocation3 + $0x258] sm:$0xff] %vm700_vm1, %v1165_v18  ;;  %1480 = vst.msk [vmem:[#allocation3 + $0x290] sm:$0xff] %vm700_vm1, %v1475_v3 }
 0x3ff   : > { %v1243_v49 = vpop.permute.xlu1 %1242 }
 0x400   : > { %1247 = vst.msk [vmem:[#allocation3 + $0x268] sm:$0xff] %vm700_vm1, %v1243_v49  ;;  %v1602_v15 = vpop.permute.xlu0 %1601 }
 0x403   : > { %v1321_v5 = vpop.permute.xlu1 %1320 }
 0x404   : > { %1325 = vst.msk [vmem:[#allocation3 + $0x278] sm:$0xff] %vm700_vm1, %v1321_v5  ;;  %v1606_v6 = vpop.permute.xlu0 %1605 }
 0x407   : > { %v1399_v7 = vpop.permute.xlu1 %1398 }
 0x408   : > { %1403 = vst.msk [vmem:[#allocation3 + $0x288] sm:$0xff] %vm700_vm1, %v1399_v7  ;;  %v1686_v4 = vpop.permute.xlu0 %1685 }
 0x409   : > { %1691 = vst.msk [vmem:[#allocation3 + $0x2b0] sm:$0xff] %vm700_vm1, %v1686_v4 }
 0x40b   : > { %v1477_v48 = vpop.permute.xlu1 %1476 }
 0x40c   : > { %1481 = vst.msk [vmem:[#allocation3 + $0x298] sm:$0xff] %vm700_vm1, %v1477_v48  ;;  %v1764_v14 = vpop.permute.xlu0 %1763 }
 0x40d   : > { %1769 = vst.msk [vmem:[#allocation3 + $0x2c0] sm:$0xff] %vm700_vm1, %v1764_v14 }
 0x40f   : > { %v1604_v12 = vpop.permute.xlu1 %1603 }
 0x410   : > { %v1609_v42 = vsel %vm1518_vm3, %v1602_v15, %v1604_v12  ;;  %v1842_v21 = vpop.permute.xlu0 %1841  ;;  %v2225_v15 = vld [vmem:[%s6959_s3 + $0x10] sm:$0xff] }
 0x411   : > { %1613 = vst.msk [vmem:[#allocation3 + $0x2a0] sm:$0xff] %vm700_vm1, %v1609_v42  ;;  %1847 = vst.msk [vmem:[#allocation3 + $0x2d0] sm:$0xff] %vm700_vm1, %v1842_v21  ;;  %v4566_v0 = vpop.f32.mrb[22].mxu0 }
 0x412   : > { %v6643_v13 = vpop.f32.mrb[46].mxu1  ;;  %v2210_v8 = vmul.f32 0.0078125, %v4566_v0  ;;  %v2190_v57 = vpop.f32.mrb[23].mxu0 }
 0x413   : > { %v1608_v50 = vpop.permute.xlu1 %1607  ;;  %v6645_v29 = vpop.f32.mrb[47].mxu1  ;;  %v2209_v39 = vmul.f32 0.0078125, %v2190_v57  ;;  %v6701_v57 = vld [vmem:[%s6961_s5 + $0x8] sm:$0xff] }
 0x414   : > { %v1610_v31 = vsel %vm1518_vm3, %v1606_v6, %v1608_v50  ;;  %v1920_v10 = vpop.permute.xlu0 %1919  ;;  %5090 = vtanh.f32 %v2210_v8  ;;  %v6706_v50 = vld [vmem:[%s6961_s5] sm:$0xff]  ;;  %vm3788_vm3 = vcmask 1048528  }
 0x415   : > { %1614 = vst.msk [vmem:[#allocation3 + $0x2a8] sm:$0xff] %vm700_vm1, %v1610_v31  ;;  %1925 = vst.msk [vmem:[#allocation3 + $0x2e0] sm:$0xff] %vm700_vm1, %v1920_v10  ;;  %5092 = vtanh.f32 %v2209_v39  ;;  %v5166_v31 = vmov 0   ;;  %v2232_v10 = vld [vmem:[#allocation3 + $0x8] sm:$0xff] }
 0x416   : > { %v6650_v38 = vpop.f32.mrb[48].mxu1  ;;  %5077 = vset.pattern.permute.xlu1 %v5166_v31  ;;  %5076 = vset.pattern.permute.xlu0 %v5166_v31  ;;  %v2249_v31 = vld [vmem:[#allocation3 + $0x90] sm:$0xff] }
 0x417   : > { %v1688_v61 = vpop.permute.xlu1 %1687  ;;  %v6652_v62 = vpop.f32.mrb[49].mxu1  ;;  %3876 = vperm.xlu1 %5077, %v6701_v57   ;;  %3871 = vperm.xlu0 %5076, %v6706_v50  }
 0x418   : > { %1692 = vst.msk [vmem:[#allocation3 + $0x2b8] sm:$0xff] %vm700_vm1, %v1688_v61  ;;  %v2047_v23 = vpop.permute.xlu0 %2046 }
 0x419   : > { %v4569_v41 = vpop.f32.mrb[24].mxu0 }
 0x41a   : > { %v2212_v59 = vmul.f32 0.0078125, %v4569_v41  ;;  %v6655_v11 = vpop.f32.mrb[50].mxu1  ;;  %v2200_v19 = vpop.f32.mrb[25].mxu0  ;;  %v2233_v41 = vld [vmem:[#allocation3 + $0x10] sm:$0xff] }
 0x41b   : > { %v1766_v26 = vpop.permute.xlu1 %1765  ;;  %v2211_v1 = vmul.f32 0.0078125, %v2200_v19  ;;  %v6657_v16 = vpop.f32.mrb[51].mxu1  ;;  %v2234_v19 = vld [vmem:[#allocation3 + $0x18] sm:$0xff] }
 0x41c   : > { %5094 = vtanh.f32 %v2212_v59  ;;  %1770 = vst.msk [vmem:[#allocation3 + $0x2c8] sm:$0xff] %vm700_vm1, %v1766_v26  ;;  %v2051_v4 = vpop.permute.xlu0 %2050 }
 0x41d   : > { %5096 = vtanh.f32 %v2211_v1  ;;  %v2235_v1 = vld [vmem:[#allocation3 + $0x20] sm:$0xff] }
 0x41e   : > { %v5091_v30 = vpop.eup %5090  ;;  %v6660_v58 = vpop.f32.mrb[52].mxu1 }
 0x41f   : > { %v5093_v9 = vpop.eup %5092  ;;  %v1844_v46 = vpop.permute.xlu1 %1843  ;;  %v2220_v53 = vmul.f32 %v5091_v30, %v2218_v36  ;;  %v2236_v30 = vld [vmem:[#allocation3 + $0x28] sm:$0xff] }
 0x420   : > { %v6665_v34 = vpop.f32.mrb[53].mxu1  ;;  %1848 = vst.msk [vmem:[#allocation3 + $0x2d8] sm:$0xff] %vm700_vm1, %v1844_v46  ;;  %v2219_v45 = vmul.f32 %v5093_v9, %v2218_v36  ;;  %v2237_v9 = vld [vmem:[#allocation3 + $0x30] sm:$0xff] }
 0x421   : > { %v2228_v22 = vadd.f32 %v2224_v44, %v2220_v53  ;;  %v2238_v53 = vld [vmem:[#allocation3 + $0x38] sm:$0xff] }
 0x422   : > { %v6671_v17 = vpop.f32.mrb[54].mxu1  ;;  %v2227_v33 = vadd.f32 %v2223_v47, %v2219_v45  ;;  %v2239_v45 = vld [vmem:[#allocation3 + $0x40] sm:$0xff] }
 0x423   : > { %v1922_v35 = vpop.permute.xlu1 %1921  ;;  %v6673_v28 = vpop.f32.mrb[55].mxu1 }
 0x424   : > { %1926 = vst.msk [vmem:[#allocation3 + $0x2e8] sm:$0xff] %vm700_vm1, %v1922_v35  ;;  %v4896_v63 = vpack.c.bf16 %v2228_v22, %v2227_v33  ;;  %v2240_v33 = vld [vmem:[#allocation3 + $0x48] sm:$0xff] }
 0x426   : > { %v5095_v24 = vpop.eup %5094  ;;  %v6676_v52 = vpop.f32.mrb[56].mxu1  ;;  %4897 = vmatprep.subr.bf16.mxu0 %v4896_v63 }
 0x427   : > { %v5097_v60 = vpop.eup %5096  ;;  %v2049_v18 = vpop.permute.xlu1 %2048  ;;  %4899 = vmatpush3.bf16.msra.mxu0 %v4896_v63  ;;  %v2222_v49 = vmul.f32 %v5095_v24, %v2218_v36  ;;  %v2242_v24 = vld [vmem:[#allocation3 + $0x58] sm:$0xff] }
 0x428   : > { %v6681_v3 = vpop.f32.mrb[57].mxu1  ;;  %v2054_v5 = vsel %vm1963_vm4, %v2047_v23, %v2049_v18  ;;  %v2221_v6 = vmul.f32 %v5097_v60, %v2218_v36  ;;  %v2241_v23 = vld [vmem:[#allocation3 + $0x50] sm:$0xff]  ;;  %v2243_v60 = vld [vmem:[#allocation3 + $0x60] sm:$0xff] }
 0x429   : > { %2058 = vst.msk [vmem:[#allocation3 + $0x2f0] sm:$0xff] %vm700_vm1, %v2054_v5  ;;  %v2230_v7 = vadd.f32 %v2226_v40, %v2222_v49  ;;  %v2244_v49 = vld [vmem:[#allocation3 + $0x68] sm:$0xff]  ;;  %v2245_v5 = vld [vmem:[#allocation3 + $0x70] sm:$0xff] }
 0x42a   : > { %v6688_v48 = vpop.f32.mrb[58].mxu1  ;;  %v2229_v14 = vadd.f32 %v2225_v15, %v2221_v6 }
 0x42b   : > { %v2053_v12 = vpop.permute.xlu1 %2052  ;;  %v6690_v42 = vpop.f32.mrb[59].mxu1 }
 0x42c   : > { %v2055_v21 = vsel %vm1963_vm4, %v2051_v4, %v2053_v12  ;;  %v4900_v0 = vpack.c.bf16 %v2230_v7, %v2229_v14  ;;  %v2246_v7 = vld [vmem:[#allocation3 + $0x78] sm:$0xff]  ;;  %v2247_v14 = vld [vmem:[#allocation3 + $0x80] sm:$0xff]  ;;  %vm3790_vm4 = vcmask 154624  }
 0x42d   : > { %2059 = vst.msk [vmem:[#allocation3 + $0x2f8] sm:$0xff] %vm700_vm1, %v2055_v21  ;;  %v2248_v21 = vld [vmem:[#allocation3 + $0x88] sm:$0xff] }
 0x42e   : > { %v6694_v8 = vpop.f32.mrb[60].mxu1  ;;  %4902 = vmatprep.subr.msk.bf16.mxu0 %vm6424_vm7, %v4900_v0 }
 0x42f   : > { %v6708_v39 = vpop.f32.mrb[61].mxu1  ;;  %4905 = vmatpush3.bf16.msk.msra.mxu0 %vm6424_vm7, %v4900_v0 }
 0x432   : > { %v6714_v61 = vpop.f32.mrb[62].mxu1  ;;  %4673 = vmatmul.mubr.msk.f32.vlgmr.msra.gmra.mrb[26].mxu0 %vm700_vm1, %v2232_v10 }
 0x433   : > { %v6717_v59 = vpop.f32.mrb[63].mxu1  ;;  %4675 = vmatprep.mubr.msk.f32.mxu0 %vm700_vm1, %v2233_v41 }
 0x436   : > { %v6720_v26 = vpop.f32.mrb[64].mxu1  ;;  %4676 = vmatmul.mubr.msk.f32.gmra.mrb[28].mxu0 %vm700_vm1, %v2234_v19 }
 0x437   : > { %v6723_v36 = vpop.f32.mrb[65].mxu1  ;;  %4678 = vmatprep.mubr.msk.f32.mxu0 %vm700_vm1, %v2235_v1  ;;  %v2250_v1 = vld [vmem:[#allocation3 + $0x98] sm:$0xff] }
 0x43a   : > { %v6726_v44 = vpop.f32.mrb[66].mxu1  ;;  %4679 = vmatmul.mubr.msk.f32.gmra.mrb[30].mxu0 %vm700_vm1, %v2236_v30  ;;  %v2251_v30 = vld [vmem:[#allocation3 + $0xa0] sm:$0xff] }
 0x43b   : > { %v6729_v46 = vpop.f32.mrb[67].mxu1  ;;  %4681 = vmatprep.mubr.msk.f32.mxu0 %vm700_vm1, %v2237_v9 }
 0x43e   : > { %v6732_v47 = vpop.f32.mrb[68].mxu1  ;;  %4682 = vmatmul.mubr.msk.f32.gmra.mrb[32].mxu0 %vm700_vm1, %v2238_v53  ;;  %v2252_v53 = vld [vmem:[#allocation3 + $0xa8] sm:$0xff] }
 0x43f   : > { %v6735_v22 = vpop.f32.mrb[69].mxu1  ;;  %4684 = vmatprep.mubr.msk.f32.mxu0 %vm700_vm1, %v2239_v45 }
 0x442   : > { %v6738_v35 = vpop.f32.mrb[70].mxu1  ;;  %4685 = vmatmul.mubr.msk.f32.gmra.mrb[34].mxu0 %vm700_vm1, %v2240_v33 }
 0x443   : > { %v6741_v63 = vpop.f32.mrb[71].mxu1  ;;  %4687 = vmatprep.mubr.msk.f32.mxu0 %vm700_vm1, %v2241_v23  ;;  %v2253_v23 = vld [vmem:[#allocation3 + $0xb0] sm:$0xff] }
 0x446   : > { %v6744_v40 = vpop.f32.mrb[72].mxu1  ;;  %4688 = vmatmul.mubr.msk.f32.gmra.mrb[36].mxu0 %vm700_vm1, %v2242_v24 }
 0x447   : > { %v6747_v18 = vpop.f32.mrb[73].mxu1  ;;  %4690 = vmatprep.mubr.msk.f32.mxu0 %vm700_vm1, %v2243_v60  ;;  %v2254_v60 = vld [vmem:[#allocation3 + $0xb8] sm:$0xff] }
 0x44a   : > { %v6750_v15 = vpop.f32.mrb[74].mxu1  ;;  %4691 = vmatmul.mubr.msk.f32.gmra.mrb[38].mxu0 %vm700_vm1, %v2244_v49  ;;  %v3274_v49 = vstv %s4318_s21 }
 0x44b   : > { %v6753_v6 = vpop.f32.mrb[75].mxu1  ;;  %4693 = vmatprep.mubr.msk.f32.mxu0 %vm700_vm1, %v2245_v5  ;;  %v2255_v5 = vld [vmem:[#allocation3 + $0xc0] sm:$0xff] }
 0x44e   : > { %v6756_v4 = vpop.f32.mrb[76].mxu1  ;;  %4694 = vmatmul.mubr.msk.f32.gmra.mrb[40].mxu0 %vm700_vm1, %v2246_v7 }
 0x44f   : > { %v6759_v12 = vpop.f32.mrb[77].mxu1  ;;  %4696 = vmatprep.mubr.msk.f32.mxu0 %vm700_vm1, %v2247_v14  ;;  %v4320_v14 = vld [vmem:[%s6959_s3 + $0x48] sm:$0xff] }
 0x452   : > { %4697 = vmatmul.mubr.msk.f32.gmra.mrb[42].mxu0 %vm700_vm1, %v2248_v21  ;;  %v4754_v0 = vpop.f32.mrb[78].mxu1 }
 0x453   : > { %v3266_v10 = vmul.f32 0.0078125, %v4754_v0  ;;  %4699 = vmatprep.mubr.msk.f32.mxu0 %vm700_vm1, %v2249_v31  ;;  %v3246_v41 = vpop.f32.mrb[79].mxu1  ;;  %v4319_v31 = vld [vmem:[%s6959_s3 + $0x40] sm:$0xff] }
 0x454   : > { %v3265_v19 = vmul.f32 0.0078125, %v3246_v41 }
 0x455   : > { %5098 = vtanh.f32 %v3266_v10  ;;  %v2256_v10 = vld [vmem:[#allocation3 + $0xc8] sm:$0xff] }
 0x456   : > { %5100 = vtanh.f32 %v3265_v19  ;;  %4700 = vmatmul.mubr.msk.f32.gmra.mrb[44].mxu0 %vm700_vm1, %v2250_v1  ;;  %v2257_v19 = vld [vmem:[#allocation3 + $0xd0] sm:$0xff] }
 0x457   : > { %4702 = vmatprep.mubr.msk.f32.mxu0 %vm700_vm1, %v2251_v30 }
 0x459   : > { %v4757_v9 = vpop.f32.mrb[80].mxu1 }
 0x45a   : > { %v3268_v45 = vmul.f32 0.0078125, %v4757_v9  ;;  %4703 = vmatmul.mubr.msk.f32.gmra.mrb[46].mxu0 %vm700_vm1, %v2252_v53  ;;  %v3256_v33 = vpop.f32.mrb[81].mxu1  ;;  %v2258_v9 = vld [vmem:[#allocation3 + $0xd8] sm:$0xff] }
 0x45b   : > { %v3267_v24 = vmul.f32 0.0078125, %v3256_v33  ;;  %4705 = vmatprep.mubr.msk.f32.mxu0 %vm700_vm1, %v2253_v23  ;;  %v2259_v33 = vld [vmem:[#allocation3 + $0xe0] sm:$0xff]  ;;  %v4322_v23 = vld [vmem:[%s6959_s3 + $0x58] sm:$0x1] }
 0x45c   : > { %5102 = vtanh.f32 %v3268_v45 }
 0x45d   : > { %5104 = vtanh.f32 %v3267_v24 }
 0x45e   : > { %4706 = vmatmul.mubr.msk.f32.gmra.mrb[48].mxu0 %vm700_vm1, %v2254_v60 }
 0x45f   : > { %v5099_v7 = vpop.eup %5098  ;;  %4708 = vmatprep.mubr.msk.f32.mxu0 %vm700_vm1, %v2255_v5  ;;  %v4321_v5 = vld [vmem:[%s6959_s3 + $0x50] sm:$0xff] }
 0x460   : > { %v5101_v21 = vpop.eup %5100  ;;  %v3276_v0 = vmul.f32 %v5099_v7, %v3274_v49 }
 0x461   : > { %v3275_v41 = vmul.f32 %v5101_v21, %v3274_v49 }
 0x462   : > { %4709 = vmatmul.mubr.msk.f32.gmra.mrb[50].mxu0 %vm700_vm1, %v2256_v10  ;;  %v3285_v1 = vadd.f32 %v4320_v14, %v3276_v0  ;;  %v2260_v14 = vld [vmem:[#allocation3 + $0xe8] sm:$0xff]  ;;  %v2261_v0 = vld [vmem:[#allocation3 + $0xf0] sm:$0xff] }
 0x463   : > { %4711 = vmatprep.mubr.msk.f32.mxu0 %vm700_vm1, %v2257_v19  ;;  %v3284_v30 = vadd.f32 %v4319_v31, %v3275_v41  ;;  %v2262_v41 = vld [vmem:[#allocation3 + $0xf8] sm:$0xff]  ;;  %v3288_v19 = vld [vmem:[#allocation3 + $0x200] sm:$0xff] }
 0x465   : > { %v4938_v53 = vpack.c.bf16 %v3285_v1, %v3284_v30  ;;  %v3290_v1 = vld [vmem:[#allocation3 + $0x210] sm:$0xff]  ;;  %v3291_v30 = vld [vmem:[#allocation3 + $0x218] sm:$0xff] }
 0x466   : > { %v5103_v45 = vpop.eup %5102  ;;  %4712 = vmatmul.mubr.msk.f32.gmra.mrb[52].mxu0 %vm700_vm1, %v2258_v9  ;;  %v3292_v9 = vld [vmem:[#allocation3 + $0x220] sm:$0xff] }
 0x467   : > { %v5105_v24 = vpop.eup %5104  ;;  %4714 = vmatprep.mubr.msk.f32.mxu0 %vm700_vm1, %v2259_v33  ;;  %4939 = vmatprep.subr.bf16.mxu0 %v4938_v53  ;;  %v3278_v60 = vmul.f32 %v5103_v45, %v3274_v49  ;;  %v3294_v45 = vld [vmem:[#allocation3 + $0x230] sm:$0xff]  ;;  %v3296_v33 = vld [vmem:[#allocation3 + $0x240] sm:$0xff] }
 0x468   : > { %4941 = vmatpush3.bf16.msra.mxu0 %v4938_v53  ;;  %v3277_v7 = vmul.f32 %v5105_v24, %v3274_v49  ;;  %v3289_v49 = vld [vmem:[#allocation3 + $0x208] sm:$0xff]  ;;  %v3298_v24 = vld [vmem:[#allocation3 + $0x250] sm:$0xff] }
 0x469   : > { %v3287_v21 = vadd.f32 %v4322_v23, %v3278_v60  ;;  %v3293_v53 = vld [vmem:[#allocation3 + $0x228] sm:$0xff]  ;;  %v3299_v60 = vld [vmem:[#allocation3 + $0x258] sm:$0xff] }
 0x46a   : > { %4715 = vmatmul.mubr.msk.f32.gmra.mrb[54].mxu0 %vm700_vm1, %v2260_v14  ;;  %v3286_v31 = vadd.f32 %v4321_v5, %v3277_v7  ;;  %v3297_v23 = vld [vmem:[#allocation3 + $0x248] sm:$0xff]  ;;  %v3300_v5 = vld [vmem:[#allocation3 + $0x260] sm:$0xff]  ;;  %v3302_v14 = vld [vmem:[#allocation3 + $0x270] sm:$0xff] }
 0x46b   : > { %4717 = vmatprep.mubr.msk.f32.mxu0 %vm700_vm1, %v2261_v0  ;;  %v3301_v7 = vld [vmem:[#allocation3 + $0x268] sm:$0xff]  ;;  %v3304_v0 = vld [vmem:[#allocation3 + $0x280] sm:$0xff] }
 0x46c   : > { %v4942_v10 = vpack.c.bf16 %v3287_v21, %v3286_v31  ;;  %v3303_v21 = vld [vmem:[#allocation3 + $0x278] sm:$0xff]  ;;  %v3305_v31 = vld [vmem:[#allocation3 + $0x288] sm:$0xff] }
 0x46e   : > { %4718 = vmatmul.mubr.msk.f32.gmra.mrb[56].mxu0 %vm700_vm1, %v2262_v41  ;;  %4944 = vmatprep.subr.msk.bf16.mxu0 %vm6424_vm7, %v4942_v10  ;;  %v3307_v41 = vld [vmem:[#allocation3 + $0x298] sm:$0xff] }
 0x46f   : > { %4947 = vmatpush3.bf16.msk.msra.mxu0 %vm6424_vm7, %v4942_v10  ;;  %4766 = vmatprep.mubr.msk.f32.mxu0 %vm700_vm1, %v3288_v19  ;;  %v3306_v10 = vld [vmem:[#allocation3 + $0x290] sm:$0xff]  ;;  %v3308_v19 = vld [vmem:[#allocation3 + $0x2a0] sm:$0xff]  ;;  %vm3824_vm7 = vcmask 769576  }
 0x472   : > { %4767 = vmatmul.mubr.msk.f32.vlgmr.msra.gmra.mrb[26].mxu0 %vm700_vm1, %v3289_v49  ;;  %v3309_v49 = vld [vmem:[#allocation3 + $0x2a8] sm:$0xff] }
 0x473   : > { %4769 = vmatprep.mubr.msk.f32.mxu0 %vm700_vm1, %v3290_v1  ;;  %v3310_v1 = vld [vmem:[#allocation3 + $0x2b0] sm:$0xff] }
 0x476   : > { %4770 = vmatmul.mubr.msk.f32.gmra.mrb[28].mxu0 %vm700_vm1, %v3291_v30  ;;  %v3311_v30 = vld [vmem:[#allocation3 + $0x2b8] sm:$0xff] }
 0x477   : > { %4772 = vmatprep.mubr.msk.f32.mxu0 %vm700_vm1, %v3292_v9  ;;  %v3312_v9 = vld [vmem:[#allocation3 + $0x2c0] sm:$0xff] }
 0x47a   : > { %4773 = vmatmul.mubr.msk.f32.gmra.mrb[30].mxu0 %vm700_vm1, %v3293_v53  ;;  %v3313_v53 = vld [vmem:[#allocation3 + $0x2c8] sm:$0xff] }
 0x47b   : > { %4775 = vmatprep.mubr.msk.f32.mxu0 %vm700_vm1, %v3294_v45  ;;  %v3314_v45 = vld [vmem:[#allocation3 + $0x2d0] sm:$0xff] }
 0x47e   : > { %4776 = vmatmul.mubr.msk.f32.gmra.mrb[32].mxu0 %vm700_vm1, %v3295_v37  ;;  %v3315_v37 = vld [vmem:[#allocation3 + $0x2d8] sm:$0xff] }
 0x47f   : > { %4778 = vmatprep.mubr.msk.f32.mxu0 %vm700_vm1, %v3296_v33  ;;  %v3316_v33 = vld [vmem:[#allocation3 + $0x2e0] sm:$0xff] }
 0x482   : > { %4779 = vmatmul.mubr.msk.f32.gmra.mrb[34].mxu0 %vm700_vm1, %v3297_v23  ;;  %v3317_v23 = vld [vmem:[#allocation3 + $0x2e8] sm:$0xff] }
 0x483   : > { %4781 = vmatprep.mubr.msk.f32.mxu0 %vm700_vm1, %v3298_v24  ;;  %v3318_v24 = vld [vmem:[#allocation3 + $0x2f0] sm:$0xff] }
 0x486   : > { %4782 = vmatmul.mubr.msk.f32.gmra.mrb[36].mxu0 %vm700_vm1, %v3299_v60  ;;  %v3319_v60 = vld [vmem:[#allocation3 + $0x2f8] sm:$0xff] }
 0x487   : > { %4784 = vmatprep.mubr.msk.f32.mxu0 %vm700_vm1, %v3300_v5  ;;  %v5167_v5 = vmov 1  }
 0x488   : > { %5078 = vset.pattern.permute.xlu1 %v5167_v5  ;;  %5079 = vset.pattern.permute.xlu0 %v5167_v5 }
 0x48a   : > { %4785 = vmatmul.mubr.msk.f32.gmra.mrb[38].mxu0 %vm700_vm1, %v3301_v7 }
 0x48b   : > { %4787 = vmatprep.mubr.msk.f32.mxu0 %vm700_vm1, %v3302_v14 }
 0x48e   : > { %4788 = vmatmul.mubr.msk.f32.gmra.mrb[40].mxu0 %vm700_vm1, %v3303_v21 }
 0x48f   : > { %4790 = vmatprep.mubr.msk.f32.mxu0 %vm700_vm1, %v3304_v0 }
 0x492   : > { %4791 = vmatmul.mubr.msk.f32.gmra.mrb[42].mxu0 %vm700_vm1, %v3305_v31 }
 0x493   : > { %4793 = vmatprep.mubr.msk.f32.mxu0 %vm700_vm1, %v3306_v10 }
 0x496   : > { %4794 = vmatmul.mubr.msk.f32.gmra.mrb[44].mxu0 %vm700_vm1, %v3307_v41 }
 0x497   : > { %4796 = vmatprep.mubr.msk.f32.mxu0 %vm700_vm1, %v3308_v19 }
 0x49a   : > { %4797 = vmatmul.mubr.msk.f32.gmra.mrb[46].mxu0 %vm700_vm1, %v3309_v49 }
 0x49b   : > { %4799 = vmatprep.mubr.msk.f32.mxu0 %vm700_vm1, %v3310_v1 }
 0x49e   : > { %4800 = vmatmul.mubr.msk.f32.gmra.mrb[48].mxu0 %vm700_vm1, %v3311_v30 }
 0x49f   : > { %4802 = vmatprep.mubr.msk.f32.mxu0 %vm700_vm1, %v3312_v9 }
 0x4a2   : > { %4803 = vmatmul.mubr.msk.f32.gmra.mrb[50].mxu0 %vm700_vm1, %v3313_v53 }
 0x4a3   : > { %4805 = vmatprep.mubr.msk.f32.mxu0 %vm700_vm1, %v3314_v45 }
 0x4a6   : > { %4806 = vmatmul.mubr.msk.f32.gmra.mrb[52].mxu0 %vm700_vm1, %v3315_v37 }
 0x4a7   : > { %4808 = vmatprep.mubr.msk.f32.mxu0 %vm700_vm1, %v3316_v33 }
 0x4aa   : > { %4809 = vmatmul.mubr.msk.f32.gmra.mrb[54].mxu0 %vm700_vm1, %v3317_v23 }
 0x4ab   : > { %4811 = vmatprep.mubr.msk.f32.mxu0 %vm700_vm1, %v3318_v24 }
 0x4ae   : > { %4812 = vmatmul.mubr.msk.f32.gmra.mrb[56].mxu0 %vm700_vm1, %v3319_v60 }
 0x545   : > { %v4768_v7 = vpop.f32.mrb[26].mxu0 }
 0x546   : > { %v4958_v14 = vadd.f32 %v4768_v7, %v6643_v13  ;;  %v3485_v21 = vpop.f32.mrb[27].mxu0 }
 0x547   : > { %v4959_v0 = vadd.f32 %v3485_v21, %v6645_v29 }
 0x548   : > { %3677 = vst.msk [vmem:[#allocation4 + $0x20] sm:$0xff] %vm700_vm1, %v4958_v14 }
 0x549   : > { %3676 = vst.msk [vmem:[#allocation4] sm:$0xff] %vm700_vm1, %v4959_v0  ;;  %v4771_v31 = vpop.f32.mrb[28].mxu0  ;;  %vm3766_vm1 = vcmask 794176  }
 0x54a   : > { %v4960_v10 = vadd.f32 %v4771_v31, %v6650_v38  ;;  %v3495_v41 = vpop.f32.mrb[29].mxu0 }
 0x54b   : > { %v4961_v19 = vadd.f32 %v3495_v41, %v6652_v62 }
 0x54c   : > { %3682 = vrot.lane.b32.xlu1 %v4960_v10, %s7054_s16 }
 0x54d   : > { %3680 = vrot.lane.b32.xlu0 %v4961_v19, %s7054_s16  ;;  %v4774_v49 = vpop.f32.mrb[30].mxu0  ;;  %s7079_s16 = smov 100  }
 0x54e   : > { %v4962_v13 = vadd.f32 %v4774_v49, %v6655_v11  ;;  %v3505_v1 = vpop.f32.mrb[31].mxu0 }
 0x54f   : > { %v4963_v29 = vadd.f32 %v3505_v1, %v6657_v16 }
 0x550   : > { %3693 = vrot.lane.b32.xlu1 %v4962_v13, %s7061_s8 }
 0x551   : > { %3691 = vrot.lane.b32.xlu0 %v4963_v29, %s7061_s8  ;;  %v4777_v30 = vpop.f32.mrb[32].mxu0  ;;  %s7080_s8 = smov 125  }
 0x552   : > { %v4964_v38 = vadd.f32 %v4777_v30, %v6660_v58  ;;  %v3515_v9 = vpop.f32.mrb[33].mxu0 }
 0x553   : > { %v4965_v62 = vadd.f32 %v3515_v9, %v6665_v34 }
 0x554   : > { %3704 = vrot.lane.b32.xlu1 %v4964_v38, %s7058_s28 }
 0x555   : > { %3702 = vrot.lane.b32.xlu0 %v4965_v62, %s7058_s28  ;;  %v4780_v53 = vpop.f32.mrb[34].mxu0  ;;  %s7081_s28 = smov 22  }
 0x556   : > { %v4966_v11 = vadd.f32 %v4780_v53, %v6671_v17  ;;  %v3525_v45 = vpop.f32.mrb[35].mxu0 }
 0x557   : > { %v4967_v16 = vadd.f32 %v3525_v45, %v6673_v28 }
 0x558   : > { %3715 = vrot.lane.b32.xlu1 %v4966_v11, %s7079_s16 }
 0x559   : > { %3713 = vrot.lane.b32.xlu0 %v4967_v16, %s7079_s16  ;;  %v4783_v37 = vpop.f32.mrb[36].mxu0 }
 0x55a   : > { %v4968_v58 = vadd.f32 %v4783_v37, %v6676_v52  ;;  %v3535_v33 = vpop.f32.mrb[37].mxu0 }
 0x55b   : > { %v4969_v34 = vadd.f32 %v3535_v33, %v6681_v3 }
 0x55c   : > { %3726 = vrot.lane.b32.xlu1 %v4968_v58, %s7080_s8 }
 0x55d   : > { %3724 = vrot.lane.b32.xlu0 %v4969_v34, %s7080_s8  ;;  %v4786_v23 = vpop.f32.mrb[38].mxu0 }
 0x55e   : > { %v4970_v17 = vadd.f32 %v4786_v23, %v6688_v48  ;;  %v3545_v24 = vpop.f32.mrb[39].mxu0 }
 0x55f   : > { %v4971_v28 = vadd.f32 %v3545_v24, %v6690_v42 }
 0x560   : > { %3740 = vrot.lane.b32.xlu1 %v4970_v17, %s7081_s28 }
 0x561   : > { %3738 = vrot.lane.b32.xlu0 %v4971_v28, %s7081_s28  ;;  %v4789_v60 = vpop.f32.mrb[40].mxu0 }
 0x562   : > { %v4972_v52 = vadd.f32 %v4789_v60, %v6694_v8  ;;  %v3555_v5 = vpop.f32.mrb[41].mxu0 }
 0x563   : > { %v4973_v3 = vadd.f32 %v3555_v5, %v6708_v39  ;;  %v7085_v5 = vld [vmem:[#allocation10_spill] sm:$0xff] }
 0x564   : > { %3751 = vrot.lane.b32.xlu1 %v4972_v52, %s7082_s2 }
 0x565   : > { %3749 = vrot.lane.b32.xlu0 %v4973_v3, %s7082_s2  ;;  %v4792_v7 = vpop.f32.mrb[42].mxu0 }
 0x566   : > { %v4974_v48 = vadd.f32 %v4792_v7, %v6714_v61  ;;  %v3565_v14 = vpop.f32.mrb[43].mxu0 }
 0x567   : > { %v4975_v42 = vadd.f32 %v3565_v14, %v6717_v59 }
 0x568   : > { %3762 = vrot.lane.b32.xlu1 %v4974_v48, %s7069_s30 }
 0x569   : > { %3760 = vrot.lane.b32.xlu0 %v4975_v42, %s7069_s30  ;;  %v4795_v21 = vpop.f32.mrb[44].mxu0  ;;  %s7084_s30 = smov 119  }
 0x56a   : > { %v4976_v8 = vadd.f32 %v4795_v21, %v6720_v26  ;;  %v3575_v0 = vpop.f32.mrb[45].mxu0 }
 0x56b   : > { %v4977_v39 = vadd.f32 %v3575_v0, %v6723_v36 }
 0x56c   : > { %3773 = vrot.lane.b32.xlu1 %v4976_v8, %s7083_s6 }
 0x56d   : > { %3771 = vrot.lane.b32.xlu0 %v4977_v39, %s7083_s6  ;;  %v4798_v31 = vpop.f32.mrb[46].mxu0 }
 0x56e   : > { %v4978_v61 = vadd.f32 %v4798_v31, %v6726_v44  ;;  %v3585_v10 = vpop.f32.mrb[47].mxu0 }
 0x56f   : > { %v4979_v59 = vadd.f32 %v3585_v10, %v6729_v46 }
 0x570   : > { %3784 = vrot.lane.b32.xlu1 %v4978_v61, %s7063_s18 }
 0x571   : > { %3782 = vrot.lane.b32.xlu0 %v4979_v59, %s7063_s18  ;;  %v4801_v41 = vpop.f32.mrb[48].mxu0 }
 0x572   : > { %v4980_v26 = vadd.f32 %v4801_v41, %v6732_v47  ;;  %v3595_v19 = vpop.f32.mrb[49].mxu0 }
 0x573   : > { %v4981_v36 = vadd.f32 %v3595_v19, %v6735_v22 }
 0x575   : > { %3798 = vrot.lane.b32.xlu0 %v4980_v26, %s7071_s10  ;;  %3796 = vrot.lane.b32.xlu1 %v4981_v36, %s7071_s10  ;;  %v4804_v49 = vpop.f32.mrb[50].mxu0 }
 0x576   : > { %v4982_v44 = vadd.f32 %v4804_v49, %v6738_v35  ;;  %v3605_v13 = vpop.f32.mrb[51].mxu0 }
 0x577   : > { %v4983_v46 = vadd.f32 %v3605_v13, %v6741_v63  ;;  %v7086_v13 = vld [vmem:[#allocation12_spill] sm:$0xff] }
 0x579   : > { %3809 = vrot.lane.b32.xlu0 %v4982_v44, %s7051_s11  ;;  %3807 = vrot.lane.b32.xlu1 %v4983_v46, %s7051_s11  ;;  %v4807_v1 = vpop.f32.mrb[52].mxu0  ;;  %s7088_s11 = sld [smem:[#allocation20_spill]] }
 0x57a   : > { %v4984_v47 = vadd.f32 %v4807_v1, %v6744_v40  ;;  %v3615_v29 = vpop.f32.mrb[53].mxu0  ;;  %v7087_v1 = vld [vmem:[#allocation11_spill] sm:$0xff] }
 0x57b   : > { %v4985_v22 = vadd.f32 %v3615_v29, %v6747_v18 }
 0x57d   : > { %3820 = vrot.lane.b32.xlu0 %v4984_v47, %s7052_s13  ;;  %3818 = vrot.lane.b32.xlu1 %v4985_v22, %s7052_s13  ;;  %v4810_v30 = vpop.f32.mrb[54].mxu0 }
 0x57e   : > { %v4986_v35 = vadd.f32 %v4810_v30, %v6750_v15  ;;  %v3625_v38 = vpop.f32.mrb[55].mxu0  ;;  %v5168_v15 = vmov 2  }
 0x57f   : > { %v4987_v63 = vadd.f32 %v3625_v38, %v6753_v6  ;;  %v6893_v6 = vpop.permute.xlu1 %3876 }
 0x581   : > { %3831 = vrot.lane.b32.xlu0 %v4986_v35, %s7056_s23  ;;  %3829 = vrot.lane.b32.xlu1 %v4987_v63, %s7056_s23  ;;  %v4813_v9 = vpop.f32.mrb[56].mxu0 }
 0x582   : > { %v4988_v40 = vadd.f32 %v4813_v9, %v6756_v4  ;;  %v3635_v62 = vpop.f32.mrb[57].mxu0  ;;  %v6895_v4 = vpop.permute.xlu0 %3871 }
 0x583   : > { %v4989_v18 = vadd.f32 %v3635_v62, %v6759_v12 }
 0x585   : > { %3842 = vrot.lane.b32.xlu0 %v4988_v40, %s7084_s30  ;;  %3840 = vrot.lane.b32.xlu1 %v4989_v18, %s7084_s30 }
 0x589   : > { %3906 = vperm.xlu1 %5078, %v6706_v50   ;;  %3910 = vperm.xlu0 %5079, %v6701_v57  }
 0x58d   : > { %5080 = vset.pattern.permute.xlu1 %v5168_v15  ;;  %5081 = vset.pattern.permute.xlu0 %v5168_v15 }
 0x58e   : > { %4090 = vperm.xlu1 %5080, %v6706_v50  }
 0x592   : > { %4094 = vperm.xlu1 %5080, %v6701_v57  }
 0x5be   : > { %v3683_v12 = vpop.permute.xlu1 %3682 }
 0x5bf   : > { %3688 = vst.msk [vmem:[#allocation4 + $0x20] sm:$0xff] %vm3686_vm8, %v3683_v12  ;;  %v3681_v53 = vpop.permute.xlu0 %3680 }
 0x5c0   : > { %3687 = vst.msk [vmem:[#allocation4] sm:$0xff] %vm3686_vm8, %v3681_v53  ;;  %vm3835_vm8 = vcmask 974576  }
 0x5c2   : > { %v3694_v11 = vpop.permute.xlu1 %3693 }
 0x5c3   : > { %3699 = vst.msk [vmem:[#allocation4 + $0x20] sm:$0xff] %vm3697_vm9, %v3694_v11  ;;  %v3692_v45 = vpop.permute.xlu0 %3691  ;;  %v3903_v11 = vld [vmem:[%s7088_s11] sm:$0xff] }
 0x5c4   : > { %3698 = vst.msk [vmem:[#allocation4] sm:$0xff] %vm3697_vm9, %v3692_v45  ;;  %vm3846_vm9 = vcmask 1048504   ;;  %v3904_v45 = vld [vmem:[%s7088_s11 + $0x8] sm:$0xff] }
 0x5c6   : > { %v3705_v16 = vpop.permute.xlu1 %3704 }
 0x5c7   : > { %3710 = vst.msk [vmem:[#allocation4 + $0x20] sm:$0xff] %vm3708_vm10, %v3705_v16  ;;  %v3703_v50 = vpop.permute.xlu0 %3702 }
 0x5c8   : > { %3709 = vst.msk [vmem:[#allocation4] sm:$0xff] %vm3708_vm10, %v3703_v50 }
 0x5ca   : > { %v3716_v57 = vpop.permute.xlu1 %3715 }
 0x5cb   : > { %3721 = vst.msk [vmem:[#allocation4 + $0x20] sm:$0xff] %vm3719_vm11, %v3716_v57  ;;  %v3714_v37 = vpop.permute.xlu0 %3713 }
 0x5cc   : > { %3720 = vst.msk [vmem:[#allocation4] sm:$0xff] %vm3719_vm11, %v3714_v37 }
 0x5ce   : > { %v3727_v58 = vpop.permute.xlu1 %3726 }
 0x5cf   : > { %3734 = vst.msk [vmem:[#allocation4 + $0x20] sm:$0xff] %vm3730_vm12, %v3727_v58  ;;  %v3725_v33 = vpop.permute.xlu0 %3724 }
 0x5d0   : > { %3735 = vst.msk [vmem:[#allocation4 + $0x28] sm:$0xff] %vm3732_vm13, %v3727_v58  ;;  %3733 = vst.msk [vmem:[#allocation4 + $0x8] sm:$0xff] %vm3732_vm13, %v3725_v33 }
 0x5d1   : > { %3731 = vst.msk [vmem:[#allocation4] sm:$0xff] %vm3730_vm12, %v3725_v33 }
 0x5d2   : > { %v3741_v34 = vpop.permute.xlu1 %3740 }
 0x5d3   : > { %3746 = vst.msk [vmem:[#allocation4 + $0x28] sm:$0xff] %vm3744_vm14, %v3741_v34  ;;  %v3739_v23 = vpop.permute.xlu0 %3738 }
 0x5d4   : > { %3745 = vst.msk [vmem:[#allocation4 + $0x8] sm:$0xff] %vm3744_vm14, %v3739_v23 }
 0x5d6   : > { %v3752_v17 = vpop.permute.xlu1 %3751  ;;  %v3857_v24 = vld [vmem:[#allocation4 + $0x20] sm:$0xff] }
 0x5d7   : > { %3757 = vst.msk [vmem:[#allocation4 + $0x28] sm:$0xff] %vm3755_vm15, %v3752_v17  ;;  %v3750_v28 = vpop.permute.xlu0 %3749  ;;  %v3865_v52 = vadd.f32 %v3857_v24, %v5594_v25 }
 0x5d8   : > { %v3853_v60 = vld [vmem:[#allocation4] sm:$0xff]  ;;  %3756 = vst.msk [vmem:[#allocation4 + $0x8] sm:$0xff] %vm3755_vm15, %v3750_v28 }
 0x5d9   : > { %v3861_v3 = vadd.f32 %v3853_v60, %v7085_v5  ;;  %v3883_v7 = vadd.f32 %v6893_v6, %v3865_v52 }
 0x5da   : > { %v3763_v48 = vpop.permute.xlu1 %3762 }
 0x5db   : > { %v3879_v14 = vadd.f32 %v6895_v4, %v3861_v3  ;;  %3768 = vst.msk [vmem:[#allocation4 + $0x28] sm:$0xff] %vm3766_vm1, %v3763_v48  ;;  %v3761_v42 = vpop.permute.xlu0 %3760  ;;  %v3891_v21 = vmul.f32 0.1, %v3883_v7 }
 0x5dc   : > { %3767 = vst.msk [vmem:[#allocation4 + $0x8] sm:$0xff] %vm3766_vm1, %v3761_v42 }
 0x5dd   : > { %v3887_v8 = vmul.f32 0.1, %v3879_v14  ;;  %v3899_v0 = vmax.f32 %v3883_v7, %v3891_v21 }
 0x5de   : > { %v3774_v39 = vpop.permute.xlu1 %3773 }
 0x5df   : > { %v3895_v31 = vmax.f32 %v3879_v14, %v3887_v8  ;;  %3779 = vst.msk [vmem:[#allocation4 + $0x28] sm:$0xff] %vm3777_vm2, %v3774_v39  ;;  %v3772_v25 = vpop.permute.xlu0 %3771 }
 0x5e0   : > { %3778 = vst.msk [vmem:[#allocation4 + $0x8] sm:$0xff] %vm3777_vm2, %v3772_v25 }
 0x5e1   : > { %v4950_v61 = vpack.c.bf16 %v3899_v0, %v3895_v31 }
 0x5e2   : > { %v3785_v10 = vpop.permute.xlu1 %3784 }
 0x5e3   : > { %3792 = vst.msk [vmem:[#allocation4 + $0x28] sm:$0xff] %vm3788_vm3, %v3785_v10  ;;  %v3783_v59 = vpop.permute.xlu0 %3782 }
 0x5e4   : > { %3793 = vst.msk [vmem:[#allocation4 + $0x30] sm:$0xff] %vm3790_vm4, %v3785_v10  ;;  %3791 = vst.msk [vmem:[#allocation4 + $0x10] sm:$0xff] %vm3790_vm4, %v3783_v59  ;;  %v7089_v10 = vld [vmem:[#allocation13_spill] sm:$0xff] }
 0x5e5   : > { %3789 = vst.msk [vmem:[#allocation4 + $0x8] sm:$0xff] %vm3788_vm3, %v3783_v59 }
 0x5e7   : > { %v3799_v41 = vpop.permute.xlu0 %3798  ;;  %v3797_v26 = vpop.permute.xlu1 %3796 }
 0x5e8   : > { %3804 = vst.msk [vmem:[#allocation4 + $0x30] sm:$0xff] %vm3802_vm5, %v3799_v41  ;;  %3803 = vst.msk [vmem:[#allocation4 + $0x10] sm:$0xff] %vm3802_vm5, %v3797_v26 }
 0x5ea   : > { %v3858_v19 = vld [vmem:[#allocation4 + $0x28] sm:$0xff] }
 0x5eb   : > { %v3810_v36 = vpop.permute.xlu0 %3809  ;;  %v3808_v49 = vpop.permute.xlu1 %3807  ;;  %v3866_v46 = vadd.f32 %v3858_v19, %v7086_v13 }
 0x5ec   : > { %v3854_v44 = vld [vmem:[#allocation4 + $0x8] sm:$0xff]  ;;  %3815 = vst.msk [vmem:[#allocation4 + $0x30] sm:$0xff] %vm3813_vm6, %v3810_v36  ;;  %3814 = vst.msk [vmem:[#allocation4 + $0x10] sm:$0xff] %vm3813_vm6, %v3808_v49  ;;  %v7091_v36 = vld [vmem:[#allocation14_spill] sm:$0xff] }
 0x5ed   : > { %v3862_v47 = vadd.f32 %v3854_v44, %v7087_v1  ;;  %v3884_v29 = vadd.f32 %v6893_v6, %v3866_v46 }
 0x5ef   : > { %v3880_v22 = vadd.f32 %v6895_v4, %v3862_v47  ;;  %v3821_v30 = vpop.permute.xlu0 %3820  ;;  %v3819_v35 = vpop.permute.xlu1 %3818  ;;  %v3892_v38 = vmul.f32 0.1, %v3884_v29 }
 0x5f0   : > { %3826 = vst.msk [vmem:[#allocation4 + $0x30] sm:$0xff] %vm3824_vm7, %v3821_v30  ;;  %3825 = vst.msk [vmem:[#allocation4 + $0x10] sm:$0xff] %vm3824_vm7, %v3819_v35 }
 0x5f1   : > { %v3888_v63 = vmul.f32 0.1, %v3880_v22  ;;  %v3900_v9 = vmax.f32 %v3884_v29, %v3892_v38 }
 0x5f3   : > { %v3896_v40 = vmax.f32 %v3880_v22, %v3888_v63  ;;  %v3832_v62 = vpop.permute.xlu0 %3831  ;;  %v3830_v18 = vpop.permute.xlu1 %3829  ;;  %v7092_v22 = vld [vmem:[#allocation15_spill] sm:$0xff]  ;;  %v7095_v63 = vld [vmem:[#allocation16_spill] sm:$0xff] }
 0x5f4   : > { %3837 = vst.msk [vmem:[#allocation4 + $0x30] sm:$0xff] %vm3835_vm8, %v3832_v62  ;;  %3836 = vst.msk [vmem:[#allocation4 + $0x10] sm:$0xff] %vm3835_vm8, %v3830_v18 }
 0x5f5   : > { %v4948_v15 = vpack.c.bf16 %v3900_v9, %v3896_v40 }
 0x5f7   : > { %4949 = vmatprep.subr.bf16.mxu1 %v4948_v15  ;;  %v3843_v12 = vpop.permute.xlu0 %3842  ;;  %v3841_v53 = vpop.permute.xlu1 %3840 }
 0x5f8   : > { %4951 = vmatpush1.bf16.msra.mxu1 %v4950_v61  ;;  %3849 = vst.msk [vmem:[#allocation4 + $0x30] sm:$0xff] %vm3846_vm9, %v3843_v12  ;;  %3847 = vst.msk [vmem:[#allocation4 + $0x10] sm:$0xff] %vm3846_vm9, %v3841_v53 }
 0x5f9   : > { %3850 = vst.msk [vmem:[#allocation4 + $0x38] sm:$0xff] %vm317_vm0, %v3843_v12  ;;  %3848 = vst.msk [vmem:[#allocation4 + $0x18] sm:$0xff] %vm317_vm0, %v3841_v53 }
 0x5fb   : > { %4356 = vmatmul.mubr.msk.f32.vlgmr.msra.gmra.mrb[82].mxu1 %vm317_vm0, %v3903_v11 }
 0x5fc   : > { %3989 = vmatprep.mubr.f32.mxu1 %v7062_v56 }
 0x5ff   : > { %4357 = vmatmul.mubr.msk.f32.gmra.mrb[84].mxu1 %vm317_vm0, %v3904_v45  ;;  %v3855_v57 = vld [vmem:[#allocation4 + $0x10] sm:$0xff] }
 0x600   : > { %v3856_v16 = vld [vmem:[#allocation4 + $0x18] sm:$0xff]  ;;  %4060 = vmatprep.mubr.f32.mxu1 %v7062_v56  ;;  %v3859_v33 = vld [vmem:[#allocation4 + $0x30] sm:$0xff]  ;;  %v3863_v34 = vadd.f32 %v3855_v57, %v6238_v2 }
 0x601   : > { %v3860_v50 = vld [vmem:[#allocation4 + $0x38] sm:$0xff]  ;;  %v3864_v37 = vadd.f32 %v3856_v16, %v6242_v27  ;;  %v3867_v23 = vadd.f32 %v3859_v33, %v6246_v51 }
 0x602   : > { %v3868_v58 = vadd.f32 %v3860_v50, %v6248_v54  ;;  %v3881_v28 = vadd.f32 %v6895_v4, %v3863_v34 }
 0x603   : > { %v3882_v17 = vadd.f32 %v6895_v4, %v3864_v37  ;;  %v3885_v60 = vadd.f32 %v6893_v6, %v3867_v23 }
 0x604   : > { %v3886_v24 = vadd.f32 %v6893_v6, %v3868_v58  ;;  %v3889_v3 = vmul.f32 0.1, %v3881_v28 }
 0x605   : > { %v3890_v52 = vmul.f32 0.1, %v3882_v17  ;;  %v3893_v7 = vmul.f32 0.1, %v3885_v60 }
 0x606   : > { %v3894_v5 = vmul.f32 0.1, %v3886_v24  ;;  %v3897_v54 = vmax.f32 %v3881_v28, %v3889_v3 }
 0x607   : > { %v3898_v27 = vmax.f32 %v3882_v17, %v3890_v52  ;;  %v3901_v14 = vmax.f32 %v3885_v60, %v3893_v7 }
 0x608   : > { %v3902_v48 = vmax.f32 %v3886_v24, %v3894_v5  ;;  %v3907_v51 = vpop.permute.xlu1 %3906  ;;  %v3911_v39 = vpop.permute.xlu0 %3910 }
 0x609   : > { %v4954_v2 = vpack.c.bf16 %v3901_v14, %v3897_v54 }
 0x60a   : > { %v4952_v42 = vpack.c.bf16 %v3902_v48, %v3898_v27 }
 0x60c   : > { %4953 = vmatprep.subr.bf16.mxu1 %v4952_v42 }
 0x60d   : > { %4955 = vmatpush1.bf16.msra.mxu1 %v4954_v2  ;;  %v4091_v6 = vpop.permute.xlu1 %4090 }
 0x60e   : > { %v4097_v59 = vadd.f32 %v4091_v6, %v7089_v10  ;;  %v4099_v24 = vadd.f32 %v4091_v6, %v6253_v32  ;;  %v4100_v5 = vadd.f32 %v4091_v6, %v6255_v55 }
 0x610   : > { %4358 = vmatmul.mubr.msk.f32.vlgmr.msra.gmra.mrb[86].mxu1 %vm317_vm0, %v3903_v11 }
 0x611   : > { %4066 = vmatprep.mubr.f32.mxu1 %v7062_v56  ;;  %v4098_v56 = vadd.f32 %v4091_v6, %v7091_v36  ;;  %v4095_v49 = vpop.permute.xlu1 %4094 }
 0x612   : > { %v4101_v30 = vadd.f32 %v4095_v49, %v7092_v22  ;;  %v4102_v9 = vadd.f32 %v4095_v49, %v7095_v63  ;;  %v4103_v42 = vadd.f32 %v4095_v49, %v6260_v20  ;;  %v4104_v32 = vadd.f32 %v4095_v49, %v6262_v43 }
 0x614   : > { %4359 = vmatmul.mubr.msk.f32.gmra.mrb[88].mxu1 %vm317_vm0, %v3904_v45 }
 0x6ce   : > { %v3985_v4 = vpop.f32.mrb[82].mxu1 }
 0x6cf   : > { %v3986_v21 = vadd.f32 %v3985_v4, %v3907_v51  ;;  %v3987_v8 = vpop.f32.mrb[83].mxu1 }
 0x6d0   : > { %v3988_v0 = vadd.f32 %v3987_v8, %v3907_v51 }
 0x6d1   : > { %v4073_v31 = vmul.f32 0.1, %v3986_v21 }
 0x6d2   : > { %v4074_v25 = vmul.f32 0.1, %v3988_v0  ;;  %v3991_v61 = vpop.f32.mrb[84].mxu1 }
 0x6d3   : > { %v4081_v41 = vmax.f32 %v3986_v21, %v4073_v31  ;;  %v3992_v26 = vadd.f32 %v3991_v61, %v3911_v39  ;;  %v3993_v19 = vpop.f32.mrb[85].mxu1 }
 0x6d4   : > { %v4082_v44 = vmax.f32 %v3988_v0, %v4074_v25  ;;  %v3994_v13 = vadd.f32 %v3993_v19, %v3911_v39 }
 0x6d5   : > { %v4105_v46 = vadd.f32 %v4097_v59, %v4081_v41  ;;  %v4077_v1 = vmul.f32 0.1, %v3992_v26 }
 0x6d6   : > { %v4106_v47 = vadd.f32 %v4098_v56, %v4082_v44  ;;  %v4078_v29 = vmul.f32 0.1, %v3994_v13 }
 0x6d7   : > { %v4113_v35 = vmul.f32 0.1, %v4105_v46  ;;  %v4085_v38 = vmax.f32 %v3992_v26, %v4077_v1 }
 0x6d8   : > { %v4114_v40 = vmul.f32 0.1, %v4106_v47  ;;  %v4086_v62 = vmax.f32 %v3994_v13, %v4078_v29 }
 0x6d9   : > { %v4121_v18 = vmax.f32 %v4105_v46, %v4113_v35  ;;  %v4109_v15 = vadd.f32 %v4101_v30, %v4085_v38 }
 0x6da   : > { %v4122_v12 = vmax.f32 %v4106_v47, %v4114_v40  ;;  %v4110_v53 = vadd.f32 %v4102_v9, %v4086_v62 }
 0x6db   : > { %4129 = vst [vmem:[%s6936_s20] sm:$0xff] %v4121_v18  ;;  %v4117_v11 = vmul.f32 0.1, %v4109_v15 }
 0x6dc   : > { %4130 = vst [vmem:[%s6936_s20 + $0x8] sm:$0xff] %v4122_v12  ;;  %v4118_v45 = vmul.f32 0.1, %v4110_v53 }
 0x6dd   : > { %v4125_v16 = vmax.f32 %v4109_v15, %v4117_v11 }
 0x6de   : > { %v4126_v50 = vmax.f32 %v4110_v53, %v4118_v45 }
 0x6df   : > { %4133 = vst [vmem:[%s6936_s20 + $0x20] sm:$0xff] %v4125_v16 }
 0x6e0   : > { %4134 = vst [vmem:[%s6936_s20 + $0x28] sm:$0xff] %v4126_v50 }
 0x6e3   : > { %v4062_v57 = vpop.f32.mrb[86].mxu1 }
 0x6e4   : > { %v4063_v37 = vadd.f32 %v4062_v57, %v3907_v51  ;;  %v4064_v58 = vpop.f32.mrb[87].mxu1 }
 0x6e5   : > { %v4065_v33 = vadd.f32 %v4064_v58, %v3907_v51 }
 0x6e6   : > { %v4075_v34 = vmul.f32 0.1, %v4063_v37 }
 0x6e7   : > { %v4076_v23 = vmul.f32 0.1, %v4065_v33  ;;  %v4068_v17 = vpop.f32.mrb[88].mxu1 }
 0x6e8   : > { %v4083_v28 = vmax.f32 %v4063_v37, %v4075_v34  ;;  %v4069_v60 = vadd.f32 %v4068_v17, %v3911_v39  ;;  %v4070_v52 = vpop.f32.mrb[89].mxu1 }
 0x6e9   : > { %v4084_v3 = vmax.f32 %v4065_v33, %v4076_v23  ;;  %v4071_v7 = vadd.f32 %v4070_v52, %v3911_v39 }
 0x6ea   : > { %v4107_v27 = vadd.f32 %v4099_v24, %v4083_v28  ;;  %v4079_v48 = vmul.f32 0.1, %v4069_v60 }
 0x6eb   : > { %v4108_v54 = vadd.f32 %v4100_v5, %v4084_v3  ;;  %v4080_v14 = vmul.f32 0.1, %v4071_v7 }
 0x6ec   : > { %v4115_v2 = vmul.f32 0.1, %v4107_v27  ;;  %v4087_v51 = vmax.f32 %v4069_v60, %v4079_v48 }
 0x6ed   : > { %v4116_v4 = vmul.f32 0.1, %v4108_v54  ;;  %v4088_v21 = vmax.f32 %v4071_v7, %v4080_v14 }
 0x6ee   : > { %v4123_v8 = vmax.f32 %v4107_v27, %v4115_v2  ;;  %v4111_v55 = vadd.f32 %v4103_v42, %v4087_v51 }
 0x6ef   : > { %v4124_v6 = vmax.f32 %v4108_v54, %v4116_v4  ;;  %v4112_v0 = vadd.f32 %v4104_v32, %v4088_v21 }
 0x6f0   : > { %4131 = vst [vmem:[%s6936_s20 + $0x10] sm:$0xff] %v4123_v8  ;;  %v4119_v39 = vmul.f32 0.1, %v4111_v55 }
 0x6f1   : > { %4132 = vst.msk [vmem:[%s6936_s20 + $0x18] sm:$0xff] %vm317_vm0, %v4124_v6  ;;  %v4120_v31 = vmul.f32 0.1, %v4112_v0 }
 0x6f2   : > { %v4127_v25 = vmax.f32 %v4111_v55, %v4119_v39 }
 0x6f3   : > { %v4128_v61 = vmax.f32 %v4112_v0, %v4120_v31 }
 0x6f4   : > { %4135 = vst [vmem:[%s6936_s20 + $0x30] sm:$0xff] %v4127_v25 }
 0x6f5   : > { %4136 = vst.msk [vmem:[%s6936_s20 + $0x38] sm:$0xff] %vm317_vm0, %v4128_v61 }
 0x6f6 PF: > { %s7096_s29 = sld [smem:[#allocation8_spill]] }
 0x6fc   : > { %s18_s24 = sadd.s32 1, %s7096_s29  }
 0x6fd   : > { %p15_p1 = scmp.ge.s32.totalorder %s18_s24, 4  }
 0x6ff   :  { %17 = sbr.rel (!%p15_p1) target bundleno = 8 (0x8), region = 85 }
 0x706   :  { %4158 = vsyncpa [#allocation6], 1 }
 0x707   :  { %4160 = vsyncpa [#allocation6 + $0x1], 1 }

</bundles_post_ra>
